<compile_context>
chip_gen: v6e
topology: v6e:2x2x1
jax: 0.10.0
libtpu: 0.0.40
codegen_flags: <defaults>
</compile_context>

<pallas_src>
import jax
import jax.numpy as jnp
from jax import lax
from jax.experimental import pallas as pl
from jax.experimental.pallas import tpu as pltpu


# ------------------------------ kernel helpers ------------------------------

def _conv2d_relu_rows(load_row, w_ref, b_ref, out_ref, *, h_out, w_out, ksize=5):
    """Valid conv (stride 1) + bias + ReLU, one output row per loop iteration.

    load_row(r, kx) must return a (w_out, Ci) slab whose row w' is x[r, w'+kx, :].
    w_ref: (ksize, ksize, Ci, Co) packed weights; out_ref: (h_out, w_out, Co).
    """
    co = w_ref.shape[3]
    bias = b_ref[...]                                      # (1, Co)

    def row_body(h, carry):
        acc = jnp.zeros((w_out, co), jnp.float32)
        for ky in range(ksize):
            for kx in range(ksize):
                acc = acc + jnp.dot(load_row(h + ky, kx), w_ref[ky, kx],
                                    preferred_element_type=jnp.float32)
        out_ref[h] = jnp.maximum(acc + bias, 0.0)
        return carry

    lax.fori_loop(0, h_out, row_body, 0)


def _maxpool2x2_rows(src_ref, dst_ref, *, h_out, w_out):
    """2x2 / stride-2 max pool: (2*h_out, 2*w_out, C) -> (h_out, w_out, C).

    Horizontal (w) compaction is done with exact 0/1 selection matmuls so no
    strided memory access is needed; vertical (h) pairing is two row reads.
    """
    w_in = 2 * w_out
    col = lax.broadcasted_iota(jnp.int32, (w_out, w_in), 1)
    row2 = 2 * lax.broadcasted_iota(jnp.int32, (w_out, w_in), 0)
    sel_even = jnp.where(col == row2, 1.0, 0.0).astype(jnp.float32)      # picks w = 2*wo
    sel_odd = jnp.where(col == row2 + 1, 1.0, 0.0).astype(jnp.float32)   # picks w = 2*wo+1

    def row_body(ho, carry):
        h0 = 2 * ho
        m = jnp.maximum(src_ref[h0], src_ref[h0 + 1])                    # (w_in, C)
        even = jnp.dot(sel_even, m, preferred_element_type=jnp.float32)  # (w_out, C)
        odd = jnp.dot(sel_odd, m, preferred_element_type=jnp.float32)
        dst_ref[ho] = jnp.maximum(even, odd)
        return carry

    lax.fori_loop(0, h_out, row_body, 0)


def _net_kernel(x_ref, w1_ref, b1_ref, w2_ref, b2_ref,
                fc1w_ref, fc1b_ref, fc2w_ref, fc2b_ref, fc3w_ref, fc3b_ref,
                o_ref,
                a1_ref, p1_ref, a2_ref, p2_ref):
    # conv1 + ReLU : (32,32,3) -> (28,28,6)   (channels-last, VMEM resident)
    _conv2d_relu_rows(lambda r, kx: x_ref[0, r, kx:kx + 28, :],
                      w1_ref, b1_ref, a1_ref, h_out=28, w_out=28)
    # pool1 : (28,28,6) -> (14,14,6)
    _maxpool2x2_rows(a1_ref, p1_ref, h_out=14, w_out=14)
    # conv2 + ReLU : (14,14,6) -> (10,10,16)
    _conv2d_relu_rows(lambda r, kx: p1_ref[r, kx:kx + 10, :],
                      w2_ref, b2_ref, a2_ref, h_out=10, w_out=10)
    # pool2 : (10,10,16) -> (5,5,16)
    _maxpool2x2_rows(a2_ref, p2_ref, h_out=5, w_out=5)

    # fc1 over the (5,5,16) pooled map with NO flatten/reshape:
    #   y[n] = b1[n] + sum_{h,w} p2[h,w,:] @ fc1w[h,w,:,n]   (weights pre-permuted)
    y = fc1b_ref[...]                                        # (1, 128); lanes >=120 are 0
    for h in range(5):
        for w in range(5):
            y = y + jnp.dot(p2_ref[h, w:w + 1, :], fc1w_ref[h, w],
                            preferred_element_type=jnp.float32)
    y = jnp.maximum(y, 0.0)

    # fc2 + ReLU, fc3 (lane-dense 128-wide padded matmuls; padding lanes stay 0)
    y = jnp.maximum(jnp.dot(y, fc2w_ref[...], preferred_element_type=jnp.float32)
                    + fc2b_ref[...], 0.0)
    y = jnp.dot(y, fc3w_ref[...], preferred_element_type=jnp.float32) + fc3b_ref[...]
    o_ref[0] = y                                             # (1, 128) lane-dense store


# ------------------------------ host-side wrapper ------------------------------

def _full_spec(shape):
    return pl.BlockSpec(shape, lambda *_: (0,) * len(shape))


def net_forward(packed, x):
    """x: (B, 3, 32, 32) NCHW float32 -> logits (B, 10)."""
    B = x.shape[0]
    # Single boundary-only relayout to channels-last; everything else is in-kernel.
    x_nhwc = jnp.transpose(x, (0, 2, 3, 1)).astype(jnp.float32)     # (B, 32, 32, 3)

    out = pl.pallas_call(
        _net_kernel,
        out_shape=jax.ShapeDtypeStruct((B, 1, 128), jnp.float32),
        grid=(B,),
        in_specs=[
            pl.BlockSpec((1, 32, 32, 3), lambda b: (b, 0, 0, 0)),
            _full_spec((5, 5, 3, 6)), _full_spec((1, 6)),
            _full_spec((5, 5, 6, 16)), _full_spec((1, 16)),
            _full_spec((5, 5, 16, 128)), _full_spec((1, 128)),
            _full_spec((128, 128)), _full_spec((1, 128)),
            _full_spec((128, 128)), _full_spec((1, 128)),
        ],
        out_specs=pl.BlockSpec((1, 1, 128), lambda b: (b, 0, 0)),
        scratch_shapes=[
            pltpu.VMEM((28, 28, 6), jnp.float32),   # conv1 output
            pltpu.VMEM((14, 14, 6), jnp.float32),   # pool1 output
            pltpu.VMEM((10, 10, 16), jnp.float32),  # conv2 output
            pltpu.VMEM((5, 5, 16), jnp.float32),    # pool2 output
        ],
        compiler_params=pltpu.CompilerParams(
            dimension_semantics=("parallel",),       # shards batch across v7x's 2 TCs
            vmem_limit_bytes=32 * 1024 * 1024,       # explicit budget (safe on v5e/v6e/v7x)
        ),
    )(x_nhwc,
      packed["w1"], packed["b1"], packed["w2"], packed["b2"],
      packed["fc1_w"], packed["fc1_b"], packed["fc2_w"], packed["fc2_b"],
      packed["fc3_w"], packed["fc3_b"])
    return out[:, 0, :10]


# ------------------------- parameter init / packing -------------------------

def init_params(key):
    """PyTorch-layout parameters (Conv2d: (Co,Ci,kh,kw); Linear: (out,in))."""
    def uniform(k, shape, fan_in):
        bound = 1.0 / float(fan_in) ** 0.5
        return jax.random.uniform(k, shape, jnp.float32, -bound, bound)

    ks = jax.random.split(key, 10)
    return {
        "conv1_w": uniform(ks[0], (6, 3, 5, 5), 3 * 5 * 5),
        "conv1_b": uniform(ks[1], (6,), 3 * 5 * 5),
        "conv2_w": uniform(ks[2], (16, 6, 5, 5), 6 * 5 * 5),
        "conv2_b": uniform(ks[3], (16,), 6 * 5 * 5),
        "fc1_w": uniform(ks[4], (120, 400), 400),   # see TODO(synk) above
        "fc1_b": uniform(ks[5], (120,), 400),
        "fc2_w": uniform(ks[6], (84, 120), 120),
        "fc2_b": uniform(ks[7], (84,), 120),
        "fc3_w": uniform(ks[8], (10, 84), 84),
        "fc3_b": uniform(ks[9], (10,), 84),
    }


def _pad_to(a, shape):
    return jnp.pad(a, [(0, t - s) for s, t in zip(a.shape, shape)])


def pack_params(p):
    """One-time packing: pre-transposed, lane-dense (zero-padded to 128) weight slabs."""
    f32 = jnp.float32
    return {
        "w1": jnp.transpose(p["conv1_w"], (2, 3, 1, 0)).astype(f32),        # (ky,kx,ci,co)
        "b1": p["conv1_b"].reshape(1, 6).astype(f32),
        "w2": jnp.transpose(p["conv2_w"], (2, 3, 1, 0)).astype(f32),        # (ky,kx,ci,co)
        "b2": p["conv2_b"].reshape(1, 16).astype(f32),
        # fc1 acts on flatten(pooled NCHW) index c*25 + h*5 + w -> repack to [h, w, c, n].
        "fc1_w": _pad_to(jnp.transpose(p["fc1_w"].reshape(120, 16, 5, 5),
                                       (2, 3, 1, 0)).astype(f32), (5, 5, 16, 128)),
        "fc1_b": _pad_to(p["fc1_b"].reshape(1, 120).astype(f32), (1, 128)),
        "fc2_w": _pad_to(p["fc2_w"].T.astype(f32), (128, 128)),
        "fc2_b": _pad_to(p["fc2_b"].reshape(1, 84).astype(f32), (1, 128)),
        "fc3_w": _pad_to(p["fc3_w"].T.astype(f32), (128, 128)),
        "fc3_b": _pad_to(p["fc3_b"].reshape(1, 10).astype(f32), (1, 128)),
    }


# ---------------------------- pure-XLA reference ----------------------------

def net_reference(params, x):
    with jax.default_matmul_precision("highest"):
        y = lax.conv_general_dilated(x, params["conv1_w"], (1, 1), "VALID",
                                     dimension_numbers=("NCHW", "OIHW", "NCHW"))
        y = jax.nn.relu(y + params["conv1_b"][None, :, None, None])
        y = lax.reduce_window(y, -jnp.inf, lax.max, (1, 1, 2, 2), (1, 1, 2, 2), "VALID")
        y = lax.conv_general_dilated(y, params["conv2_w"], (1, 1), "VALID",
                                     dimension_numbers=("NCHW", "OIHW", "NCHW"))
        y = jax.nn.relu(y + params["conv2_b"][None, :, None, None])
        y = lax.reduce_window(y, -jnp.inf, lax.max, (1, 1, 2, 2), (1, 1, 2, 2), "VALID")
        y = y.reshape(y.shape[0], 16 * 5 * 5)
        y = jax.nn.relu(y @ params["fc1_w"].T + params["fc1_b"])
        y = jax.nn.relu(y @ params["fc2_w"].T + params["fc2_b"])
        return y @ params["fc3_w"].T + params["fc3_b"]


if __name__ == "__main__":
    key = jax.random.PRNGKey(0)
    pkey, xkey = jax.random.split(key)
    params = init_params(pkey)
    x = jax.random.normal(xkey, (2, 3, 32, 32), jnp.float32)

    packed = pack_params(params)                     # one-time weight packing
    out = jax.jit(net_forward)(packed, x)
    out = jax.block_until_ready(out)
    assert out.shape == (2, 10) and out.dtype == jnp.float32

    ref = jax.block_until_ready(net_reference(params, x))
    assert jnp.allclose(out, ref, atol=1e-2, rtol=1e-2), (out, ref)
    print("KERNEL_OK")
</pallas_src>

<mosaic_0001>
module attributes {stable_mosaic.version = 11 : i64} {
  func.func @_net_kernel(%arg0: i32, %arg1: memref<1x32x32x3xf32, #tpu.memory_space<vmem>>, %arg2: memref<5x5x3x6xf32, #tpu.memory_space<vmem>>, %arg3: memref<1x6xf32, #tpu.memory_space<vmem>>, %arg4: memref<5x5x6x16xf32, #tpu.memory_space<vmem>>, %arg5: memref<1x16xf32, #tpu.memory_space<vmem>>, %arg6: memref<5x5x16x128xf32, #tpu.memory_space<vmem>>, %arg7: memref<1x128xf32, #tpu.memory_space<vmem>>, %arg8: memref<128x128xf32, #tpu.memory_space<vmem>>, %arg9: memref<1x128xf32, #tpu.memory_space<vmem>>, %arg10: memref<128x128xf32, #tpu.memory_space<vmem>>, %arg11: memref<1x128xf32, #tpu.memory_space<vmem>>, %arg12: memref<1x1x128xf32, #tpu.memory_space<vmem>>, %arg13: memref<28x28x6xf32, #tpu.memory_space<vmem>>, %arg14: memref<14x14x6xf32, #tpu.memory_space<vmem>>, %arg15: memref<10x10x16xf32, #tpu.memory_space<vmem>>, %arg16: memref<5x5x16xf32, #tpu.memory_space<vmem>>) attributes {dimension_semantics = [#tpu.dimension_semantics<parallel>], iteration_bounds = array<i64: 2>, scalar_prefetch = 0 : i64, scratch_operands = 4 : i64, tpu.core_type = #tpu.core_type<tc>, window_params = [{transform_indices = @transform_0, window_bounds = array<i64: 1, 32, 32, 3>}, {pipeline_mode = #tpu.pipeline_mode<synchronous>, transform_indices = @transform_1, window_bounds = array<i64: 5, 5, 3, 6>}, {pipeline_mode = #tpu.pipeline_mode<synchronous>, transform_indices = @transform_2, window_bounds = array<i64: 1, 6>}, {pipeline_mode = #tpu.pipeline_mode<synchronous>, transform_indices = @transform_3, window_bounds = array<i64: 5, 5, 6, 16>}, {pipeline_mode = #tpu.pipeline_mode<synchronous>, transform_indices = @transform_4, window_bounds = array<i64: 1, 16>}, {pipeline_mode = #tpu.pipeline_mode<synchronous>, transform_indices = @transform_5, window_bounds = array<i64: 5, 5, 16, 128>}, {pipeline_mode = #tpu.pipeline_mode<synchronous>, transform_indices = @transform_6, window_bounds = array<i64: 1, 128>}, {pipeline_mode = #tpu.pipeline_mode<synchronous>, transform_indices = @transform_7, window_bounds = array<i64: 128, 128>}, {pipeline_mode = #tpu.pipeline_mode<synchronous>, transform_indices = @transform_8, window_bounds = array<i64: 1, 128>}, {pipeline_mode = #tpu.pipeline_mode<synchronous>, transform_indices = @transform_9, window_bounds = array<i64: 128, 128>}, {pipeline_mode = #tpu.pipeline_mode<synchronous>, transform_indices = @transform_10, window_bounds = array<i64: 1, 128>}, {transform_indices = @transform_11, window_bounds = array<i64: 1, 1, 128>}]} {
    %c0 = arith.constant 0 : index
    %c0_0 = arith.constant 0 : index
    %0 = vector.load %arg3[%c0, %c0_0] : memref<1x6xf32, #tpu.memory_space<vmem>>, vector<1x6xf32>
    %c0_i32 = arith.constant 0 : i32
    %c28_i32 = arith.constant 28 : i32
    %1 = arith.addi %c0_i32, %c28_i32 : i32
    %c1_i32 = arith.constant 1 : i32
    scf.for %arg17 = %c0_i32 to %1 step %c1_i32  : i32 {
      %cst_236 = arith.constant 0.000000e+00 : f32
      %200 = vector.broadcast %cst_236 : f32 to vector<28x6xf32>
      %c0_i32_237 = arith.constant 0 : i32
      %201 = arith.addi %arg17, %c0_i32_237 : i32
      %c0_238 = arith.constant 0 : index
      %202 = arith.index_cast %201 : i32 to index
      %c0_239 = arith.constant 0 : index
      %c0_240 = arith.constant 0 : index
      %203 = vector.load %arg1[%c0_238, %202, %c0_239, %c0_240] : memref<1x32x32x3xf32, #tpu.memory_space<vmem>>, vector<1x1x28x3xf32>
      %204 = vector.shape_cast %203 : vector<1x1x28x3xf32> to vector<28x3xf32>
      %c0_241 = arith.constant 0 : index
      %c0_242 = arith.constant 0 : index
      %c0_243 = arith.constant 0 : index
      %c0_244 = arith.constant 0 : index
      %205 = vector.load %arg2[%c0_241, %c0_242, %c0_243, %c0_244] : memref<5x5x3x6xf32, #tpu.memory_space<vmem>>, vector<1x1x3x6xf32>
      %206 = vector.shape_cast %205 : vector<1x1x3x6xf32> to vector<3x6xf32>
      %cst_245 = arith.constant dense<0.000000e+00> : vector<28x6xf32>
      %207 = tpu.matmul %204, %206, %cst_245 {dimension_numbers = #tpu.dot_dimension_numbers<[1], [0], [0], [1], [0, 0, 1, 1], [], []>} : vector<28x3xf32>, vector<3x6xf32>, vector<28x6xf32> -> vector<28x6xf32>
      %208 = arith.addf %200, %207 : vector<28x6xf32>
      %c0_i32_246 = arith.constant 0 : i32
      %209 = arith.addi %arg17, %c0_i32_246 : i32
      %c0_247 = arith.constant 0 : index
      %210 = arith.index_cast %209 : i32 to index
      %c1_248 = arith.constant 1 : index
      %c0_249 = arith.constant 0 : index
      %211 = vector.load %arg1[%c0_247, %210, %c1_248, %c0_249] : memref<1x32x32x3xf32, #tpu.memory_space<vmem>>, vector<1x1x28x3xf32>
      %212 = vector.shape_cast %211 : vector<1x1x28x3xf32> to vector<28x3xf32>
      %c0_250 = arith.constant 0 : index
      %c1_251 = arith.constant 1 : index
      %c0_252 = arith.constant 0 : index
      %c0_253 = arith.constant 0 : index
      %213 = vector.load %arg2[%c0_250, %c1_251, %c0_252, %c0_253] : memref<5x5x3x6xf32, #tpu.memory_space<vmem>>, vector<1x1x3x6xf32>
      %214 = vector.shape_cast %213 : vector<1x1x3x6xf32> to vector<3x6xf32>
      %cst_254 = arith.constant dense<0.000000e+00> : vector<28x6xf32>
      %215 = tpu.matmul %212, %214, %cst_254 {dimension_numbers = #tpu.dot_dimension_numbers<[1], [0], [0], [1], [0, 0, 1, 1], [], []>} : vector<28x3xf32>, vector<3x6xf32>, vector<28x6xf32> -> vector<28x6xf32>
      %216 = arith.addf %208, %215 : vector<28x6xf32>
      %c0_i32_255 = arith.constant 0 : i32
      %217 = arith.addi %arg17, %c0_i32_255 : i32
      %c0_256 = arith.constant 0 : index
      %218 = arith.index_cast %217 : i32 to index
      %c2_257 = arith.constant 2 : index
      %c0_258 = arith.constant 0 : index
      %219 = vector.load %arg1[%c0_256, %218, %c2_257, %c0_258] : memref<1x32x32x3xf32, #tpu.memory_space<vmem>>, vector<1x1x28x3xf32>
      %220 = vector.shape_cast %219 : vector<1x1x28x3xf32> to vector<28x3xf32>
      %c0_259 = arith.constant 0 : index
      %c2_260 = arith.constant 2 : index
      %c0_261 = arith.constant 0 : index
      %c0_262 = arith.constant 0 : index
      %221 = vector.load %arg2[%c0_259, %c2_260, %c0_261, %c0_262] : memref<5x5x3x6xf32, #tpu.memory_space<vmem>>, vector<1x1x3x6xf32>
      %222 = vector.shape_cast %221 : vector<1x1x3x6xf32> to vector<3x6xf32>
      %cst_263 = arith.constant dense<0.000000e+00> : vector<28x6xf32>
      %223 = tpu.matmul %220, %222, %cst_263 {dimension_numbers = #tpu.dot_dimension_numbers<[1], [0], [0], [1], [0, 0, 1, 1], [], []>} : vector<28x3xf32>, vector<3x6xf32>, vector<28x6xf32> -> vector<28x6xf32>
      %224 = arith.addf %216, %223 : vector<28x6xf32>
      %c0_i32_264 = arith.constant 0 : i32
      %225 = arith.addi %arg17, %c0_i32_264 : i32
      %c0_265 = arith.constant 0 : index
      %226 = arith.index_cast %225 : i32 to index
      %c3_266 = arith.constant 3 : index
      %c0_267 = arith.constant 0 : index
      %227 = vector.load %arg1[%c0_265, %226, %c3_266, %c0_267] : memref<1x32x32x3xf32, #tpu.memory_space<vmem>>, vector<1x1x28x3xf32>
      %228 = vector.shape_cast %227 : vector<1x1x28x3xf32> to vector<28x3xf32>
      %c0_268 = arith.constant 0 : index
      %c3_269 = arith.constant 3 : index
      %c0_270 = arith.constant 0 : index
      %c0_271 = arith.constant 0 : index
      %229 = vector.load %arg2[%c0_268, %c3_269, %c0_270, %c0_271] : memref<5x5x3x6xf32, #tpu.memory_space<vmem>>, vector<1x1x3x6xf32>
      %230 = vector.shape_cast %229 : vector<1x1x3x6xf32> to vector<3x6xf32>
      %cst_272 = arith.constant dense<0.000000e+00> : vector<28x6xf32>
      %231 = tpu.matmul %228, %230, %cst_272 {dimension_numbers = #tpu.dot_dimension_numbers<[1], [0], [0], [1], [0, 0, 1, 1], [], []>} : vector<28x3xf32>, vector<3x6xf32>, vector<28x6xf32> -> vector<28x6xf32>
      %232 = arith.addf %224, %231 : vector<28x6xf32>
      %c0_i32_273 = arith.constant 0 : i32
      %233 = arith.addi %arg17, %c0_i32_273 : i32
      %c0_274 = arith.constant 0 : index
      %234 = arith.index_cast %233 : i32 to index
      %c4_275 = arith.constant 4 : index
      %c0_276 = arith.constant 0 : index
      %235 = vector.load %arg1[%c0_274, %234, %c4_275, %c0_276] : memref<1x32x32x3xf32, #tpu.memory_space<vmem>>, vector<1x1x28x3xf32>
      %236 = vector.shape_cast %235 : vector<1x1x28x3xf32> to vector<28x3xf32>
      %c0_277 = arith.constant 0 : index
      %c4_278 = arith.constant 4 : index
      %c0_279 = arith.constant 0 : index
      %c0_280 = arith.constant 0 : index
      %237 = vector.load %arg2[%c0_277, %c4_278, %c0_279, %c0_280] : memref<5x5x3x6xf32, #tpu.memory_space<vmem>>, vector<1x1x3x6xf32>
      %238 = vector.shape_cast %237 : vector<1x1x3x6xf32> to vector<3x6xf32>
      %cst_281 = arith.constant dense<0.000000e+00> : vector<28x6xf32>
      %239 = tpu.matmul %236, %238, %cst_281 {dimension_numbers = #tpu.dot_dimension_numbers<[1], [0], [0], [1], [0, 0, 1, 1], [], []>} : vector<28x3xf32>, vector<3x6xf32>, vector<28x6xf32> -> vector<28x6xf32>
      %240 = arith.addf %232, %239 : vector<28x6xf32>
      %c1_i32_282 = arith.constant 1 : i32
      %241 = arith.addi %arg17, %c1_i32_282 : i32
      %c0_283 = arith.constant 0 : index
      %242 = arith.index_cast %241 : i32 to index
      %c0_284 = arith.constant 0 : index
      %c0_285 = arith.constant 0 : index
      %243 = vector.load %arg1[%c0_283, %242, %c0_284, %c0_285] : memref<1x32x32x3xf32, #tpu.memory_space<vmem>>, vector<1x1x28x3xf32>
      %244 = vector.shape_cast %243 : vector<1x1x28x3xf32> to vector<28x3xf32>
      %c1_286 = arith.constant 1 : index
      %c0_287 = arith.constant 0 : index
      %c0_288 = arith.constant 0 : index
      %c0_289 = arith.constant 0 : index
      %245 = vector.load %arg2[%c1_286, %c0_287, %c0_288, %c0_289] : memref<5x5x3x6xf32, #tpu.memory_space<vmem>>, vector<1x1x3x6xf32>
      %246 = vector.shape_cast %245 : vector<1x1x3x6xf32> to vector<3x6xf32>
      %cst_290 = arith.constant dense<0.000000e+00> : vector<28x6xf32>
      %247 = tpu.matmul %244, %246, %cst_290 {dimension_numbers = #tpu.dot_dimension_numbers<[1], [0], [0], [1], [0, 0, 1, 1], [], []>} : vector<28x3xf32>, vector<3x6xf32>, vector<28x6xf32> -> vector<28x6xf32>
      %248 = arith.addf %240, %247 : vector<28x6xf32>
      %c1_i32_291 = arith.constant 1 : i32
      %249 = arith.addi %arg17, %c1_i32_291 : i32
      %c0_292 = arith.constant 0 : index
      %250 = arith.index_cast %249 : i32 to index
      %c1_293 = arith.constant 1 : index
      %c0_294 = arith.constant 0 : index
      %251 = vector.load %arg1[%c0_292, %250, %c1_293, %c0_294] : memref<1x32x32x3xf32, #tpu.memory_space<vmem>>, vector<1x1x28x3xf32>
      %252 = vector.shape_cast %251 : vector<1x1x28x3xf32> to vector<28x3xf32>
      %c1_295 = arith.constant 1 : index
      %c1_296 = arith.constant 1 : index
      %c0_297 = arith.constant 0 : index
      %c0_298 = arith.constant 0 : index
      %253 = vector.load %arg2[%c1_295, %c1_296, %c0_297, %c0_298] : memref<5x5x3x6xf32, #tpu.memory_space<vmem>>, vector<1x1x3x6xf32>
      %254 = vector.shape_cast %253 : vector<1x1x3x6xf32> to vector<3x6xf32>
      %cst_299 = arith.constant dense<0.000000e+00> : vector<28x6xf32>
      %255 = tpu.matmul %252, %254, %cst_299 {dimension_numbers = #tpu.dot_dimension_numbers<[1], [0], [0], [1], [0, 0, 1, 1], [], []>} : vector<28x3xf32>, vector<3x6xf32>, vector<28x6xf32> -> vector<28x6xf32>
      %256 = arith.addf %248, %255 : vector<28x6xf32>
      %c1_i32_300 = arith.constant 1 : i32
      %257 = arith.addi %arg17, %c1_i32_300 : i32
      %c0_301 = arith.constant 0 : index
      %258 = arith.index_cast %257 : i32 to index
      %c2_302 = arith.constant 2 : index
      %c0_303 = arith.constant 0 : index
      %259 = vector.load %arg1[%c0_301, %258, %c2_302, %c0_303] : memref<1x32x32x3xf32, #tpu.memory_space<vmem>>, vector<1x1x28x3xf32>
      %260 = vector.shape_cast %259 : vector<1x1x28x3xf32> to vector<28x3xf32>
      %c1_304 = arith.constant 1 : index
      %c2_305 = arith.constant 2 : index
      %c0_306 = arith.constant 0 : index
      %c0_307 = arith.constant 0 : index
      %261 = vector.load %arg2[%c1_304, %c2_305, %c0_306, %c0_307] : memref<5x5x3x6xf32, #tpu.memory_space<vmem>>, vector<1x1x3x6xf32>
      %262 = vector.shape_cast %261 : vector<1x1x3x6xf32> to vector<3x6xf32>
      %cst_308 = arith.constant dense<0.000000e+00> : vector<28x6xf32>
      %263 = tpu.matmul %260, %262, %cst_308 {dimension_numbers = #tpu.dot_dimension_numbers<[1], [0], [0], [1], [0, 0, 1, 1], [], []>} : vector<28x3xf32>, vector<3x6xf32>, vector<28x6xf32> -> vector<28x6xf32>
      %264 = arith.addf %256, %263 : vector<28x6xf32>
      %c1_i32_309 = arith.constant 1 : i32
      %265 = arith.addi %arg17, %c1_i32_309 : i32
      %c0_310 = arith.constant 0 : index
      %266 = arith.index_cast %265 : i32 to index
      %c3_311 = arith.constant 3 : index
      %c0_312 = arith.constant 0 : index
      %267 = vector.load %arg1[%c0_310, %266, %c3_311, %c0_312] : memref<1x32x32x3xf32, #tpu.memory_space<vmem>>, vector<1x1x28x3xf32>
      %268 = vector.shape_cast %267 : vector<1x1x28x3xf32> to vector<28x3xf32>
      %c1_313 = arith.constant 1 : index
      %c3_314 = arith.constant 3 : index
      %c0_315 = arith.constant 0 : index
      %c0_316 = arith.constant 0 : index
      %269 = vector.load %arg2[%c1_313, %c3_314, %c0_315, %c0_316] : memref<5x5x3x6xf32, #tpu.memory_space<vmem>>, vector<1x1x3x6xf32>
      %270 = vector.shape_cast %269 : vector<1x1x3x6xf32> to vector<3x6xf32>
      %cst_317 = arith.constant dense<0.000000e+00> : vector<28x6xf32>
      %271 = tpu.matmul %268, %270, %cst_317 {dimension_numbers = #tpu.dot_dimension_numbers<[1], [0], [0], [1], [0, 0, 1, 1], [], []>} : vector<28x3xf32>, vector<3x6xf32>, vector<28x6xf32> -> vector<28x6xf32>
      %272 = arith.addf %264, %271 : vector<28x6xf32>
      %c1_i32_318 = arith.constant 1 : i32
      %273 = arith.addi %arg17, %c1_i32_318 : i32
      %c0_319 = arith.constant 0 : index
      %274 = arith.index_cast %273 : i32 to index
      %c4_320 = arith.constant 4 : index
      %c0_321 = arith.constant 0 : index
      %275 = vector.load %arg1[%c0_319, %274, %c4_320, %c0_321] : memref<1x32x32x3xf32, #tpu.memory_space<vmem>>, vector<1x1x28x3xf32>
      %276 = vector.shape_cast %275 : vector<1x1x28x3xf32> to vector<28x3xf32>
      %c1_322 = arith.constant 1 : index
      %c4_323 = arith.constant 4 : index
      %c0_324 = arith.constant 0 : index
      %c0_325 = arith.constant 0 : index
      %277 = vector.load %arg2[%c1_322, %c4_323, %c0_324, %c0_325] : memref<5x5x3x6xf32, #tpu.memory_space<vmem>>, vector<1x1x3x6xf32>
      %278 = vector.shape_cast %277 : vector<1x1x3x6xf32> to vector<3x6xf32>
      %cst_326 = arith.constant dense<0.000000e+00> : vector<28x6xf32>
      %279 = tpu.matmul %276, %278, %cst_326 {dimension_numbers = #tpu.dot_dimension_numbers<[1], [0], [0], [1], [0, 0, 1, 1], [], []>} : vector<28x3xf32>, vector<3x6xf32>, vector<28x6xf32> -> vector<28x6xf32>
      %280 = arith.addf %272, %279 : vector<28x6xf32>
      %c2_i32_327 = arith.constant 2 : i32
      %281 = arith.addi %arg17, %c2_i32_327 : i32
      %c0_328 = arith.constant 0 : index
      %282 = arith.index_cast %281 : i32 to index
      %c0_329 = arith.constant 0 : index
      %c0_330 = arith.constant 0 : index
      %283 = vector.load %arg1[%c0_328, %282, %c0_329, %c0_330] : memref<1x32x32x3xf32, #tpu.memory_space<vmem>>, vector<1x1x28x3xf32>
      %284 = vector.shape_cast %283 : vector<1x1x28x3xf32> to vector<28x3xf32>
      %c2_331 = arith.constant 2 : index
      %c0_332 = arith.constant 0 : index
      %c0_333 = arith.constant 0 : index
      %c0_334 = arith.constant 0 : index
      %285 = vector.load %arg2[%c2_331, %c0_332, %c0_333, %c0_334] : memref<5x5x3x6xf32, #tpu.memory_space<vmem>>, vector<1x1x3x6xf32>
      %286 = vector.shape_cast %285 : vector<1x1x3x6xf32> to vector<3x6xf32>
      %cst_335 = arith.constant dense<0.000000e+00> : vector<28x6xf32>
      %287 = tpu.matmul %284, %286, %cst_335 {dimension_numbers = #tpu.dot_dimension_numbers<[1], [0], [0], [1], [0, 0, 1, 1], [], []>} : vector<28x3xf32>, vector<3x6xf32>, vector<28x6xf32> -> vector<28x6xf32>
      %288 = arith.addf %280, %287 : vector<28x6xf32>
      %c2_i32_336 = arith.constant 2 : i32
      %289 = arith.addi %arg17, %c2_i32_336 : i32
      %c0_337 = arith.constant 0 : index
      %290 = arith.index_cast %289 : i32 to index
      %c1_338 = arith.constant 1 : index
      %c0_339 = arith.constant 0 : index
      %291 = vector.load %arg1[%c0_337, %290, %c1_338, %c0_339] : memref<1x32x32x3xf32, #tpu.memory_space<vmem>>, vector<1x1x28x3xf32>
      %292 = vector.shape_cast %291 : vector<1x1x28x3xf32> to vector<28x3xf32>
      %c2_340 = arith.constant 2 : index
      %c1_341 = arith.constant 1 : index
      %c0_342 = arith.constant 0 : index
      %c0_343 = arith.constant 0 : index
      %293 = vector.load %arg2[%c2_340, %c1_341, %c0_342, %c0_343] : memref<5x5x3x6xf32, #tpu.memory_space<vmem>>, vector<1x1x3x6xf32>
      %294 = vector.shape_cast %293 : vector<1x1x3x6xf32> to vector<3x6xf32>
      %cst_344 = arith.constant dense<0.000000e+00> : vector<28x6xf32>
      %295 = tpu.matmul %292, %294, %cst_344 {dimension_numbers = #tpu.dot_dimension_numbers<[1], [0], [0], [1], [0, 0, 1, 1], [], []>} : vector<28x3xf32>, vector<3x6xf32>, vector<28x6xf32> -> vector<28x6xf32>
      %296 = arith.addf %288, %295 : vector<28x6xf32>
      %c2_i32_345 = arith.constant 2 : i32
      %297 = arith.addi %arg17, %c2_i32_345 : i32
      %c0_346 = arith.constant 0 : index
      %298 = arith.index_cast %297 : i32 to index
      %c2_347 = arith.constant 2 : index
      %c0_348 = arith.constant 0 : index
      %299 = vector.load %arg1[%c0_346, %298, %c2_347, %c0_348] : memref<1x32x32x3xf32, #tpu.memory_space<vmem>>, vector<1x1x28x3xf32>
      %300 = vector.shape_cast %299 : vector<1x1x28x3xf32> to vector<28x3xf32>
      %c2_349 = arith.constant 2 : index
      %c2_350 = arith.constant 2 : index
      %c0_351 = arith.constant 0 : index
      %c0_352 = arith.constant 0 : index
      %301 = vector.load %arg2[%c2_349, %c2_350, %c0_351, %c0_352] : memref<5x5x3x6xf32, #tpu.memory_space<vmem>>, vector<1x1x3x6xf32>
      %302 = vector.shape_cast %301 : vector<1x1x3x6xf32> to vector<3x6xf32>
      %cst_353 = arith.constant dense<0.000000e+00> : vector<28x6xf32>
      %303 = tpu.matmul %300, %302, %cst_353 {dimension_numbers = #tpu.dot_dimension_numbers<[1], [0], [0], [1], [0, 0, 1, 1], [], []>} : vector<28x3xf32>, vector<3x6xf32>, vector<28x6xf32> -> vector<28x6xf32>
      %304 = arith.addf %296, %303 : vector<28x6xf32>
      %c2_i32_354 = arith.constant 2 : i32
      %305 = arith.addi %arg17, %c2_i32_354 : i32
      %c0_355 = arith.constant 0 : index
      %306 = arith.index_cast %305 : i32 to index
      %c3_356 = arith.constant 3 : index
      %c0_357 = arith.constant 0 : index
      %307 = vector.load %arg1[%c0_355, %306, %c3_356, %c0_357] : memref<1x32x32x3xf32, #tpu.memory_space<vmem>>, vector<1x1x28x3xf32>
      %308 = vector.shape_cast %307 : vector<1x1x28x3xf32> to vector<28x3xf32>
      %c2_358 = arith.constant 2 : index
      %c3_359 = arith.constant 3 : index
      %c0_360 = arith.constant 0 : index
      %c0_361 = arith.constant 0 : index
      %309 = vector.load %arg2[%c2_358, %c3_359, %c0_360, %c0_361] : memref<5x5x3x6xf32, #tpu.memory_space<vmem>>, vector<1x1x3x6xf32>
      %310 = vector.shape_cast %309 : vector<1x1x3x6xf32> to vector<3x6xf32>
      %cst_362 = arith.constant dense<0.000000e+00> : vector<28x6xf32>
      %311 = tpu.matmul %308, %310, %cst_362 {dimension_numbers = #tpu.dot_dimension_numbers<[1], [0], [0], [1], [0, 0, 1, 1], [], []>} : vector<28x3xf32>, vector<3x6xf32>, vector<28x6xf32> -> vector<28x6xf32>
      %312 = arith.addf %304, %311 : vector<28x6xf32>
      %c2_i32_363 = arith.constant 2 : i32
      %313 = arith.addi %arg17, %c2_i32_363 : i32
      %c0_364 = arith.constant 0 : index
      %314 = arith.index_cast %313 : i32 to index
      %c4_365 = arith.constant 4 : index
      %c0_366 = arith.constant 0 : index
      %315 = vector.load %arg1[%c0_364, %314, %c4_365, %c0_366] : memref<1x32x32x3xf32, #tpu.memory_space<vmem>>, vector<1x1x28x3xf32>
      %316 = vector.shape_cast %315 : vector<1x1x28x3xf32> to vector<28x3xf32>
      %c2_367 = arith.constant 2 : index
      %c4_368 = arith.constant 4 : index
      %c0_369 = arith.constant 0 : index
      %c0_370 = arith.constant 0 : index
      %317 = vector.load %arg2[%c2_367, %c4_368, %c0_369, %c0_370] : memref<5x5x3x6xf32, #tpu.memory_space<vmem>>, vector<1x1x3x6xf32>
      %318 = vector.shape_cast %317 : vector<1x1x3x6xf32> to vector<3x6xf32>
      %cst_371 = arith.constant dense<0.000000e+00> : vector<28x6xf32>
      %319 = tpu.matmul %316, %318, %cst_371 {dimension_numbers = #tpu.dot_dimension_numbers<[1], [0], [0], [1], [0, 0, 1, 1], [], []>} : vector<28x3xf32>, vector<3x6xf32>, vector<28x6xf32> -> vector<28x6xf32>
      %320 = arith.addf %312, %319 : vector<28x6xf32>
      %c3_i32 = arith.constant 3 : i32
      %321 = arith.addi %arg17, %c3_i32 : i32
      %c0_372 = arith.constant 0 : index
      %322 = arith.index_cast %321 : i32 to index
      %c0_373 = arith.constant 0 : index
      %c0_374 = arith.constant 0 : index
      %323 = vector.load %arg1[%c0_372, %322, %c0_373, %c0_374] : memref<1x32x32x3xf32, #tpu.memory_space<vmem>>, vector<1x1x28x3xf32>
      %324 = vector.shape_cast %323 : vector<1x1x28x3xf32> to vector<28x3xf32>
      %c3_375 = arith.constant 3 : index
      %c0_376 = arith.constant 0 : index
      %c0_377 = arith.constant 0 : index
      %c0_378 = arith.constant 0 : index
      %325 = vector.load %arg2[%c3_375, %c0_376, %c0_377, %c0_378] : memref<5x5x3x6xf32, #tpu.memory_space<vmem>>, vector<1x1x3x6xf32>
      %326 = vector.shape_cast %325 : vector<1x1x3x6xf32> to vector<3x6xf32>
      %cst_379 = arith.constant dense<0.000000e+00> : vector<28x6xf32>
      %327 = tpu.matmul %324, %326, %cst_379 {dimension_numbers = #tpu.dot_dimension_numbers<[1], [0], [0], [1], [0, 0, 1, 1], [], []>} : vector<28x3xf32>, vector<3x6xf32>, vector<28x6xf32> -> vector<28x6xf32>
      %328 = arith.addf %320, %327 : vector<28x6xf32>
      %c3_i32_380 = arith.constant 3 : i32
      %329 = arith.addi %arg17, %c3_i32_380 : i32
      %c0_381 = arith.constant 0 : index
      %330 = arith.index_cast %329 : i32 to index
      %c1_382 = arith.constant 1 : index
      %c0_383 = arith.constant 0 : index
      %331 = vector.load %arg1[%c0_381, %330, %c1_382, %c0_383] : memref<1x32x32x3xf32, #tpu.memory_space<vmem>>, vector<1x1x28x3xf32>
      %332 = vector.shape_cast %331 : vector<1x1x28x3xf32> to vector<28x3xf32>
      %c3_384 = arith.constant 3 : index
      %c1_385 = arith.constant 1 : index
      %c0_386 = arith.constant 0 : index
      %c0_387 = arith.constant 0 : index
      %333 = vector.load %arg2[%c3_384, %c1_385, %c0_386, %c0_387] : memref<5x5x3x6xf32, #tpu.memory_space<vmem>>, vector<1x1x3x6xf32>
      %334 = vector.shape_cast %333 : vector<1x1x3x6xf32> to vector<3x6xf32>
      %cst_388 = arith.constant dense<0.000000e+00> : vector<28x6xf32>
      %335 = tpu.matmul %332, %334, %cst_388 {dimension_numbers = #tpu.dot_dimension_numbers<[1], [0], [0], [1], [0, 0, 1, 1], [], []>} : vector<28x3xf32>, vector<3x6xf32>, vector<28x6xf32> -> vector<28x6xf32>
      %336 = arith.addf %328, %335 : vector<28x6xf32>
      %c3_i32_389 = arith.constant 3 : i32
      %337 = arith.addi %arg17, %c3_i32_389 : i32
      %c0_390 = arith.constant 0 : index
      %338 = arith.index_cast %337 : i32 to index
      %c2_391 = arith.constant 2 : index
      %c0_392 = arith.constant 0 : index
      %339 = vector.load %arg1[%c0_390, %338, %c2_391, %c0_392] : memref<1x32x32x3xf32, #tpu.memory_space<vmem>>, vector<1x1x28x3xf32>
      %340 = vector.shape_cast %339 : vector<1x1x28x3xf32> to vector<28x3xf32>
      %c3_393 = arith.constant 3 : index
      %c2_394 = arith.constant 2 : index
      %c0_395 = arith.constant 0 : index
      %c0_396 = arith.constant 0 : index
      %341 = vector.load %arg2[%c3_393, %c2_394, %c0_395, %c0_396] : memref<5x5x3x6xf32, #tpu.memory_space<vmem>>, vector<1x1x3x6xf32>
      %342 = vector.shape_cast %341 : vector<1x1x3x6xf32> to vector<3x6xf32>
      %cst_397 = arith.constant dense<0.000000e+00> : vector<28x6xf32>
      %343 = tpu.matmul %340, %342, %cst_397 {dimension_numbers = #tpu.dot_dimension_numbers<[1], [0], [0], [1], [0, 0, 1, 1], [], []>} : vector<28x3xf32>, vector<3x6xf32>, vector<28x6xf32> -> vector<28x6xf32>
      %344 = arith.addf %336, %343 : vector<28x6xf32>
      %c3_i32_398 = arith.constant 3 : i32
      %345 = arith.addi %arg17, %c3_i32_398 : i32
      %c0_399 = arith.constant 0 : index
      %346 = arith.index_cast %345 : i32 to index
      %c3_400 = arith.constant 3 : index
      %c0_401 = arith.constant 0 : index
      %347 = vector.load %arg1[%c0_399, %346, %c3_400, %c0_401] : memref<1x32x32x3xf32, #tpu.memory_space<vmem>>, vector<1x1x28x3xf32>
      %348 = vector.shape_cast %347 : vector<1x1x28x3xf32> to vector<28x3xf32>
      %c3_402 = arith.constant 3 : index
      %c3_403 = arith.constant 3 : index
      %c0_404 = arith.constant 0 : index
      %c0_405 = arith.constant 0 : index
      %349 = vector.load %arg2[%c3_402, %c3_403, %c0_404, %c0_405] : memref<5x5x3x6xf32, #tpu.memory_space<vmem>>, vector<1x1x3x6xf32>
      %350 = vector.shape_cast %349 : vector<1x1x3x6xf32> to vector<3x6xf32>
      %cst_406 = arith.constant dense<0.000000e+00> : vector<28x6xf32>
      %351 = tpu.matmul %348, %350, %cst_406 {dimension_numbers = #tpu.dot_dimension_numbers<[1], [0], [0], [1], [0, 0, 1, 1], [], []>} : vector<28x3xf32>, vector<3x6xf32>, vector<28x6xf32> -> vector<28x6xf32>
      %352 = arith.addf %344, %351 : vector<28x6xf32>
      %c3_i32_407 = arith.constant 3 : i32
      %353 = arith.addi %arg17, %c3_i32_407 : i32
      %c0_408 = arith.constant 0 : index
      %354 = arith.index_cast %353 : i32 to index
      %c4_409 = arith.constant 4 : index
      %c0_410 = arith.constant 0 : index
      %355 = vector.load %arg1[%c0_408, %354, %c4_409, %c0_410] : memref<1x32x32x3xf32, #tpu.memory_space<vmem>>, vector<1x1x28x3xf32>
      %356 = vector.shape_cast %355 : vector<1x1x28x3xf32> to vector<28x3xf32>
      %c3_411 = arith.constant 3 : index
      %c4_412 = arith.constant 4 : index
      %c0_413 = arith.constant 0 : index
      %c0_414 = arith.constant 0 : index
      %357 = vector.load %arg2[%c3_411, %c4_412, %c0_413, %c0_414] : memref<5x5x3x6xf32, #tpu.memory_space<vmem>>, vector<1x1x3x6xf32>
      %358 = vector.shape_cast %357 : vector<1x1x3x6xf32> to vector<3x6xf32>
      %cst_415 = arith.constant dense<0.000000e+00> : vector<28x6xf32>
      %359 = tpu.matmul %356, %358, %cst_415 {dimension_numbers = #tpu.dot_dimension_numbers<[1], [0], [0], [1], [0, 0, 1, 1], [], []>} : vector<28x3xf32>, vector<3x6xf32>, vector<28x6xf32> -> vector<28x6xf32>
      %360 = arith.addf %352, %359 : vector<28x6xf32>
      %c4_i32 = arith.constant 4 : i32
      %361 = arith.addi %arg17, %c4_i32 : i32
      %c0_416 = arith.constant 0 : index
      %362 = arith.index_cast %361 : i32 to index
      %c0_417 = arith.constant 0 : index
      %c0_418 = arith.constant 0 : index
      %363 = vector.load %arg1[%c0_416, %362, %c0_417, %c0_418] : memref<1x32x32x3xf32, #tpu.memory_space<vmem>>, vector<1x1x28x3xf32>
      %364 = vector.shape_cast %363 : vector<1x1x28x3xf32> to vector<28x3xf32>
      %c4_419 = arith.constant 4 : index
      %c0_420 = arith.constant 0 : index
      %c0_421 = arith.constant 0 : index
      %c0_422 = arith.constant 0 : index
      %365 = vector.load %arg2[%c4_419, %c0_420, %c0_421, %c0_422] : memref<5x5x3x6xf32, #tpu.memory_space<vmem>>, vector<1x1x3x6xf32>
      %366 = vector.shape_cast %365 : vector<1x1x3x6xf32> to vector<3x6xf32>
      %cst_423 = arith.constant dense<0.000000e+00> : vector<28x6xf32>
      %367 = tpu.matmul %364, %366, %cst_423 {dimension_numbers = #tpu.dot_dimension_numbers<[1], [0], [0], [1], [0, 0, 1, 1], [], []>} : vector<28x3xf32>, vector<3x6xf32>, vector<28x6xf32> -> vector<28x6xf32>
      %368 = arith.addf %360, %367 : vector<28x6xf32>
      %c4_i32_424 = arith.constant 4 : i32
      %369 = arith.addi %arg17, %c4_i32_424 : i32
      %c0_425 = arith.constant 0 : index
      %370 = arith.index_cast %369 : i32 to index
      %c1_426 = arith.constant 1 : index
      %c0_427 = arith.constant 0 : index
      %371 = vector.load %arg1[%c0_425, %370, %c1_426, %c0_427] : memref<1x32x32x3xf32, #tpu.memory_space<vmem>>, vector<1x1x28x3xf32>
      %372 = vector.shape_cast %371 : vector<1x1x28x3xf32> to vector<28x3xf32>
      %c4_428 = arith.constant 4 : index
      %c1_429 = arith.constant 1 : index
      %c0_430 = arith.constant 0 : index
      %c0_431 = arith.constant 0 : index
      %373 = vector.load %arg2[%c4_428, %c1_429, %c0_430, %c0_431] : memref<5x5x3x6xf32, #tpu.memory_space<vmem>>, vector<1x1x3x6xf32>
      %374 = vector.shape_cast %373 : vector<1x1x3x6xf32> to vector<3x6xf32>
      %cst_432 = arith.constant dense<0.000000e+00> : vector<28x6xf32>
      %375 = tpu.matmul %372, %374, %cst_432 {dimension_numbers = #tpu.dot_dimension_numbers<[1], [0], [0], [1], [0, 0, 1, 1], [], []>} : vector<28x3xf32>, vector<3x6xf32>, vector<28x6xf32> -> vector<28x6xf32>
      %376 = arith.addf %368, %375 : vector<28x6xf32>
      %c4_i32_433 = arith.constant 4 : i32
      %377 = arith.addi %arg17, %c4_i32_433 : i32
      %c0_434 = arith.constant 0 : index
      %378 = arith.index_cast %377 : i32 to index
      %c2_435 = arith.constant 2 : index
      %c0_436 = arith.constant 0 : index
      %379 = vector.load %arg1[%c0_434, %378, %c2_435, %c0_436] : memref<1x32x32x3xf32, #tpu.memory_space<vmem>>, vector<1x1x28x3xf32>
      %380 = vector.shape_cast %379 : vector<1x1x28x3xf32> to vector<28x3xf32>
      %c4_437 = arith.constant 4 : index
      %c2_438 = arith.constant 2 : index
      %c0_439 = arith.constant 0 : index
      %c0_440 = arith.constant 0 : index
      %381 = vector.load %arg2[%c4_437, %c2_438, %c0_439, %c0_440] : memref<5x5x3x6xf32, #tpu.memory_space<vmem>>, vector<1x1x3x6xf32>
      %382 = vector.shape_cast %381 : vector<1x1x3x6xf32> to vector<3x6xf32>
      %cst_441 = arith.constant dense<0.000000e+00> : vector<28x6xf32>
      %383 = tpu.matmul %380, %382, %cst_441 {dimension_numbers = #tpu.dot_dimension_numbers<[1], [0], [0], [1], [0, 0, 1, 1], [], []>} : vector<28x3xf32>, vector<3x6xf32>, vector<28x6xf32> -> vector<28x6xf32>
      %384 = arith.addf %376, %383 : vector<28x6xf32>
      %c4_i32_442 = arith.constant 4 : i32
      %385 = arith.addi %arg17, %c4_i32_442 : i32
      %c0_443 = arith.constant 0 : index
      %386 = arith.index_cast %385 : i32 to index
      %c3_444 = arith.constant 3 : index
      %c0_445 = arith.constant 0 : index
      %387 = vector.load %arg1[%c0_443, %386, %c3_444, %c0_445] : memref<1x32x32x3xf32, #tpu.memory_space<vmem>>, vector<1x1x28x3xf32>
      %388 = vector.shape_cast %387 : vector<1x1x28x3xf32> to vector<28x3xf32>
      %c4_446 = arith.constant 4 : index
      %c3_447 = arith.constant 3 : index
      %c0_448 = arith.constant 0 : index
      %c0_449 = arith.constant 0 : index
      %389 = vector.load %arg2[%c4_446, %c3_447, %c0_448, %c0_449] : memref<5x5x3x6xf32, #tpu.memory_space<vmem>>, vector<1x1x3x6xf32>
      %390 = vector.shape_cast %389 : vector<1x1x3x6xf32> to vector<3x6xf32>
      %cst_450 = arith.constant dense<0.000000e+00> : vector<28x6xf32>
      %391 = tpu.matmul %388, %390, %cst_450 {dimension_numbers = #tpu.dot_dimension_numbers<[1], [0], [0], [1], [0, 0, 1, 1], [], []>} : vector<28x3xf32>, vector<3x6xf32>, vector<28x6xf32> -> vector<28x6xf32>
      %392 = arith.addf %384, %391 : vector<28x6xf32>
      %c4_i32_451 = arith.constant 4 : i32
      %393 = arith.addi %arg17, %c4_i32_451 : i32
      %c0_452 = arith.constant 0 : index
      %394 = arith.index_cast %393 : i32 to index
      %c4_453 = arith.constant 4 : index
      %c0_454 = arith.constant 0 : index
      %395 = vector.load %arg1[%c0_452, %394, %c4_453, %c0_454] : memref<1x32x32x3xf32, #tpu.memory_space<vmem>>, vector<1x1x28x3xf32>
      %396 = vector.shape_cast %395 : vector<1x1x28x3xf32> to vector<28x3xf32>
      %c4_455 = arith.constant 4 : index
      %c4_456 = arith.constant 4 : index
      %c0_457 = arith.constant 0 : index
      %c0_458 = arith.constant 0 : index
      %397 = vector.load %arg2[%c4_455, %c4_456, %c0_457, %c0_458] : memref<5x5x3x6xf32, #tpu.memory_space<vmem>>, vector<1x1x3x6xf32>
      %398 = vector.shape_cast %397 : vector<1x1x3x6xf32> to vector<3x6xf32>
      %cst_459 = arith.constant dense<0.000000e+00> : vector<28x6xf32>
      %399 = tpu.matmul %396, %398, %cst_459 {dimension_numbers = #tpu.dot_dimension_numbers<[1], [0], [0], [1], [0, 0, 1, 1], [], []>} : vector<28x3xf32>, vector<3x6xf32>, vector<28x6xf32> -> vector<28x6xf32>
      %400 = arith.addf %392, %399 : vector<28x6xf32>
      %401 = vector.broadcast %0 : vector<1x6xf32> to vector<28x6xf32>
      %402 = arith.addf %400, %401 : vector<28x6xf32>
      %cst_460 = arith.constant 0.000000e+00 : f32
      %403 = vector.broadcast %cst_460 : f32 to vector<28x6xf32>
      %404 = arith.maximumf %402, %403 : vector<28x6xf32>
      %405 = arith.index_cast %arg17 : i32 to index
      %c0_461 = arith.constant 0 : index
      %c0_462 = arith.constant 0 : index
      %406 = vector.load %arg13[%405, %c0_461, %c0_462] : memref<28x28x6xf32, #tpu.memory_space<vmem>>, vector<1x28x6xf32>
      %407 = vector.shape_cast %406 : vector<1x28x6xf32> to vector<28x6xf32>
      %408 = vector.shape_cast %404 : vector<28x6xf32> to vector<1x28x6xf32>
      tpu.vector_store %arg13[%405, %c0_461, %c0_462], %408 {strides = array<i32>} : memref<28x28x6xf32, #tpu.memory_space<vmem>>, vector<1x28x6xf32>,
    }
    %c28_i32_1 = arith.constant 28 : i32
    %2 = tpu.iota {dimensions = array<i32: 1>} : vector<14x28xi32>
    %3 = tpu.iota {dimensions = array<i32: 0>} : vector<14x28xi32>
    %c2_i32 = arith.constant 2 : i32
    %4 = vector.broadcast %c2_i32 : i32 to vector<14x28xi32>
    %5 = arith.muli %4, %3 : vector<14x28xi32>
    %6 = arith.cmpi eq, %2, %5 : vector<14x28xi32>
    %cst = arith.constant 1.000000e+00 : f32
    %cst_2 = arith.constant 0.000000e+00 : f32
    %7 = vector.broadcast %cst : f32 to vector<14x28xf32>
    %8 = vector.broadcast %cst_2 : f32 to vector<14x28xf32>
    %9 = arith.select %6, %7, %8 : vector<14x28xi1>, vector<14x28xf32>
    %c1_i32_3 = arith.constant 1 : i32
    %10 = vector.broadcast %c1_i32_3 : i32 to vector<14x28xi32>
    %11 = arith.addi %5, %10 : vector<14x28xi32>
    %12 = arith.cmpi eq, %2, %11 : vector<14x28xi32>
    %cst_4 = arith.constant 1.000000e+00 : f32
    %cst_5 = arith.constant 0.000000e+00 : f32
    %13 = vector.broadcast %cst_4 : f32 to vector<14x28xf32>
    %14 = vector.broadcast %cst_5 : f32 to vector<14x28xf32>
    %15 = arith.select %12, %13, %14 : vector<14x28xi1>, vector<14x28xf32>
    %c0_i32_6 = arith.constant 0 : i32
    %c14_i32 = arith.constant 14 : i32
    %16 = arith.addi %c0_i32_6, %c14_i32 : i32
    %c1_i32_7 = arith.constant 1 : i32
    scf.for %arg17 = %c0_i32_6 to %16 step %c1_i32_7  : i32 {
      %c2_i32_236 = arith.constant 2 : i32
      %200 = arith.muli %c2_i32_236, %arg17 : i32
      %201 = arith.index_cast %200 : i32 to index
      %c0_237 = arith.constant 0 : index
      %c0_238 = arith.constant 0 : index
      %202 = vector.load %arg13[%201, %c0_237, %c0_238] : memref<28x28x6xf32, #tpu.memory_space<vmem>>, vector<1x28x6xf32>
      %203 = vector.shape_cast %202 : vector<1x28x6xf32> to vector<28x6xf32>
      %c1_i32_239 = arith.constant 1 : i32
      %204 = arith.addi %200, %c1_i32_239 : i32
      %205 = arith.index_cast %204 : i32 to index
      %c0_240 = arith.constant 0 : index
      %c0_241 = arith.constant 0 : index
      %206 = vector.load %arg13[%205, %c0_240, %c0_241] : memref<28x28x6xf32, #tpu.memory_space<vmem>>, vector<1x28x6xf32>
      %207 = vector.shape_cast %206 : vector<1x28x6xf32> to vector<28x6xf32>
      %208 = arith.maximumf %203, %207 : vector<28x6xf32>
      %cst_242 = arith.constant dense<0.000000e+00> : vector<14x6xf32>
      %209 = tpu.matmul %9, %208, %cst_242 {dimension_numbers = #tpu.dot_dimension_numbers<[1], [0], [0], [1], [0, 0, 1, 1], [], []>} : vector<14x28xf32>, vector<28x6xf32>, vector<14x6xf32> -> vector<14x6xf32>
      %cst_243 = arith.constant dense<0.000000e+00> : vector<14x6xf32>
      %210 = tpu.matmul %15, %208, %cst_243 {dimension_numbers = #tpu.dot_dimension_numbers<[1], [0], [0], [1], [0, 0, 1, 1], [], []>} : vector<14x28xf32>, vector<28x6xf32>, vector<14x6xf32> -> vector<14x6xf32>
      %211 = arith.maximumf %209, %210 : vector<14x6xf32>
      %212 = arith.index_cast %arg17 : i32 to index
      %c0_244 = arith.constant 0 : index
      %c0_245 = arith.constant 0 : index
      %213 = vector.load %arg14[%212, %c0_244, %c0_245] : memref<14x14x6xf32, #tpu.memory_space<vmem>>, vector<1x14x6xf32>
      %214 = vector.shape_cast %213 : vector<1x14x6xf32> to vector<14x6xf32>
      %215 = vector.shape_cast %211 : vector<14x6xf32> to vector<1x14x6xf32>
      tpu.vector_store %arg14[%212, %c0_244, %c0_245], %215 {strides = array<i32>} : memref<14x14x6xf32, #tpu.memory_space<vmem>>, vector<1x14x6xf32>,
    }
    %c14_i32_8 = arith.constant 14 : i32
    %c0_9 = arith.constant 0 : index
    %c0_10 = arith.constant 0 : index
    %17 = vector.load %arg5[%c0_9, %c0_10] : memref<1x16xf32, #tpu.memory_space<vmem>>, vector<1x16xf32>
    %c0_i32_11 = arith.constant 0 : i32
    %c10_i32 = arith.constant 10 : i32
    %18 = arith.addi %c0_i32_11, %c10_i32 : i32
    %c1_i32_12 = arith.constant 1 : i32
    scf.for %arg17 = %c0_i32_11 to %18 step %c1_i32_12  : i32 {
      %cst_236 = arith.constant 0.000000e+00 : f32
      %200 = vector.broadcast %cst_236 : f32 to vector<10x16xf32>
      %c0_i32_237 = arith.constant 0 : i32
      %201 = arith.addi %arg17, %c0_i32_237 : i32
      %202 = arith.index_cast %201 : i32 to index
      %c0_238 = arith.constant 0 : index
      %c0_239 = arith.constant 0 : index
      %203 = vector.load %arg14[%202, %c0_238, %c0_239] : memref<14x14x6xf32, #tpu.memory_space<vmem>>, vector<1x10x6xf32>
      %204 = vector.shape_cast %203 : vector<1x10x6xf32> to vector<10x6xf32>
      %c0_240 = arith.constant 0 : index
      %c0_241 = arith.constant 0 : index
      %c0_242 = arith.constant 0 : index
      %c0_243 = arith.constant 0 : index
      %205 = vector.load %arg4[%c0_240, %c0_241, %c0_242, %c0_243] : memref<5x5x6x16xf32, #tpu.memory_space<vmem>>, vector<1x1x6x16xf32>
      %206 = vector.shape_cast %205 : vector<1x1x6x16xf32> to vector<6x16xf32>
      %cst_244 = arith.constant dense<0.000000e+00> : vector<10x16xf32>
      %207 = tpu.matmul %204, %206, %cst_244 {dimension_numbers = #tpu.dot_dimension_numbers<[1], [0], [0], [1], [0, 0, 1, 1], [], []>} : vector<10x6xf32>, vector<6x16xf32>, vector<10x16xf32> -> vector<10x16xf32>
      %208 = arith.addf %200, %207 : vector<10x16xf32>
      %c0_i32_245 = arith.constant 0 : i32
      %209 = arith.addi %arg17, %c0_i32_245 : i32
      %210 = arith.index_cast %209 : i32 to index
      %c1_246 = arith.constant 1 : index
      %c0_247 = arith.constant 0 : index
      %211 = vector.load %arg14[%210, %c1_246, %c0_247] : memref<14x14x6xf32, #tpu.memory_space<vmem>>, vector<1x10x6xf32>
      %212 = vector.shape_cast %211 : vector<1x10x6xf32> to vector<10x6xf32>
      %c0_248 = arith.constant 0 : index
      %c1_249 = arith.constant 1 : index
      %c0_250 = arith.constant 0 : index
      %c0_251 = arith.constant 0 : index
      %213 = vector.load %arg4[%c0_248, %c1_249, %c0_250, %c0_251] : memref<5x5x6x16xf32, #tpu.memory_space<vmem>>, vector<1x1x6x16xf32>
      %214 = vector.shape_cast %213 : vector<1x1x6x16xf32> to vector<6x16xf32>
      %cst_252 = arith.constant dense<0.000000e+00> : vector<10x16xf32>
      %215 = tpu.matmul %212, %214, %cst_252 {dimension_numbers = #tpu.dot_dimension_numbers<[1], [0], [0], [1], [0, 0, 1, 1], [], []>} : vector<10x6xf32>, vector<6x16xf32>, vector<10x16xf32> -> vector<10x16xf32>
      %216 = arith.addf %208, %215 : vector<10x16xf32>
      %c0_i32_253 = arith.constant 0 : i32
      %217 = arith.addi %arg17, %c0_i32_253 : i32
      %218 = arith.index_cast %217 : i32 to index
      %c2_254 = arith.constant 2 : index
      %c0_255 = arith.constant 0 : index
      %219 = vector.load %arg14[%218, %c2_254, %c0_255] : memref<14x14x6xf32, #tpu.memory_space<vmem>>, vector<1x10x6xf32>
      %220 = vector.shape_cast %219 : vector<1x10x6xf32> to vector<10x6xf32>
      %c0_256 = arith.constant 0 : index
      %c2_257 = arith.constant 2 : index
      %c0_258 = arith.constant 0 : index
      %c0_259 = arith.constant 0 : index
      %221 = vector.load %arg4[%c0_256, %c2_257, %c0_258, %c0_259] : memref<5x5x6x16xf32, #tpu.memory_space<vmem>>, vector<1x1x6x16xf32>
      %222 = vector.shape_cast %221 : vector<1x1x6x16xf32> to vector<6x16xf32>
      %cst_260 = arith.constant dense<0.000000e+00> : vector<10x16xf32>
      %223 = tpu.matmul %220, %222, %cst_260 {dimension_numbers = #tpu.dot_dimension_numbers<[1], [0], [0], [1], [0, 0, 1, 1], [], []>} : vector<10x6xf32>, vector<6x16xf32>, vector<10x16xf32> -> vector<10x16xf32>
      %224 = arith.addf %216, %223 : vector<10x16xf32>
      %c0_i32_261 = arith.constant 0 : i32
      %225 = arith.addi %arg17, %c0_i32_261 : i32
      %226 = arith.index_cast %225 : i32 to index
      %c3_262 = arith.constant 3 : index
      %c0_263 = arith.constant 0 : index
      %227 = vector.load %arg14[%226, %c3_262, %c0_263] : memref<14x14x6xf32, #tpu.memory_space<vmem>>, vector<1x10x6xf32>
      %228 = vector.shape_cast %227 : vector<1x10x6xf32> to vector<10x6xf32>
      %c0_264 = arith.constant 0 : index
      %c3_265 = arith.constant 3 : index
      %c0_266 = arith.constant 0 : index
      %c0_267 = arith.constant 0 : index
      %229 = vector.load %arg4[%c0_264, %c3_265, %c0_266, %c0_267] : memref<5x5x6x16xf32, #tpu.memory_space<vmem>>, vector<1x1x6x16xf32>
      %230 = vector.shape_cast %229 : vector<1x1x6x16xf32> to vector<6x16xf32>
      %cst_268 = arith.constant dense<0.000000e+00> : vector<10x16xf32>
      %231 = tpu.matmul %228, %230, %cst_268 {dimension_numbers = #tpu.dot_dimension_numbers<[1], [0], [0], [1], [0, 0, 1, 1], [], []>} : vector<10x6xf32>, vector<6x16xf32>, vector<10x16xf32> -> vector<10x16xf32>
      %232 = arith.addf %224, %231 : vector<10x16xf32>
      %c0_i32_269 = arith.constant 0 : i32
      %233 = arith.addi %arg17, %c0_i32_269 : i32
      %234 = arith.index_cast %233 : i32 to index
      %c4_270 = arith.constant 4 : index
      %c0_271 = arith.constant 0 : index
      %235 = vector.load %arg14[%234, %c4_270, %c0_271] : memref<14x14x6xf32, #tpu.memory_space<vmem>>, vector<1x10x6xf32>
      %236 = vector.shape_cast %235 : vector<1x10x6xf32> to vector<10x6xf32>
      %c0_272 = arith.constant 0 : index
      %c4_273 = arith.constant 4 : index
      %c0_274 = arith.constant 0 : index
      %c0_275 = arith.constant 0 : index
      %237 = vector.load %arg4[%c0_272, %c4_273, %c0_274, %c0_275] : memref<5x5x6x16xf32, #tpu.memory_space<vmem>>, vector<1x1x6x16xf32>
      %238 = vector.shape_cast %237 : vector<1x1x6x16xf32> to vector<6x16xf32>
      %cst_276 = arith.constant dense<0.000000e+00> : vector<10x16xf32>
      %239 = tpu.matmul %236, %238, %cst_276 {dimension_numbers = #tpu.dot_dimension_numbers<[1], [0], [0], [1], [0, 0, 1, 1], [], []>} : vector<10x6xf32>, vector<6x16xf32>, vector<10x16xf32> -> vector<10x16xf32>
      %240 = arith.addf %232, %239 : vector<10x16xf32>
      %c1_i32_277 = arith.constant 1 : i32
      %241 = arith.addi %arg17, %c1_i32_277 : i32
      %242 = arith.index_cast %241 : i32 to index
      %c0_278 = arith.constant 0 : index
      %c0_279 = arith.constant 0 : index
      %243 = vector.load %arg14[%242, %c0_278, %c0_279] : memref<14x14x6xf32, #tpu.memory_space<vmem>>, vector<1x10x6xf32>
      %244 = vector.shape_cast %243 : vector<1x10x6xf32> to vector<10x6xf32>
      %c1_280 = arith.constant 1 : index
      %c0_281 = arith.constant 0 : index
      %c0_282 = arith.constant 0 : index
      %c0_283 = arith.constant 0 : index
      %245 = vector.load %arg4[%c1_280, %c0_281, %c0_282, %c0_283] : memref<5x5x6x16xf32, #tpu.memory_space<vmem>>, vector<1x1x6x16xf32>
      %246 = vector.shape_cast %245 : vector<1x1x6x16xf32> to vector<6x16xf32>
      %cst_284 = arith.constant dense<0.000000e+00> : vector<10x16xf32>
      %247 = tpu.matmul %244, %246, %cst_284 {dimension_numbers = #tpu.dot_dimension_numbers<[1], [0], [0], [1], [0, 0, 1, 1], [], []>} : vector<10x6xf32>, vector<6x16xf32>, vector<10x16xf32> -> vector<10x16xf32>
      %248 = arith.addf %240, %247 : vector<10x16xf32>
      %c1_i32_285 = arith.constant 1 : i32
      %249 = arith.addi %arg17, %c1_i32_285 : i32
      %250 = arith.index_cast %249 : i32 to index
      %c1_286 = arith.constant 1 : index
      %c0_287 = arith.constant 0 : index
      %251 = vector.load %arg14[%250, %c1_286, %c0_287] : memref<14x14x6xf32, #tpu.memory_space<vmem>>, vector<1x10x6xf32>
      %252 = vector.shape_cast %251 : vector<1x10x6xf32> to vector<10x6xf32>
      %c1_288 = arith.constant 1 : index
      %c1_289 = arith.constant 1 : index
      %c0_290 = arith.constant 0 : index
      %c0_291 = arith.constant 0 : index
      %253 = vector.load %arg4[%c1_288, %c1_289, %c0_290, %c0_291] : memref<5x5x6x16xf32, #tpu.memory_space<vmem>>, vector<1x1x6x16xf32>
      %254 = vector.shape_cast %253 : vector<1x1x6x16xf32> to vector<6x16xf32>
      %cst_292 = arith.constant dense<0.000000e+00> : vector<10x16xf32>
      %255 = tpu.matmul %252, %254, %cst_292 {dimension_numbers = #tpu.dot_dimension_numbers<[1], [0], [0], [1], [0, 0, 1, 1], [], []>} : vector<10x6xf32>, vector<6x16xf32>, vector<10x16xf32> -> vector<10x16xf32>
      %256 = arith.addf %248, %255 : vector<10x16xf32>
      %c1_i32_293 = arith.constant 1 : i32
      %257 = arith.addi %arg17, %c1_i32_293 : i32
      %258 = arith.index_cast %257 : i32 to index
      %c2_294 = arith.constant 2 : index
      %c0_295 = arith.constant 0 : index
      %259 = vector.load %arg14[%258, %c2_294, %c0_295] : memref<14x14x6xf32, #tpu.memory_space<vmem>>, vector<1x10x6xf32>
      %260 = vector.shape_cast %259 : vector<1x10x6xf32> to vector<10x6xf32>
      %c1_296 = arith.constant 1 : index
      %c2_297 = arith.constant 2 : index
      %c0_298 = arith.constant 0 : index
      %c0_299 = arith.constant 0 : index
      %261 = vector.load %arg4[%c1_296, %c2_297, %c0_298, %c0_299] : memref<5x5x6x16xf32, #tpu.memory_space<vmem>>, vector<1x1x6x16xf32>
      %262 = vector.shape_cast %261 : vector<1x1x6x16xf32> to vector<6x16xf32>
      %cst_300 = arith.constant dense<0.000000e+00> : vector<10x16xf32>
      %263 = tpu.matmul %260, %262, %cst_300 {dimension_numbers = #tpu.dot_dimension_numbers<[1], [0], [0], [1], [0, 0, 1, 1], [], []>} : vector<10x6xf32>, vector<6x16xf32>, vector<10x16xf32> -> vector<10x16xf32>
      %264 = arith.addf %256, %263 : vector<10x16xf32>
      %c1_i32_301 = arith.constant 1 : i32
      %265 = arith.addi %arg17, %c1_i32_301 : i32
      %266 = arith.index_cast %265 : i32 to index
      %c3_302 = arith.constant 3 : index
      %c0_303 = arith.constant 0 : index
      %267 = vector.load %arg14[%266, %c3_302, %c0_303] : memref<14x14x6xf32, #tpu.memory_space<vmem>>, vector<1x10x6xf32>
      %268 = vector.shape_cast %267 : vector<1x10x6xf32> to vector<10x6xf32>
      %c1_304 = arith.constant 1 : index
      %c3_305 = arith.constant 3 : index
      %c0_306 = arith.constant 0 : index
      %c0_307 = arith.constant 0 : index
      %269 = vector.load %arg4[%c1_304, %c3_305, %c0_306, %c0_307] : memref<5x5x6x16xf32, #tpu.memory_space<vmem>>, vector<1x1x6x16xf32>
      %270 = vector.shape_cast %269 : vector<1x1x6x16xf32> to vector<6x16xf32>
      %cst_308 = arith.constant dense<0.000000e+00> : vector<10x16xf32>
      %271 = tpu.matmul %268, %270, %cst_308 {dimension_numbers = #tpu.dot_dimension_numbers<[1], [0], [0], [1], [0, 0, 1, 1], [], []>} : vector<10x6xf32>, vector<6x16xf32>, vector<10x16xf32> -> vector<10x16xf32>
      %272 = arith.addf %264, %271 : vector<10x16xf32>
      %c1_i32_309 = arith.constant 1 : i32
      %273 = arith.addi %arg17, %c1_i32_309 : i32
      %274 = arith.index_cast %273 : i32 to index
      %c4_310 = arith.constant 4 : index
      %c0_311 = arith.constant 0 : index
      %275 = vector.load %arg14[%274, %c4_310, %c0_311] : memref<14x14x6xf32, #tpu.memory_space<vmem>>, vector<1x10x6xf32>
      %276 = vector.shape_cast %275 : vector<1x10x6xf32> to vector<10x6xf32>
      %c1_312 = arith.constant 1 : index
      %c4_313 = arith.constant 4 : index
      %c0_314 = arith.constant 0 : index
      %c0_315 = arith.constant 0 : index
      %277 = vector.load %arg4[%c1_312, %c4_313, %c0_314, %c0_315] : memref<5x5x6x16xf32, #tpu.memory_space<vmem>>, vector<1x1x6x16xf32>
      %278 = vector.shape_cast %277 : vector<1x1x6x16xf32> to vector<6x16xf32>
      %cst_316 = arith.constant dense<0.000000e+00> : vector<10x16xf32>
      %279 = tpu.matmul %276, %278, %cst_316 {dimension_numbers = #tpu.dot_dimension_numbers<[1], [0], [0], [1], [0, 0, 1, 1], [], []>} : vector<10x6xf32>, vector<6x16xf32>, vector<10x16xf32> -> vector<10x16xf32>
      %280 = arith.addf %272, %279 : vector<10x16xf32>
      %c2_i32_317 = arith.constant 2 : i32
      %281 = arith.addi %arg17, %c2_i32_317 : i32
      %282 = arith.index_cast %281 : i32 to index
      %c0_318 = arith.constant 0 : index
      %c0_319 = arith.constant 0 : index
      %283 = vector.load %arg14[%282, %c0_318, %c0_319] : memref<14x14x6xf32, #tpu.memory_space<vmem>>, vector<1x10x6xf32>
      %284 = vector.shape_cast %283 : vector<1x10x6xf32> to vector<10x6xf32>
      %c2_320 = arith.constant 2 : index
      %c0_321 = arith.constant 0 : index
      %c0_322 = arith.constant 0 : index
      %c0_323 = arith.constant 0 : index
      %285 = vector.load %arg4[%c2_320, %c0_321, %c0_322, %c0_323] : memref<5x5x6x16xf32, #tpu.memory_space<vmem>>, vector<1x1x6x16xf32>
      %286 = vector.shape_cast %285 : vector<1x1x6x16xf32> to vector<6x16xf32>
      %cst_324 = arith.constant dense<0.000000e+00> : vector<10x16xf32>
      %287 = tpu.matmul %284, %286, %cst_324 {dimension_numbers = #tpu.dot_dimension_numbers<[1], [0], [0], [1], [0, 0, 1, 1], [], []>} : vector<10x6xf32>, vector<6x16xf32>, vector<10x16xf32> -> vector<10x16xf32>
      %288 = arith.addf %280, %287 : vector<10x16xf32>
      %c2_i32_325 = arith.constant 2 : i32
      %289 = arith.addi %arg17, %c2_i32_325 : i32
      %290 = arith.index_cast %289 : i32 to index
      %c1_326 = arith.constant 1 : index
      %c0_327 = arith.constant 0 : index
      %291 = vector.load %arg14[%290, %c1_326, %c0_327] : memref<14x14x6xf32, #tpu.memory_space<vmem>>, vector<1x10x6xf32>
      %292 = vector.shape_cast %291 : vector<1x10x6xf32> to vector<10x6xf32>
      %c2_328 = arith.constant 2 : index
      %c1_329 = arith.constant 1 : index
      %c0_330 = arith.constant 0 : index
      %c0_331 = arith.constant 0 : index
      %293 = vector.load %arg4[%c2_328, %c1_329, %c0_330, %c0_331] : memref<5x5x6x16xf32, #tpu.memory_space<vmem>>, vector<1x1x6x16xf32>
      %294 = vector.shape_cast %293 : vector<1x1x6x16xf32> to vector<6x16xf32>
      %cst_332 = arith.constant dense<0.000000e+00> : vector<10x16xf32>
      %295 = tpu.matmul %292, %294, %cst_332 {dimension_numbers = #tpu.dot_dimension_numbers<[1], [0], [0], [1], [0, 0, 1, 1], [], []>} : vector<10x6xf32>, vector<6x16xf32>, vector<10x16xf32> -> vector<10x16xf32>
      %296 = arith.addf %288, %295 : vector<10x16xf32>
      %c2_i32_333 = arith.constant 2 : i32
      %297 = arith.addi %arg17, %c2_i32_333 : i32
      %298 = arith.index_cast %297 : i32 to index
      %c2_334 = arith.constant 2 : index
      %c0_335 = arith.constant 0 : index
      %299 = vector.load %arg14[%298, %c2_334, %c0_335] : memref<14x14x6xf32, #tpu.memory_space<vmem>>, vector<1x10x6xf32>
      %300 = vector.shape_cast %299 : vector<1x10x6xf32> to vector<10x6xf32>
      %c2_336 = arith.constant 2 : index
      %c2_337 = arith.constant 2 : index
      %c0_338 = arith.constant 0 : index
      %c0_339 = arith.constant 0 : index
      %301 = vector.load %arg4[%c2_336, %c2_337, %c0_338, %c0_339] : memref<5x5x6x16xf32, #tpu.memory_space<vmem>>, vector<1x1x6x16xf32>
      %302 = vector.shape_cast %301 : vector<1x1x6x16xf32> to vector<6x16xf32>
      %cst_340 = arith.constant dense<0.000000e+00> : vector<10x16xf32>
      %303 = tpu.matmul %300, %302, %cst_340 {dimension_numbers = #tpu.dot_dimension_numbers<[1], [0], [0], [1], [0, 0, 1, 1], [], []>} : vector<10x6xf32>, vector<6x16xf32>, vector<10x16xf32> -> vector<10x16xf32>
      %304 = arith.addf %296, %303 : vector<10x16xf32>
      %c2_i32_341 = arith.constant 2 : i32
      %305 = arith.addi %arg17, %c2_i32_341 : i32
      %306 = arith.index_cast %305 : i32 to index
      %c3_342 = arith.constant 3 : index
      %c0_343 = arith.constant 0 : index
      %307 = vector.load %arg14[%306, %c3_342, %c0_343] : memref<14x14x6xf32, #tpu.memory_space<vmem>>, vector<1x10x6xf32>
      %308 = vector.shape_cast %307 : vector<1x10x6xf32> to vector<10x6xf32>
      %c2_344 = arith.constant 2 : index
      %c3_345 = arith.constant 3 : index
      %c0_346 = arith.constant 0 : index
      %c0_347 = arith.constant 0 : index
      %309 = vector.load %arg4[%c2_344, %c3_345, %c0_346, %c0_347] : memref<5x5x6x16xf32, #tpu.memory_space<vmem>>, vector<1x1x6x16xf32>
      %310 = vector.shape_cast %309 : vector<1x1x6x16xf32> to vector<6x16xf32>
      %cst_348 = arith.constant dense<0.000000e+00> : vector<10x16xf32>
      %311 = tpu.matmul %308, %310, %cst_348 {dimension_numbers = #tpu.dot_dimension_numbers<[1], [0], [0], [1], [0, 0, 1, 1], [], []>} : vector<10x6xf32>, vector<6x16xf32>, vector<10x16xf32> -> vector<10x16xf32>
      %312 = arith.addf %304, %311 : vector<10x16xf32>
      %c2_i32_349 = arith.constant 2 : i32
      %313 = arith.addi %arg17, %c2_i32_349 : i32
      %314 = arith.index_cast %313 : i32 to index
      %c4_350 = arith.constant 4 : index
      %c0_351 = arith.constant 0 : index
      %315 = vector.load %arg14[%314, %c4_350, %c0_351] : memref<14x14x6xf32, #tpu.memory_space<vmem>>, vector<1x10x6xf32>
      %316 = vector.shape_cast %315 : vector<1x10x6xf32> to vector<10x6xf32>
      %c2_352 = arith.constant 2 : index
      %c4_353 = arith.constant 4 : index
      %c0_354 = arith.constant 0 : index
      %c0_355 = arith.constant 0 : index
      %317 = vector.load %arg4[%c2_352, %c4_353, %c0_354, %c0_355] : memref<5x5x6x16xf32, #tpu.memory_space<vmem>>, vector<1x1x6x16xf32>
      %318 = vector.shape_cast %317 : vector<1x1x6x16xf32> to vector<6x16xf32>
      %cst_356 = arith.constant dense<0.000000e+00> : vector<10x16xf32>
      %319 = tpu.matmul %316, %318, %cst_356 {dimension_numbers = #tpu.dot_dimension_numbers<[1], [0], [0], [1], [0, 0, 1, 1], [], []>} : vector<10x6xf32>, vector<6x16xf32>, vector<10x16xf32> -> vector<10x16xf32>
      %320 = arith.addf %312, %319 : vector<10x16xf32>
      %c3_i32 = arith.constant 3 : i32
      %321 = arith.addi %arg17, %c3_i32 : i32
      %322 = arith.index_cast %321 : i32 to index
      %c0_357 = arith.constant 0 : index
      %c0_358 = arith.constant 0 : index
      %323 = vector.load %arg14[%322, %c0_357, %c0_358] : memref<14x14x6xf32, #tpu.memory_space<vmem>>, vector<1x10x6xf32>
      %324 = vector.shape_cast %323 : vector<1x10x6xf32> to vector<10x6xf32>
      %c3_359 = arith.constant 3 : index
      %c0_360 = arith.constant 0 : index
      %c0_361 = arith.constant 0 : index
      %c0_362 = arith.constant 0 : index
      %325 = vector.load %arg4[%c3_359, %c0_360, %c0_361, %c0_362] : memref<5x5x6x16xf32, #tpu.memory_space<vmem>>, vector<1x1x6x16xf32>
      %326 = vector.shape_cast %325 : vector<1x1x6x16xf32> to vector<6x16xf32>
      %cst_363 = arith.constant dense<0.000000e+00> : vector<10x16xf32>
      %327 = tpu.matmul %324, %326, %cst_363 {dimension_numbers = #tpu.dot_dimension_numbers<[1], [0], [0], [1], [0, 0, 1, 1], [], []>} : vector<10x6xf32>, vector<6x16xf32>, vector<10x16xf32> -> vector<10x16xf32>
      %328 = arith.addf %320, %327 : vector<10x16xf32>
      %c3_i32_364 = arith.constant 3 : i32
      %329 = arith.addi %arg17, %c3_i32_364 : i32
      %330 = arith.index_cast %329 : i32 to index
      %c1_365 = arith.constant 1 : index
      %c0_366 = arith.constant 0 : index
      %331 = vector.load %arg14[%330, %c1_365, %c0_366] : memref<14x14x6xf32, #tpu.memory_space<vmem>>, vector<1x10x6xf32>
      %332 = vector.shape_cast %331 : vector<1x10x6xf32> to vector<10x6xf32>
      %c3_367 = arith.constant 3 : index
      %c1_368 = arith.constant 1 : index
      %c0_369 = arith.constant 0 : index
      %c0_370 = arith.constant 0 : index
      %333 = vector.load %arg4[%c3_367, %c1_368, %c0_369, %c0_370] : memref<5x5x6x16xf32, #tpu.memory_space<vmem>>, vector<1x1x6x16xf32>
      %334 = vector.shape_cast %333 : vector<1x1x6x16xf32> to vector<6x16xf32>
      %cst_371 = arith.constant dense<0.000000e+00> : vector<10x16xf32>
      %335 = tpu.matmul %332, %334, %cst_371 {dimension_numbers = #tpu.dot_dimension_numbers<[1], [0], [0], [1], [0, 0, 1, 1], [], []>} : vector<10x6xf32>, vector<6x16xf32>, vector<10x16xf32> -> vector<10x16xf32>
      %336 = arith.addf %328, %335 : vector<10x16xf32>
      %c3_i32_372 = arith.constant 3 : i32
      %337 = arith.addi %arg17, %c3_i32_372 : i32
      %338 = arith.index_cast %337 : i32 to index
      %c2_373 = arith.constant 2 : index
      %c0_374 = arith.constant 0 : index
      %339 = vector.load %arg14[%338, %c2_373, %c0_374] : memref<14x14x6xf32, #tpu.memory_space<vmem>>, vector<1x10x6xf32>
      %340 = vector.shape_cast %339 : vector<1x10x6xf32> to vector<10x6xf32>
      %c3_375 = arith.constant 3 : index
      %c2_376 = arith.constant 2 : index
      %c0_377 = arith.constant 0 : index
      %c0_378 = arith.constant 0 : index
      %341 = vector.load %arg4[%c3_375, %c2_376, %c0_377, %c0_378] : memref<5x5x6x16xf32, #tpu.memory_space<vmem>>, vector<1x1x6x16xf32>
      %342 = vector.shape_cast %341 : vector<1x1x6x16xf32> to vector<6x16xf32>
      %cst_379 = arith.constant dense<0.000000e+00> : vector<10x16xf32>
      %343 = tpu.matmul %340, %342, %cst_379 {dimension_numbers = #tpu.dot_dimension_numbers<[1], [0], [0], [1], [0, 0, 1, 1], [], []>} : vector<10x6xf32>, vector<6x16xf32>, vector<10x16xf32> -> vector<10x16xf32>
      %344 = arith.addf %336, %343 : vector<10x16xf32>
      %c3_i32_380 = arith.constant 3 : i32
      %345 = arith.addi %arg17, %c3_i32_380 : i32
      %346 = arith.index_cast %345 : i32 to index
      %c3_381 = arith.constant 3 : index
      %c0_382 = arith.constant 0 : index
      %347 = vector.load %arg14[%346, %c3_381, %c0_382] : memref<14x14x6xf32, #tpu.memory_space<vmem>>, vector<1x10x6xf32>
      %348 = vector.shape_cast %347 : vector<1x10x6xf32> to vector<10x6xf32>
      %c3_383 = arith.constant 3 : index
      %c3_384 = arith.constant 3 : index
      %c0_385 = arith.constant 0 : index
      %c0_386 = arith.constant 0 : index
      %349 = vector.load %arg4[%c3_383, %c3_384, %c0_385, %c0_386] : memref<5x5x6x16xf32, #tpu.memory_space<vmem>>, vector<1x1x6x16xf32>
      %350 = vector.shape_cast %349 : vector<1x1x6x16xf32> to vector<6x16xf32>
      %cst_387 = arith.constant dense<0.000000e+00> : vector<10x16xf32>
      %351 = tpu.matmul %348, %350, %cst_387 {dimension_numbers = #tpu.dot_dimension_numbers<[1], [0], [0], [1], [0, 0, 1, 1], [], []>} : vector<10x6xf32>, vector<6x16xf32>, vector<10x16xf32> -> vector<10x16xf32>
      %352 = arith.addf %344, %351 : vector<10x16xf32>
      %c3_i32_388 = arith.constant 3 : i32
      %353 = arith.addi %arg17, %c3_i32_388 : i32
      %354 = arith.index_cast %353 : i32 to index
      %c4_389 = arith.constant 4 : index
      %c0_390 = arith.constant 0 : index
      %355 = vector.load %arg14[%354, %c4_389, %c0_390] : memref<14x14x6xf32, #tpu.memory_space<vmem>>, vector<1x10x6xf32>
      %356 = vector.shape_cast %355 : vector<1x10x6xf32> to vector<10x6xf32>
      %c3_391 = arith.constant 3 : index
      %c4_392 = arith.constant 4 : index
      %c0_393 = arith.constant 0 : index
      %c0_394 = arith.constant 0 : index
      %357 = vector.load %arg4[%c3_391, %c4_392, %c0_393, %c0_394] : memref<5x5x6x16xf32, #tpu.memory_space<vmem>>, vector<1x1x6x16xf32>
      %358 = vector.shape_cast %357 : vector<1x1x6x16xf32> to vector<6x16xf32>
      %cst_395 = arith.constant dense<0.000000e+00> : vector<10x16xf32>
      %359 = tpu.matmul %356, %358, %cst_395 {dimension_numbers = #tpu.dot_dimension_numbers<[1], [0], [0], [1], [0, 0, 1, 1], [], []>} : vector<10x6xf32>, vector<6x16xf32>, vector<10x16xf32> -> vector<10x16xf32>
      %360 = arith.addf %352, %359 : vector<10x16xf32>
      %c4_i32 = arith.constant 4 : i32
      %361 = arith.addi %arg17, %c4_i32 : i32
      %362 = arith.index_cast %361 : i32 to index
      %c0_396 = arith.constant 0 : index
      %c0_397 = arith.constant 0 : index
      %363 = vector.load %arg14[%362, %c0_396, %c0_397] : memref<14x14x6xf32, #tpu.memory_space<vmem>>, vector<1x10x6xf32>
      %364 = vector.shape_cast %363 : vector<1x10x6xf32> to vector<10x6xf32>
      %c4_398 = arith.constant 4 : index
      %c0_399 = arith.constant 0 : index
      %c0_400 = arith.constant 0 : index
      %c0_401 = arith.constant 0 : index
      %365 = vector.load %arg4[%c4_398, %c0_399, %c0_400, %c0_401] : memref<5x5x6x16xf32, #tpu.memory_space<vmem>>, vector<1x1x6x16xf32>
      %366 = vector.shape_cast %365 : vector<1x1x6x16xf32> to vector<6x16xf32>
      %cst_402 = arith.constant dense<0.000000e+00> : vector<10x16xf32>
      %367 = tpu.matmul %364, %366, %cst_402 {dimension_numbers = #tpu.dot_dimension_numbers<[1], [0], [0], [1], [0, 0, 1, 1], [], []>} : vector<10x6xf32>, vector<6x16xf32>, vector<10x16xf32> -> vector<10x16xf32>
      %368 = arith.addf %360, %367 : vector<10x16xf32>
      %c4_i32_403 = arith.constant 4 : i32
      %369 = arith.addi %arg17, %c4_i32_403 : i32
      %370 = arith.index_cast %369 : i32 to index
      %c1_404 = arith.constant 1 : index
      %c0_405 = arith.constant 0 : index
      %371 = vector.load %arg14[%370, %c1_404, %c0_405] : memref<14x14x6xf32, #tpu.memory_space<vmem>>, vector<1x10x6xf32>
      %372 = vector.shape_cast %371 : vector<1x10x6xf32> to vector<10x6xf32>
      %c4_406 = arith.constant 4 : index
      %c1_407 = arith.constant 1 : index
      %c0_408 = arith.constant 0 : index
      %c0_409 = arith.constant 0 : index
      %373 = vector.load %arg4[%c4_406, %c1_407, %c0_408, %c0_409] : memref<5x5x6x16xf32, #tpu.memory_space<vmem>>, vector<1x1x6x16xf32>
      %374 = vector.shape_cast %373 : vector<1x1x6x16xf32> to vector<6x16xf32>
      %cst_410 = arith.constant dense<0.000000e+00> : vector<10x16xf32>
      %375 = tpu.matmul %372, %374, %cst_410 {dimension_numbers = #tpu.dot_dimension_numbers<[1], [0], [0], [1], [0, 0, 1, 1], [], []>} : vector<10x6xf32>, vector<6x16xf32>, vector<10x16xf32> -> vector<10x16xf32>
      %376 = arith.addf %368, %375 : vector<10x16xf32>
      %c4_i32_411 = arith.constant 4 : i32
      %377 = arith.addi %arg17, %c4_i32_411 : i32
      %378 = arith.index_cast %377 : i32 to index
      %c2_412 = arith.constant 2 : index
      %c0_413 = arith.constant 0 : index
      %379 = vector.load %arg14[%378, %c2_412, %c0_413] : memref<14x14x6xf32, #tpu.memory_space<vmem>>, vector<1x10x6xf32>
      %380 = vector.shape_cast %379 : vector<1x10x6xf32> to vector<10x6xf32>
      %c4_414 = arith.constant 4 : index
      %c2_415 = arith.constant 2 : index
      %c0_416 = arith.constant 0 : index
      %c0_417 = arith.constant 0 : index
      %381 = vector.load %arg4[%c4_414, %c2_415, %c0_416, %c0_417] : memref<5x5x6x16xf32, #tpu.memory_space<vmem>>, vector<1x1x6x16xf32>
      %382 = vector.shape_cast %381 : vector<1x1x6x16xf32> to vector<6x16xf32>
      %cst_418 = arith.constant dense<0.000000e+00> : vector<10x16xf32>
      %383 = tpu.matmul %380, %382, %cst_418 {dimension_numbers = #tpu.dot_dimension_numbers<[1], [0], [0], [1], [0, 0, 1, 1], [], []>} : vector<10x6xf32>, vector<6x16xf32>, vector<10x16xf32> -> vector<10x16xf32>
      %384 = arith.addf %376, %383 : vector<10x16xf32>
      %c4_i32_419 = arith.constant 4 : i32
      %385 = arith.addi %arg17, %c4_i32_419 : i32
      %386 = arith.index_cast %385 : i32 to index
      %c3_420 = arith.constant 3 : index
      %c0_421 = arith.constant 0 : index
      %387 = vector.load %arg14[%386, %c3_420, %c0_421] : memref<14x14x6xf32, #tpu.memory_space<vmem>>, vector<1x10x6xf32>
      %388 = vector.shape_cast %387 : vector<1x10x6xf32> to vector<10x6xf32>
      %c4_422 = arith.constant 4 : index
      %c3_423 = arith.constant 3 : index
      %c0_424 = arith.constant 0 : index
      %c0_425 = arith.constant 0 : index
      %389 = vector.load %arg4[%c4_422, %c3_423, %c0_424, %c0_425] : memref<5x5x6x16xf32, #tpu.memory_space<vmem>>, vector<1x1x6x16xf32>
      %390 = vector.shape_cast %389 : vector<1x1x6x16xf32> to vector<6x16xf32>
      %cst_426 = arith.constant dense<0.000000e+00> : vector<10x16xf32>
      %391 = tpu.matmul %388, %390, %cst_426 {dimension_numbers = #tpu.dot_dimension_numbers<[1], [0], [0], [1], [0, 0, 1, 1], [], []>} : vector<10x6xf32>, vector<6x16xf32>, vector<10x16xf32> -> vector<10x16xf32>
      %392 = arith.addf %384, %391 : vector<10x16xf32>
      %c4_i32_427 = arith.constant 4 : i32
      %393 = arith.addi %arg17, %c4_i32_427 : i32
      %394 = arith.index_cast %393 : i32 to index
      %c4_428 = arith.constant 4 : index
      %c0_429 = arith.constant 0 : index
      %395 = vector.load %arg14[%394, %c4_428, %c0_429] : memref<14x14x6xf32, #tpu.memory_space<vmem>>, vector<1x10x6xf32>
      %396 = vector.shape_cast %395 : vector<1x10x6xf32> to vector<10x6xf32>
      %c4_430 = arith.constant 4 : index
      %c4_431 = arith.constant 4 : index
      %c0_432 = arith.constant 0 : index
      %c0_433 = arith.constant 0 : index
      %397 = vector.load %arg4[%c4_430, %c4_431, %c0_432, %c0_433] : memref<5x5x6x16xf32, #tpu.memory_space<vmem>>, vector<1x1x6x16xf32>
      %398 = vector.shape_cast %397 : vector<1x1x6x16xf32> to vector<6x16xf32>
      %cst_434 = arith.constant dense<0.000000e+00> : vector<10x16xf32>
      %399 = tpu.matmul %396, %398, %cst_434 {dimension_numbers = #tpu.dot_dimension_numbers<[1], [0], [0], [1], [0, 0, 1, 1], [], []>} : vector<10x6xf32>, vector<6x16xf32>, vector<10x16xf32> -> vector<10x16xf32>
      %400 = arith.addf %392, %399 : vector<10x16xf32>
      %401 = vector.broadcast %17 : vector<1x16xf32> to vector<10x16xf32>
      %402 = arith.addf %400, %401 : vector<10x16xf32>
      %cst_435 = arith.constant 0.000000e+00 : f32
      %403 = vector.broadcast %cst_435 : f32 to vector<10x16xf32>
      %404 = arith.maximumf %402, %403 : vector<10x16xf32>
      %405 = arith.index_cast %arg17 : i32 to index
      %c0_436 = arith.constant 0 : index
      %c0_437 = arith.constant 0 : index
      %406 = vector.load %arg15[%405, %c0_436, %c0_437] : memref<10x10x16xf32, #tpu.memory_space<vmem>>, vector<1x10x16xf32>
      %407 = vector.shape_cast %406 : vector<1x10x16xf32> to vector<10x16xf32>
      %408 = vector.shape_cast %404 : vector<10x16xf32> to vector<1x10x16xf32>
      tpu.vector_store %arg15[%405, %c0_436, %c0_437], %408 {strides = array<i32>} : memref<10x10x16xf32, #tpu.memory_space<vmem>>, vector<1x10x16xf32>,
    }
    %c10_i32_13 = arith.constant 10 : i32
    %19 = tpu.iota {dimensions = array<i32: 1>} : vector<5x10xi32>
    %20 = tpu.iota {dimensions = array<i32: 0>} : vector<5x10xi32>
    %c2_i32_14 = arith.constant 2 : i32
    %21 = vector.broadcast %c2_i32_14 : i32 to vector<5x10xi32>
    %22 = arith.muli %21, %20 : vector<5x10xi32>
    %23 = arith.cmpi eq, %19, %22 : vector<5x10xi32>
    %cst_15 = arith.constant 1.000000e+00 : f32
    %cst_16 = arith.constant 0.000000e+00 : f32
    %24 = vector.broadcast %cst_15 : f32 to vector<5x10xf32>
    %25 = vector.broadcast %cst_16 : f32 to vector<5x10xf32>
    %26 = arith.select %23, %24, %25 : vector<5x10xi1>, vector<5x10xf32>
    %c1_i32_17 = arith.constant 1 : i32
    %27 = vector.broadcast %c1_i32_17 : i32 to vector<5x10xi32>
    %28 = arith.addi %22, %27 : vector<5x10xi32>
    %29 = arith.cmpi eq, %19, %28 : vector<5x10xi32>
    %cst_18 = arith.constant 1.000000e+00 : f32
    %cst_19 = arith.constant 0.000000e+00 : f32
    %30 = vector.broadcast %cst_18 : f32 to vector<5x10xf32>
    %31 = vector.broadcast %cst_19 : f32 to vector<5x10xf32>
    %32 = arith.select %29, %30, %31 : vector<5x10xi1>, vector<5x10xf32>
    %c0_i32_20 = arith.constant 0 : i32
    %c5_i32 = arith.constant 5 : i32
    %33 = arith.addi %c0_i32_20, %c5_i32 : i32
    %c1_i32_21 = arith.constant 1 : i32
    scf.for %arg17 = %c0_i32_20 to %33 step %c1_i32_21  : i32 {
      %c2_i32_236 = arith.constant 2 : i32
      %200 = arith.muli %c2_i32_236, %arg17 : i32
      %201 = arith.index_cast %200 : i32 to index
      %c0_237 = arith.constant 0 : index
      %c0_238 = arith.constant 0 : index
      %202 = vector.load %arg15[%201, %c0_237, %c0_238] : memref<10x10x16xf32, #tpu.memory_space<vmem>>, vector<1x10x16xf32>
      %203 = vector.shape_cast %202 : vector<1x10x16xf32> to vector<10x16xf32>
      %c1_i32_239 = arith.constant 1 : i32
      %204 = arith.addi %200, %c1_i32_239 : i32
      %205 = arith.index_cast %204 : i32 to index
      %c0_240 = arith.constant 0 : index
      %c0_241 = arith.constant 0 : index
      %206 = vector.load %arg15[%205, %c0_240, %c0_241] : memref<10x10x16xf32, #tpu.memory_space<vmem>>, vector<1x10x16xf32>
      %207 = vector.shape_cast %206 : vector<1x10x16xf32> to vector<10x16xf32>
      %208 = arith.maximumf %203, %207 : vector<10x16xf32>
      %cst_242 = arith.constant dense<0.000000e+00> : vector<5x16xf32>
      %209 = tpu.matmul %26, %208, %cst_242 {dimension_numbers = #tpu.dot_dimension_numbers<[1], [0], [0], [1], [0, 0, 1, 1], [], []>} : vector<5x10xf32>, vector<10x16xf32>, vector<5x16xf32> -> vector<5x16xf32>
      %cst_243 = arith.constant dense<0.000000e+00> : vector<5x16xf32>
      %210 = tpu.matmul %32, %208, %cst_243 {dimension_numbers = #tpu.dot_dimension_numbers<[1], [0], [0], [1], [0, 0, 1, 1], [], []>} : vector<5x10xf32>, vector<10x16xf32>, vector<5x16xf32> -> vector<5x16xf32>
      %211 = arith.maximumf %209, %210 : vector<5x16xf32>
      %212 = arith.index_cast %arg17 : i32 to index
      %c0_244 = arith.constant 0 : index
      %c0_245 = arith.constant 0 : index
      %213 = vector.load %arg16[%212, %c0_244, %c0_245] : memref<5x5x16xf32, #tpu.memory_space<vmem>>, vector<1x5x16xf32>
      %214 = vector.shape_cast %213 : vector<1x5x16xf32> to vector<5x16xf32>
      %215 = vector.shape_cast %211 : vector<5x16xf32> to vector<1x5x16xf32>
      tpu.vector_store %arg16[%212, %c0_244, %c0_245], %215 {strides = array<i32>} : memref<5x5x16xf32, #tpu.memory_space<vmem>>, vector<1x5x16xf32>,
    }
    %c5_i32_22 = arith.constant 5 : i32
    %c0_23 = arith.constant 0 : index
    %c0_24 = arith.constant 0 : index
    %34 = vector.load %arg7[%c0_23, %c0_24] : memref<1x128xf32, #tpu.memory_space<vmem>>, vector<1x128xf32>
    %c0_25 = arith.constant 0 : index
    %c0_26 = arith.constant 0 : index
    %c0_27 = arith.constant 0 : index
    %35 = vector.load %arg16[%c0_25, %c0_26, %c0_27] : memref<5x5x16xf32, #tpu.memory_space<vmem>>, vector<1x1x16xf32>
    %36 = vector.shape_cast %35 : vector<1x1x16xf32> to vector<1x16xf32>
    %c0_28 = arith.constant 0 : index
    %c0_29 = arith.constant 0 : index
    %c0_30 = arith.constant 0 : index
    %c0_31 = arith.constant 0 : index
    %37 = vector.load %arg6[%c0_28, %c0_29, %c0_30, %c0_31] : memref<5x5x16x128xf32, #tpu.memory_space<vmem>>, vector<1x1x16x128xf32>
    %38 = vector.shape_cast %37 : vector<1x1x16x128xf32> to vector<16x128xf32>
    %cst_32 = arith.constant dense<0.000000e+00> : vector<1x128xf32>
    %39 = tpu.matmul %36, %38, %cst_32 {dimension_numbers = #tpu.dot_dimension_numbers<[1], [0], [0], [1], [0, 0, 1, 1], [], []>} : vector<1x16xf32>, vector<16x128xf32>, vector<1x128xf32> -> vector<1x128xf32>
    %40 = arith.addf %34, %39 : vector<1x128xf32>
    %c0_33 = arith.constant 0 : index
    %c1 = arith.constant 1 : index
    %c0_34 = arith.constant 0 : index
    %41 = vector.load %arg16[%c0_33, %c1, %c0_34] : memref<5x5x16xf32, #tpu.memory_space<vmem>>, vector<1x1x16xf32>
    %42 = vector.shape_cast %41 : vector<1x1x16xf32> to vector<1x16xf32>
    %c0_35 = arith.constant 0 : index
    %c1_36 = arith.constant 1 : index
    %c0_37 = arith.constant 0 : index
    %c0_38 = arith.constant 0 : index
    %43 = vector.load %arg6[%c0_35, %c1_36, %c0_37, %c0_38] : memref<5x5x16x128xf32, #tpu.memory_space<vmem>>, vector<1x1x16x128xf32>
    %44 = vector.shape_cast %43 : vector<1x1x16x128xf32> to vector<16x128xf32>
    %cst_39 = arith.constant dense<0.000000e+00> : vector<1x128xf32>
    %45 = tpu.matmul %42, %44, %cst_39 {dimension_numbers = #tpu.dot_dimension_numbers<[1], [0], [0], [1], [0, 0, 1, 1], [], []>} : vector<1x16xf32>, vector<16x128xf32>, vector<1x128xf32> -> vector<1x128xf32>
    %46 = arith.addf %40, %45 : vector<1x128xf32>
    %c0_40 = arith.constant 0 : index
    %c2 = arith.constant 2 : index
    %c0_41 = arith.constant 0 : index
    %47 = vector.load %arg16[%c0_40, %c2, %c0_41] : memref<5x5x16xf32, #tpu.memory_space<vmem>>, vector<1x1x16xf32>
    %48 = vector.shape_cast %47 : vector<1x1x16xf32> to vector<1x16xf32>
    %c0_42 = arith.constant 0 : index
    %c2_43 = arith.constant 2 : index
    %c0_44 = arith.constant 0 : index
    %c0_45 = arith.constant 0 : index
    %49 = vector.load %arg6[%c0_42, %c2_43, %c0_44, %c0_45] : memref<5x5x16x128xf32, #tpu.memory_space<vmem>>, vector<1x1x16x128xf32>
    %50 = vector.shape_cast %49 : vector<1x1x16x128xf32> to vector<16x128xf32>
    %cst_46 = arith.constant dense<0.000000e+00> : vector<1x128xf32>
    %51 = tpu.matmul %48, %50, %cst_46 {dimension_numbers = #tpu.dot_dimension_numbers<[1], [0], [0], [1], [0, 0, 1, 1], [], []>} : vector<1x16xf32>, vector<16x128xf32>, vector<1x128xf32> -> vector<1x128xf32>
    %52 = arith.addf %46, %51 : vector<1x128xf32>
    %c0_47 = arith.constant 0 : index
    %c3 = arith.constant 3 : index
    %c0_48 = arith.constant 0 : index
    %53 = vector.load %arg16[%c0_47, %c3, %c0_48] : memref<5x5x16xf32, #tpu.memory_space<vmem>>, vector<1x1x16xf32>
    %54 = vector.shape_cast %53 : vector<1x1x16xf32> to vector<1x16xf32>
    %c0_49 = arith.constant 0 : index
    %c3_50 = arith.constant 3 : index
    %c0_51 = arith.constant 0 : index
    %c0_52 = arith.constant 0 : index
    %55 = vector.load %arg6[%c0_49, %c3_50, %c0_51, %c0_52] : memref<5x5x16x128xf32, #tpu.memory_space<vmem>>, vector<1x1x16x128xf32>
    %56 = vector.shape_cast %55 : vector<1x1x16x128xf32> to vector<16x128xf32>
    %cst_53 = arith.constant dense<0.000000e+00> : vector<1x128xf32>
    %57 = tpu.matmul %54, %56, %cst_53 {dimension_numbers = #tpu.dot_dimension_numbers<[1], [0], [0], [1], [0, 0, 1, 1], [], []>} : vector<1x16xf32>, vector<16x128xf32>, vector<1x128xf32> -> vector<1x128xf32>
    %58 = arith.addf %52, %57 : vector<1x128xf32>
    %c0_54 = arith.constant 0 : index
    %c4 = arith.constant 4 : index
    %c0_55 = arith.constant 0 : index
    %59 = vector.load %arg16[%c0_54, %c4, %c0_55] : memref<5x5x16xf32, #tpu.memory_space<vmem>>, vector<1x1x16xf32>
    %60 = vector.shape_cast %59 : vector<1x1x16xf32> to vector<1x16xf32>
    %c0_56 = arith.constant 0 : index
    %c4_57 = arith.constant 4 : index
    %c0_58 = arith.constant 0 : index
    %c0_59 = arith.constant 0 : index
    %61 = vector.load %arg6[%c0_56, %c4_57, %c0_58, %c0_59] : memref<5x5x16x128xf32, #tpu.memory_space<vmem>>, vector<1x1x16x128xf32>
    %62 = vector.shape_cast %61 : vector<1x1x16x128xf32> to vector<16x128xf32>
    %cst_60 = arith.constant dense<0.000000e+00> : vector<1x128xf32>
    %63 = tpu.matmul %60, %62, %cst_60 {dimension_numbers = #tpu.dot_dimension_numbers<[1], [0], [0], [1], [0, 0, 1, 1], [], []>} : vector<1x16xf32>, vector<16x128xf32>, vector<1x128xf32> -> vector<1x128xf32>
    %64 = arith.addf %58, %63 : vector<1x128xf32>
    %c1_61 = arith.constant 1 : index
    %c0_62 = arith.constant 0 : index
    %c0_63 = arith.constant 0 : index
    %65 = vector.load %arg16[%c1_61, %c0_62, %c0_63] : memref<5x5x16xf32, #tpu.memory_space<vmem>>, vector<1x1x16xf32>
    %66 = vector.shape_cast %65 : vector<1x1x16xf32> to vector<1x16xf32>
    %c1_64 = arith.constant 1 : index
    %c0_65 = arith.constant 0 : index
    %c0_66 = arith.constant 0 : index
    %c0_67 = arith.constant 0 : index
    %67 = vector.load %arg6[%c1_64, %c0_65, %c0_66, %c0_67] : memref<5x5x16x128xf32, #tpu.memory_space<vmem>>, vector<1x1x16x128xf32>
    %68 = vector.shape_cast %67 : vector<1x1x16x128xf32> to vector<16x128xf32>
    %cst_68 = arith.constant dense<0.000000e+00> : vector<1x128xf32>
    %69 = tpu.matmul %66, %68, %cst_68 {dimension_numbers = #tpu.dot_dimension_numbers<[1], [0], [0], [1], [0, 0, 1, 1], [], []>} : vector<1x16xf32>, vector<16x128xf32>, vector<1x128xf32> -> vector<1x128xf32>
    %70 = arith.addf %64, %69 : vector<1x128xf32>
    %c1_69 = arith.constant 1 : index
    %c1_70 = arith.constant 1 : index
    %c0_71 = arith.constant 0 : index
    %71 = vector.load %arg16[%c1_69, %c1_70, %c0_71] : memref<5x5x16xf32, #tpu.memory_space<vmem>>, vector<1x1x16xf32>
    %72 = vector.shape_cast %71 : vector<1x1x16xf32> to vector<1x16xf32>
    %c1_72 = arith.constant 1 : index
    %c1_73 = arith.constant 1 : index
    %c0_74 = arith.constant 0 : index
    %c0_75 = arith.constant 0 : index
    %73 = vector.load %arg6[%c1_72, %c1_73, %c0_74, %c0_75] : memref<5x5x16x128xf32, #tpu.memory_space<vmem>>, vector<1x1x16x128xf32>
    %74 = vector.shape_cast %73 : vector<1x1x16x128xf32> to vector<16x128xf32>
    %cst_76 = arith.constant dense<0.000000e+00> : vector<1x128xf32>
    %75 = tpu.matmul %72, %74, %cst_76 {dimension_numbers = #tpu.dot_dimension_numbers<[1], [0], [0], [1], [0, 0, 1, 1], [], []>} : vector<1x16xf32>, vector<16x128xf32>, vector<1x128xf32> -> vector<1x128xf32>
    %76 = arith.addf %70, %75 : vector<1x128xf32>
    %c1_77 = arith.constant 1 : index
    %c2_78 = arith.constant 2 : index
    %c0_79 = arith.constant 0 : index
    %77 = vector.load %arg16[%c1_77, %c2_78, %c0_79] : memref<5x5x16xf32, #tpu.memory_space<vmem>>, vector<1x1x16xf32>
    %78 = vector.shape_cast %77 : vector<1x1x16xf32> to vector<1x16xf32>
    %c1_80 = arith.constant 1 : index
    %c2_81 = arith.constant 2 : index
    %c0_82 = arith.constant 0 : index
    %c0_83 = arith.constant 0 : index
    %79 = vector.load %arg6[%c1_80, %c2_81, %c0_82, %c0_83] : memref<5x5x16x128xf32, #tpu.memory_space<vmem>>, vector<1x1x16x128xf32>
    %80 = vector.shape_cast %79 : vector<1x1x16x128xf32> to vector<16x128xf32>
    %cst_84 = arith.constant dense<0.000000e+00> : vector<1x128xf32>
    %81 = tpu.matmul %78, %80, %cst_84 {dimension_numbers = #tpu.dot_dimension_numbers<[1], [0], [0], [1], [0, 0, 1, 1], [], []>} : vector<1x16xf32>, vector<16x128xf32>, vector<1x128xf32> -> vector<1x128xf32>
    %82 = arith.addf %76, %81 : vector<1x128xf32>
    %c1_85 = arith.constant 1 : index
    %c3_86 = arith.constant 3 : index
    %c0_87 = arith.constant 0 : index
    %83 = vector.load %arg16[%c1_85, %c3_86, %c0_87] : memref<5x5x16xf32, #tpu.memory_space<vmem>>, vector<1x1x16xf32>
    %84 = vector.shape_cast %83 : vector<1x1x16xf32> to vector<1x16xf32>
    %c1_88 = arith.constant 1 : index
    %c3_89 = arith.constant 3 : index
    %c0_90 = arith.constant 0 : index
    %c0_91 = arith.constant 0 : index
    %85 = vector.load %arg6[%c1_88, %c3_89, %c0_90, %c0_91] : memref<5x5x16x128xf32, #tpu.memory_space<vmem>>, vector<1x1x16x128xf32>
    %86 = vector.shape_cast %85 : vector<1x1x16x128xf32> to vector<16x128xf32>
    %cst_92 = arith.constant dense<0.000000e+00> : vector<1x128xf32>
    %87 = tpu.matmul %84, %86, %cst_92 {dimension_numbers = #tpu.dot_dimension_numbers<[1], [0], [0], [1], [0, 0, 1, 1], [], []>} : vector<1x16xf32>, vector<16x128xf32>, vector<1x128xf32> -> vector<1x128xf32>
    %88 = arith.addf %82, %87 : vector<1x128xf32>
    %c1_93 = arith.constant 1 : index
    %c4_94 = arith.constant 4 : index
    %c0_95 = arith.constant 0 : index
    %89 = vector.load %arg16[%c1_93, %c4_94, %c0_95] : memref<5x5x16xf32, #tpu.memory_space<vmem>>, vector<1x1x16xf32>
    %90 = vector.shape_cast %89 : vector<1x1x16xf32> to vector<1x16xf32>
    %c1_96 = arith.constant 1 : index
    %c4_97 = arith.constant 4 : index
    %c0_98 = arith.constant 0 : index
    %c0_99 = arith.constant 0 : index
    %91 = vector.load %arg6[%c1_96, %c4_97, %c0_98, %c0_99] : memref<5x5x16x128xf32, #tpu.memory_space<vmem>>, vector<1x1x16x128xf32>
    %92 = vector.shape_cast %91 : vector<1x1x16x128xf32> to vector<16x128xf32>
    %cst_100 = arith.constant dense<0.000000e+00> : vector<1x128xf32>
    %93 = tpu.matmul %90, %92, %cst_100 {dimension_numbers = #tpu.dot_dimension_numbers<[1], [0], [0], [1], [0, 0, 1, 1], [], []>} : vector<1x16xf32>, vector<16x128xf32>, vector<1x128xf32> -> vector<1x128xf32>
    %94 = arith.addf %88, %93 : vector<1x128xf32>
    %c2_101 = arith.constant 2 : index
    %c0_102 = arith.constant 0 : index
    %c0_103 = arith.constant 0 : index
    %95 = vector.load %arg16[%c2_101, %c0_102, %c0_103] : memref<5x5x16xf32, #tpu.memory_space<vmem>>, vector<1x1x16xf32>
    %96 = vector.shape_cast %95 : vector<1x1x16xf32> to vector<1x16xf32>
    %c2_104 = arith.constant 2 : index
    %c0_105 = arith.constant 0 : index
    %c0_106 = arith.constant 0 : index
    %c0_107 = arith.constant 0 : index
    %97 = vector.load %arg6[%c2_104, %c0_105, %c0_106, %c0_107] : memref<5x5x16x128xf32, #tpu.memory_space<vmem>>, vector<1x1x16x128xf32>
    %98 = vector.shape_cast %97 : vector<1x1x16x128xf32> to vector<16x128xf32>
    %cst_108 = arith.constant dense<0.000000e+00> : vector<1x128xf32>
    %99 = tpu.matmul %96, %98, %cst_108 {dimension_numbers = #tpu.dot_dimension_numbers<[1], [0], [0], [1], [0, 0, 1, 1], [], []>} : vector<1x16xf32>, vector<16x128xf32>, vector<1x128xf32> -> vector<1x128xf32>
    %100 = arith.addf %94, %99 : vector<1x128xf32>
    %c2_109 = arith.constant 2 : index
    %c1_110 = arith.constant 1 : index
    %c0_111 = arith.constant 0 : index
    %101 = vector.load %arg16[%c2_109, %c1_110, %c0_111] : memref<5x5x16xf32, #tpu.memory_space<vmem>>, vector<1x1x16xf32>
    %102 = vector.shape_cast %101 : vector<1x1x16xf32> to vector<1x16xf32>
    %c2_112 = arith.constant 2 : index
    %c1_113 = arith.constant 1 : index
    %c0_114 = arith.constant 0 : index
    %c0_115 = arith.constant 0 : index
    %103 = vector.load %arg6[%c2_112, %c1_113, %c0_114, %c0_115] : memref<5x5x16x128xf32, #tpu.memory_space<vmem>>, vector<1x1x16x128xf32>
    %104 = vector.shape_cast %103 : vector<1x1x16x128xf32> to vector<16x128xf32>
    %cst_116 = arith.constant dense<0.000000e+00> : vector<1x128xf32>
    %105 = tpu.matmul %102, %104, %cst_116 {dimension_numbers = #tpu.dot_dimension_numbers<[1], [0], [0], [1], [0, 0, 1, 1], [], []>} : vector<1x16xf32>, vector<16x128xf32>, vector<1x128xf32> -> vector<1x128xf32>
    %106 = arith.addf %100, %105 : vector<1x128xf32>
    %c2_117 = arith.constant 2 : index
    %c2_118 = arith.constant 2 : index
    %c0_119 = arith.constant 0 : index
    %107 = vector.load %arg16[%c2_117, %c2_118, %c0_119] : memref<5x5x16xf32, #tpu.memory_space<vmem>>, vector<1x1x16xf32>
    %108 = vector.shape_cast %107 : vector<1x1x16xf32> to vector<1x16xf32>
    %c2_120 = arith.constant 2 : index
    %c2_121 = arith.constant 2 : index
    %c0_122 = arith.constant 0 : index
    %c0_123 = arith.constant 0 : index
    %109 = vector.load %arg6[%c2_120, %c2_121, %c0_122, %c0_123] : memref<5x5x16x128xf32, #tpu.memory_space<vmem>>, vector<1x1x16x128xf32>
    %110 = vector.shape_cast %109 : vector<1x1x16x128xf32> to vector<16x128xf32>
    %cst_124 = arith.constant dense<0.000000e+00> : vector<1x128xf32>
    %111 = tpu.matmul %108, %110, %cst_124 {dimension_numbers = #tpu.dot_dimension_numbers<[1], [0], [0], [1], [0, 0, 1, 1], [], []>} : vector<1x16xf32>, vector<16x128xf32>, vector<1x128xf32> -> vector<1x128xf32>
    %112 = arith.addf %106, %111 : vector<1x128xf32>
    %c2_125 = arith.constant 2 : index
    %c3_126 = arith.constant 3 : index
    %c0_127 = arith.constant 0 : index
    %113 = vector.load %arg16[%c2_125, %c3_126, %c0_127] : memref<5x5x16xf32, #tpu.memory_space<vmem>>, vector<1x1x16xf32>
    %114 = vector.shape_cast %113 : vector<1x1x16xf32> to vector<1x16xf32>
    %c2_128 = arith.constant 2 : index
    %c3_129 = arith.constant 3 : index
    %c0_130 = arith.constant 0 : index
    %c0_131 = arith.constant 0 : index
    %115 = vector.load %arg6[%c2_128, %c3_129, %c0_130, %c0_131] : memref<5x5x16x128xf32, #tpu.memory_space<vmem>>, vector<1x1x16x128xf32>
    %116 = vector.shape_cast %115 : vector<1x1x16x128xf32> to vector<16x128xf32>
    %cst_132 = arith.constant dense<0.000000e+00> : vector<1x128xf32>
    %117 = tpu.matmul %114, %116, %cst_132 {dimension_numbers = #tpu.dot_dimension_numbers<[1], [0], [0], [1], [0, 0, 1, 1], [], []>} : vector<1x16xf32>, vector<16x128xf32>, vector<1x128xf32> -> vector<1x128xf32>
    %118 = arith.addf %112, %117 : vector<1x128xf32>
    %c2_133 = arith.constant 2 : index
    %c4_134 = arith.constant 4 : index
    %c0_135 = arith.constant 0 : index
    %119 = vector.load %arg16[%c2_133, %c4_134, %c0_135] : memref<5x5x16xf32, #tpu.memory_space<vmem>>, vector<1x1x16xf32>
    %120 = vector.shape_cast %119 : vector<1x1x16xf32> to vector<1x16xf32>
    %c2_136 = arith.constant 2 : index
    %c4_137 = arith.constant 4 : index
    %c0_138 = arith.constant 0 : index
    %c0_139 = arith.constant 0 : index
    %121 = vector.load %arg6[%c2_136, %c4_137, %c0_138, %c0_139] : memref<5x5x16x128xf32, #tpu.memory_space<vmem>>, vector<1x1x16x128xf32>
    %122 = vector.shape_cast %121 : vector<1x1x16x128xf32> to vector<16x128xf32>
    %cst_140 = arith.constant dense<0.000000e+00> : vector<1x128xf32>
    %123 = tpu.matmul %120, %122, %cst_140 {dimension_numbers = #tpu.dot_dimension_numbers<[1], [0], [0], [1], [0, 0, 1, 1], [], []>} : vector<1x16xf32>, vector<16x128xf32>, vector<1x128xf32> -> vector<1x128xf32>
    %124 = arith.addf %118, %123 : vector<1x128xf32>
    %c3_141 = arith.constant 3 : index
    %c0_142 = arith.constant 0 : index
    %c0_143 = arith.constant 0 : index
    %125 = vector.load %arg16[%c3_141, %c0_142, %c0_143] : memref<5x5x16xf32, #tpu.memory_space<vmem>>, vector<1x1x16xf32>
    %126 = vector.shape_cast %125 : vector<1x1x16xf32> to vector<1x16xf32>
    %c3_144 = arith.constant 3 : index
    %c0_145 = arith.constant 0 : index
    %c0_146 = arith.constant 0 : index
    %c0_147 = arith.constant 0 : index
    %127 = vector.load %arg6[%c3_144, %c0_145, %c0_146, %c0_147] : memref<5x5x16x128xf32, #tpu.memory_space<vmem>>, vector<1x1x16x128xf32>
    %128 = vector.shape_cast %127 : vector<1x1x16x128xf32> to vector<16x128xf32>
    %cst_148 = arith.constant dense<0.000000e+00> : vector<1x128xf32>
    %129 = tpu.matmul %126, %128, %cst_148 {dimension_numbers = #tpu.dot_dimension_numbers<[1], [0], [0], [1], [0, 0, 1, 1], [], []>} : vector<1x16xf32>, vector<16x128xf32>, vector<1x128xf32> -> vector<1x128xf32>
    %130 = arith.addf %124, %129 : vector<1x128xf32>
    %c3_149 = arith.constant 3 : index
    %c1_150 = arith.constant 1 : index
    %c0_151 = arith.constant 0 : index
    %131 = vector.load %arg16[%c3_149, %c1_150, %c0_151] : memref<5x5x16xf32, #tpu.memory_space<vmem>>, vector<1x1x16xf32>
    %132 = vector.shape_cast %131 : vector<1x1x16xf32> to vector<1x16xf32>
    %c3_152 = arith.constant 3 : index
    %c1_153 = arith.constant 1 : index
    %c0_154 = arith.constant 0 : index
    %c0_155 = arith.constant 0 : index
    %133 = vector.load %arg6[%c3_152, %c1_153, %c0_154, %c0_155] : memref<5x5x16x128xf32, #tpu.memory_space<vmem>>, vector<1x1x16x128xf32>
    %134 = vector.shape_cast %133 : vector<1x1x16x128xf32> to vector<16x128xf32>
    %cst_156 = arith.constant dense<0.000000e+00> : vector<1x128xf32>
    %135 = tpu.matmul %132, %134, %cst_156 {dimension_numbers = #tpu.dot_dimension_numbers<[1], [0], [0], [1], [0, 0, 1, 1], [], []>} : vector<1x16xf32>, vector<16x128xf32>, vector<1x128xf32> -> vector<1x128xf32>
    %136 = arith.addf %130, %135 : vector<1x128xf32>
    %c3_157 = arith.constant 3 : index
    %c2_158 = arith.constant 2 : index
    %c0_159 = arith.constant 0 : index
    %137 = vector.load %arg16[%c3_157, %c2_158, %c0_159] : memref<5x5x16xf32, #tpu.memory_space<vmem>>, vector<1x1x16xf32>
    %138 = vector.shape_cast %137 : vector<1x1x16xf32> to vector<1x16xf32>
    %c3_160 = arith.constant 3 : index
    %c2_161 = arith.constant 2 : index
    %c0_162 = arith.constant 0 : index
    %c0_163 = arith.constant 0 : index
    %139 = vector.load %arg6[%c3_160, %c2_161, %c0_162, %c0_163] : memref<5x5x16x128xf32, #tpu.memory_space<vmem>>, vector<1x1x16x128xf32>
    %140 = vector.shape_cast %139 : vector<1x1x16x128xf32> to vector<16x128xf32>
    %cst_164 = arith.constant dense<0.000000e+00> : vector<1x128xf32>
    %141 = tpu.matmul %138, %140, %cst_164 {dimension_numbers = #tpu.dot_dimension_numbers<[1], [0], [0], [1], [0, 0, 1, 1], [], []>} : vector<1x16xf32>, vector<16x128xf32>, vector<1x128xf32> -> vector<1x128xf32>
    %142 = arith.addf %136, %141 : vector<1x128xf32>
    %c3_165 = arith.constant 3 : index
    %c3_166 = arith.constant 3 : index
    %c0_167 = arith.constant 0 : index
    %143 = vector.load %arg16[%c3_165, %c3_166, %c0_167] : memref<5x5x16xf32, #tpu.memory_space<vmem>>, vector<1x1x16xf32>
    %144 = vector.shape_cast %143 : vector<1x1x16xf32> to vector<1x16xf32>
    %c3_168 = arith.constant 3 : index
    %c3_169 = arith.constant 3 : index
    %c0_170 = arith.constant 0 : index
    %c0_171 = arith.constant 0 : index
    %145 = vector.load %arg6[%c3_168, %c3_169, %c0_170, %c0_171] : memref<5x5x16x128xf32, #tpu.memory_space<vmem>>, vector<1x1x16x128xf32>
    %146 = vector.shape_cast %145 : vector<1x1x16x128xf32> to vector<16x128xf32>
    %cst_172 = arith.constant dense<0.000000e+00> : vector<1x128xf32>
    %147 = tpu.matmul %144, %146, %cst_172 {dimension_numbers = #tpu.dot_dimension_numbers<[1], [0], [0], [1], [0, 0, 1, 1], [], []>} : vector<1x16xf32>, vector<16x128xf32>, vector<1x128xf32> -> vector<1x128xf32>
    %148 = arith.addf %142, %147 : vector<1x128xf32>
    %c3_173 = arith.constant 3 : index
    %c4_174 = arith.constant 4 : index
    %c0_175 = arith.constant 0 : index
    %149 = vector.load %arg16[%c3_173, %c4_174, %c0_175] : memref<5x5x16xf32, #tpu.memory_space<vmem>>, vector<1x1x16xf32>
    %150 = vector.shape_cast %149 : vector<1x1x16xf32> to vector<1x16xf32>
    %c3_176 = arith.constant 3 : index
    %c4_177 = arith.constant 4 : index
    %c0_178 = arith.constant 0 : index
    %c0_179 = arith.constant 0 : index
    %151 = vector.load %arg6[%c3_176, %c4_177, %c0_178, %c0_179] : memref<5x5x16x128xf32, #tpu.memory_space<vmem>>, vector<1x1x16x128xf32>
    %152 = vector.shape_cast %151 : vector<1x1x16x128xf32> to vector<16x128xf32>
    %cst_180 = arith.constant dense<0.000000e+00> : vector<1x128xf32>
    %153 = tpu.matmul %150, %152, %cst_180 {dimension_numbers = #tpu.dot_dimension_numbers<[1], [0], [0], [1], [0, 0, 1, 1], [], []>} : vector<1x16xf32>, vector<16x128xf32>, vector<1x128xf32> -> vector<1x128xf32>
    %154 = arith.addf %148, %153 : vector<1x128xf32>
    %c4_181 = arith.constant 4 : index
    %c0_182 = arith.constant 0 : index
    %c0_183 = arith.constant 0 : index
    %155 = vector.load %arg16[%c4_181, %c0_182, %c0_183] : memref<5x5x16xf32, #tpu.memory_space<vmem>>, vector<1x1x16xf32>
    %156 = vector.shape_cast %155 : vector<1x1x16xf32> to vector<1x16xf32>
    %c4_184 = arith.constant 4 : index
    %c0_185 = arith.constant 0 : index
    %c0_186 = arith.constant 0 : index
    %c0_187 = arith.constant 0 : index
    %157 = vector.load %arg6[%c4_184, %c0_185, %c0_186, %c0_187] : memref<5x5x16x128xf32, #tpu.memory_space<vmem>>, vector<1x1x16x128xf32>
    %158 = vector.shape_cast %157 : vector<1x1x16x128xf32> to vector<16x128xf32>
    %cst_188 = arith.constant dense<0.000000e+00> : vector<1x128xf32>
    %159 = tpu.matmul %156, %158, %cst_188 {dimension_numbers = #tpu.dot_dimension_numbers<[1], [0], [0], [1], [0, 0, 1, 1], [], []>} : vector<1x16xf32>, vector<16x128xf32>, vector<1x128xf32> -> vector<1x128xf32>
    %160 = arith.addf %154, %159 : vector<1x128xf32>
    %c4_189 = arith.constant 4 : index
    %c1_190 = arith.constant 1 : index
    %c0_191 = arith.constant 0 : index
    %161 = vector.load %arg16[%c4_189, %c1_190, %c0_191] : memref<5x5x16xf32, #tpu.memory_space<vmem>>, vector<1x1x16xf32>
    %162 = vector.shape_cast %161 : vector<1x1x16xf32> to vector<1x16xf32>
    %c4_192 = arith.constant 4 : index
    %c1_193 = arith.constant 1 : index
    %c0_194 = arith.constant 0 : index
    %c0_195 = arith.constant 0 : index
    %163 = vector.load %arg6[%c4_192, %c1_193, %c0_194, %c0_195] : memref<5x5x16x128xf32, #tpu.memory_space<vmem>>, vector<1x1x16x128xf32>
    %164 = vector.shape_cast %163 : vector<1x1x16x128xf32> to vector<16x128xf32>
    %cst_196 = arith.constant dense<0.000000e+00> : vector<1x128xf32>
    %165 = tpu.matmul %162, %164, %cst_196 {dimension_numbers = #tpu.dot_dimension_numbers<[1], [0], [0], [1], [0, 0, 1, 1], [], []>} : vector<1x16xf32>, vector<16x128xf32>, vector<1x128xf32> -> vector<1x128xf32>
    %166 = arith.addf %160, %165 : vector<1x128xf32>
    %c4_197 = arith.constant 4 : index
    %c2_198 = arith.constant 2 : index
    %c0_199 = arith.constant 0 : index
    %167 = vector.load %arg16[%c4_197, %c2_198, %c0_199] : memref<5x5x16xf32, #tpu.memory_space<vmem>>, vector<1x1x16xf32>
    %168 = vector.shape_cast %167 : vector<1x1x16xf32> to vector<1x16xf32>
    %c4_200 = arith.constant 4 : index
    %c2_201 = arith.constant 2 : index
    %c0_202 = arith.constant 0 : index
    %c0_203 = arith.constant 0 : index
    %169 = vector.load %arg6[%c4_200, %c2_201, %c0_202, %c0_203] : memref<5x5x16x128xf32, #tpu.memory_space<vmem>>, vector<1x1x16x128xf32>
    %170 = vector.shape_cast %169 : vector<1x1x16x128xf32> to vector<16x128xf32>
    %cst_204 = arith.constant dense<0.000000e+00> : vector<1x128xf32>
    %171 = tpu.matmul %168, %170, %cst_204 {dimension_numbers = #tpu.dot_dimension_numbers<[1], [0], [0], [1], [0, 0, 1, 1], [], []>} : vector<1x16xf32>, vector<16x128xf32>, vector<1x128xf32> -> vector<1x128xf32>
    %172 = arith.addf %166, %171 : vector<1x128xf32>
    %c4_205 = arith.constant 4 : index
    %c3_206 = arith.constant 3 : index
    %c0_207 = arith.constant 0 : index
    %173 = vector.load %arg16[%c4_205, %c3_206, %c0_207] : memref<5x5x16xf32, #tpu.memory_space<vmem>>, vector<1x1x16xf32>
    %174 = vector.shape_cast %173 : vector<1x1x16xf32> to vector<1x16xf32>
    %c4_208 = arith.constant 4 : index
    %c3_209 = arith.constant 3 : index
    %c0_210 = arith.constant 0 : index
    %c0_211 = arith.constant 0 : index
    %175 = vector.load %arg6[%c4_208, %c3_209, %c0_210, %c0_211] : memref<5x5x16x128xf32, #tpu.memory_space<vmem>>, vector<1x1x16x128xf32>
    %176 = vector.shape_cast %175 : vector<1x1x16x128xf32> to vector<16x128xf32>
    %cst_212 = arith.constant dense<0.000000e+00> : vector<1x128xf32>
    %177 = tpu.matmul %174, %176, %cst_212 {dimension_numbers = #tpu.dot_dimension_numbers<[1], [0], [0], [1], [0, 0, 1, 1], [], []>} : vector<1x16xf32>, vector<16x128xf32>, vector<1x128xf32> -> vector<1x128xf32>
    %178 = arith.addf %172, %177 : vector<1x128xf32>
    %c4_213 = arith.constant 4 : index
    %c4_214 = arith.constant 4 : index
    %c0_215 = arith.constant 0 : index
    %179 = vector.load %arg16[%c4_213, %c4_214, %c0_215] : memref<5x5x16xf32, #tpu.memory_space<vmem>>, vector<1x1x16xf32>
    %180 = vector.shape_cast %179 : vector<1x1x16xf32> to vector<1x16xf32>
    %c4_216 = arith.constant 4 : index
    %c4_217 = arith.constant 4 : index
    %c0_218 = arith.constant 0 : index
    %c0_219 = arith.constant 0 : index
    %181 = vector.load %arg6[%c4_216, %c4_217, %c0_218, %c0_219] : memref<5x5x16x128xf32, #tpu.memory_space<vmem>>, vector<1x1x16x128xf32>
    %182 = vector.shape_cast %181 : vector<1x1x16x128xf32> to vector<16x128xf32>
    %cst_220 = arith.constant dense<0.000000e+00> : vector<1x128xf32>
    %183 = tpu.matmul %180, %182, %cst_220 {dimension_numbers = #tpu.dot_dimension_numbers<[1], [0], [0], [1], [0, 0, 1, 1], [], []>} : vector<1x16xf32>, vector<16x128xf32>, vector<1x128xf32> -> vector<1x128xf32>
    %184 = arith.addf %178, %183 : vector<1x128xf32>
    %cst_221 = arith.constant 0.000000e+00 : f32
    %185 = vector.broadcast %cst_221 : f32 to vector<1x128xf32>
    %186 = arith.maximumf %184, %185 : vector<1x128xf32>
    %c0_222 = arith.constant 0 : index
    %c0_223 = arith.constant 0 : index
    %187 = vector.load %arg8[%c0_222, %c0_223] : memref<128x128xf32, #tpu.memory_space<vmem>>, vector<128x128xf32>
    %cst_224 = arith.constant dense<0.000000e+00> : vector<1x128xf32>
    %188 = tpu.matmul %186, %187, %cst_224 {dimension_numbers = #tpu.dot_dimension_numbers<[1], [0], [0], [1], [0, 0, 1, 1], [], []>} : vector<1x128xf32>, vector<128x128xf32>, vector<1x128xf32> -> vector<1x128xf32>
    %c0_225 = arith.constant 0 : index
    %c0_226 = arith.constant 0 : index
    %189 = vector.load %arg9[%c0_225, %c0_226] : memref<1x128xf32, #tpu.memory_space<vmem>>, vector<1x128xf32>
    %190 = arith.addf %188, %189 : vector<1x128xf32>
    %cst_227 = arith.constant 0.000000e+00 : f32
    %191 = vector.broadcast %cst_227 : f32 to vector<1x128xf32>
    %192 = arith.maximumf %190, %191 : vector<1x128xf32>
    %c0_228 = arith.constant 0 : index
    %c0_229 = arith.constant 0 : index
    %193 = vector.load %arg10[%c0_228, %c0_229] : memref<128x128xf32, #tpu.memory_space<vmem>>, vector<128x128xf32>
    %cst_230 = arith.constant dense<0.000000e+00> : vector<1x128xf32>
    %194 = tpu.matmul %192, %193, %cst_230 {dimension_numbers = #tpu.dot_dimension_numbers<[1], [0], [0], [1], [0, 0, 1, 1], [], []>} : vector<1x128xf32>, vector<128x128xf32>, vector<1x128xf32> -> vector<1x128xf32>
    %c0_231 = arith.constant 0 : index
    %c0_232 = arith.constant 0 : index
    %195 = vector.load %arg11[%c0_231, %c0_232] : memref<1x128xf32, #tpu.memory_space<vmem>>, vector<1x128xf32>
    %196 = arith.addf %194, %195 : vector<1x128xf32>
    %c0_233 = arith.constant 0 : index
    %c0_234 = arith.constant 0 : index
    %c0_235 = arith.constant 0 : index
    %197 = vector.load %arg12[%c0_233, %c0_234, %c0_235] : memref<1x1x128xf32, #tpu.memory_space<vmem>>, vector<1x1x128xf32>
    %198 = vector.shape_cast %197 : vector<1x1x128xf32> to vector<1x128xf32>
    %199 = vector.shape_cast %196 : vector<1x128xf32> to vector<1x1x128xf32>
    tpu.vector_store %arg12[%c0_233, %c0_234, %c0_235], %199 {strides = array<i32>} : memref<1x1x128xf32, #tpu.memory_space<vmem>>, vector<1x1x128xf32>,
    return
  }
  func.func @transform_0(%arg0: i32) -> (i32, i32, i32, i32) {
    %c0_i32 = arith.constant 0 : i32
    %c0_i32_0 = arith.constant 0 : i32
    %c0_i32_1 = arith.constant 0 : i32
    %c0_i32_2 = arith.constant 0 : i32
    return %arg0, %c0_i32, %c0_i32_0, %c0_i32_1 : i32, i32, i32, i32
  }
  func.func @transform_1(%arg0: i32) -> (i32, i32, i32, i32) {
    %c0_i32 = arith.constant 0 : i32
    %c0_i32_0 = arith.constant 0 : i32
    %c0_i32_1 = arith.constant 0 : i32
    %c0_i32_2 = arith.constant 0 : i32
    %c0_i32_3 = arith.constant 0 : i32
    return %c0_i32, %c0_i32_0, %c0_i32_1, %c0_i32_2 : i32, i32, i32, i32
  }
  func.func @transform_2(%arg0: i32) -> (i32, i32) {
    %c0_i32 = arith.constant 0 : i32
    %c0_i32_0 = arith.constant 0 : i32
    %c0_i32_1 = arith.constant 0 : i32
    return %c0_i32, %c0_i32_0 : i32, i32
  }
  func.func @transform_3(%arg0: i32) -> (i32, i32, i32, i32) {
    %c0_i32 = arith.constant 0 : i32
    %c0_i32_0 = arith.constant 0 : i32
    %c0_i32_1 = arith.constant 0 : i32
    %c0_i32_2 = arith.constant 0 : i32
    %c0_i32_3 = arith.constant 0 : i32
    return %c0_i32, %c0_i32_0, %c0_i32_1, %c0_i32_2 : i32, i32, i32, i32
  }
  func.func @transform_4(%arg0: i32) -> (i32, i32) {
    %c0_i32 = arith.constant 0 : i32
    %c0_i32_0 = arith.constant 0 : i32
    %c0_i32_1 = arith.constant 0 : i32
    return %c0_i32, %c0_i32_0 : i32, i32
  }
  func.func @transform_5(%arg0: i32) -> (i32, i32, i32, i32) {
    %c0_i32 = arith.constant 0 : i32
    %c0_i32_0 = arith.constant 0 : i32
    %c0_i32_1 = arith.constant 0 : i32
    %c0_i32_2 = arith.constant 0 : i32
    %c0_i32_3 = arith.constant 0 : i32
    return %c0_i32, %c0_i32_0, %c0_i32_1, %c0_i32_2 : i32, i32, i32, i32
  }
  func.func @transform_6(%arg0: i32) -> (i32, i32) {
    %c0_i32 = arith.constant 0 : i32
    %c0_i32_0 = arith.constant 0 : i32
    %c0_i32_1 = arith.constant 0 : i32
    return %c0_i32, %c0_i32_0 : i32, i32
  }
  func.func @transform_7(%arg0: i32) -> (i32, i32) {
    %c0_i32 = arith.constant 0 : i32
    %c0_i32_0 = arith.constant 0 : i32
    %c0_i32_1 = arith.constant 0 : i32
    return %c0_i32, %c0_i32_0 : i32, i32
  }
  func.func @transform_8(%arg0: i32) -> (i32, i32) {
    %c0_i32 = arith.constant 0 : i32
    %c0_i32_0 = arith.constant 0 : i32
    %c0_i32_1 = arith.constant 0 : i32
    return %c0_i32, %c0_i32_0 : i32, i32
  }
  func.func @transform_9(%arg0: i32) -> (i32, i32) {
    %c0_i32 = arith.constant 0 : i32
    %c0_i32_0 = arith.constant 0 : i32
    %c0_i32_1 = arith.constant 0 : i32
    return %c0_i32, %c0_i32_0 : i32, i32
  }
  func.func @transform_10(%arg0: i32) -> (i32, i32) {
    %c0_i32 = arith.constant 0 : i32
    %c0_i32_0 = arith.constant 0 : i32
    %c0_i32_1 = arith.constant 0 : i32
    return %c0_i32, %c0_i32_0 : i32, i32
  }
  func.func @transform_11(%arg0: i32) -> (i32, i32, i32) {
    %c0_i32 = arith.constant 0 : i32
    %c0_i32_0 = arith.constant 0 : i32
    %c0_i32_1 = arith.constant 0 : i32
    return %arg0, %c0_i32, %c0_i32_0 : i32, i32, i32
  }
}

</mosaic_0001>

<bundles_post_ra>
// kernel: net_forward.1
= control target key start
LH: loop header
LB: loop body
LE: loop exit
PB: predicated region body
PF: predicated region fallthrough
CT: control target
= control target key end

     0   :  { %s10931_s0 = inlined_call_operand.vmem [shape: f32[2,32,32,3], index: 0, kind: input, shape index: {}]   ;;  %s10932_s1 = inlined_call_operand.vmem [shape: f32[5,5,3,6], index: 1, kind: input, shape index: {}]   ;;  %s10933_s2 = inlined_call_operand.vmem [shape: f32[1,6], index: 2, kind: input, shape index: {}]   ;;  %s10934_s3 = inlined_call_operand.vmem [shape: f32[5,5,6,16], index: 3, kind: input, shape index: {}]   ;;  %s10935_s4 = inlined_call_operand.vmem [shape: f32[1,16], index: 4, kind: input, shape index: {}]   ;;  %s10936_s5 = inlined_call_operand.vmem [shape: f32[5,5,16,128], index: 5, kind: input, shape index: {}]   ;;  %s10937_s6 = inlined_call_operand.vmem [shape: f32[1,128], index: 6, kind: input, shape index: {}]   ;;  %s10938_s7 = inlined_call_operand.vmem [shape: f32[128,128], index: 7, kind: input, shape index: {}]   ;;  %s10939_s8 = inlined_call_operand.vmem [shape: f32[1,128], index: 8, kind: input, shape index: {}]   ;;  %s10940_s9 = inlined_call_operand.vmem [shape: f32[128,128], index: 9, kind: input, shape index: {}]   ;;  %s10941_s10 = inlined_call_operand.vmem [shape: f32[1,128], index: 10, kind: input, shape index: {}]   ;;  %s10942_s11 = inlined_call_operand.hbm [shape: f32[2,1,128], index: 11, kind: output, shape index: {}]  }
   0x1   :  { %10944 = sst [smem:[#allocation9_spill]] %s10931_s0 }
   0x2   :  { %16 = vsyncpa [#allocation7], 0 }
   0x3   :  { %18 = vsyncpa [#allocation7 + $0x1], 0  ;;  %s9772_s17 = smov 0   ;;  %s9774_s18 = smov 0  }
   0x4   :  { %s9776_s19 = smov 0   ;;  %s9778_s20 = smov 0  }
   0x5 LB: > { %s9793_s21 = sadd.s32 4294967295, %s9689_s20   ;;  %s8110_s22 = sadd.s32 4294967294, %s9689_s20   ;;  %s9689_s20 = sphi %s9778_s20, %s10952_s20   ;;  %s9685_s19 = sphi %s9776_s19, %s10951_s19   ;;  %s9681_s18 = sphi %s9774_s18, %s10950_s18   ;;  %s9677_s17 = sphi %s9772_s17, %s10949_s17  }
   0x6   : > { %s9797_s23 = sadd.s32 1, %s9689_s20   ;;  %s267_s24 = sadd.s32 1, %s9685_s19 }
   0x7   : > { %s264_s25 = ssub.s32 %s9689_s20, %s9797_s23  ;;  %p277_p0 = scmp.ne.s32.totalorder %s9685_s19, %s9681_s18 }
   0x8   : > { %p265_p1 = scmp.eq.s32.totalorder %s264_s25, 0  ;;  %p278_p2 = scmp.eq.s32.totalorder %s9793_s21, 1 }
   0x9   : > { %p283_p3 = scmp.ne.s32.totalorder %s9681_s18, %s9677_s17  ;;  %p284_p4 = scmp.eq.s32.totalorder %s8110_s22, 1 }
   0xa   : > { %s9808_s26 = scalar_select %p265_p1, %s9685_s19, %s267_s24  }
   0xb   : > { %p9810_p5 = por %p278_p2, %p277_p0  ;;  %p9814_p6 = por %p284_p4, %p283_p3 }
   0xc   : > { %p8113_p7 = scmp.ge.s32.totalorder %s9689_s20, 1  ;;  %p340_p8 = scmp.lt.s32.totalorder %s9689_s20, 3 }
   0xe   : > { %p341_p9 = pnand %p8113_p7, %p340_p8 }
   0xf   : > { %s10943_s29 = sand.u32 (!%p341_p9), 1, %s9681_s18   ;;  %p379_p10 = scmp.lt.s32.totalorder (!%p341_p9), %s9793_s21, 1 }
  0x10   : > { %344 = sbr.rel (%p341_p9) target bundleno = 1690 (0x69a), region = 64  ;;  %s10947_s0 = sld [smem:[#allocation9_spill]] (!%p341_p9) }
  0x11   : > { %s9835_s24 = scalar_lea.vmem (!%p341_p9), [#allocation6], %s10943_s29  ;;  %s9837_s25 = smov (!%p341_p9), 0  }
  0x15   : > { %v9825_v0 = vld [vmem:[%s10933_s2] ss:$0 sm:$0xff]  ;;  %s380_s13 = scalar_select %p379_p10, %s9793_s21, 1 }
  0x17   : > { %s8598_s14 = sshll.u32 %s380_s13, 10 }
  0x18   : > { %s9831_s22 = scalar_lea.vmem %s10947_s0, %s8598_s14 }
  0x19 LB: >> { %v8117_v1 = vld [vmem:[%s10932_s1 + $0x4] sm:$0x7]  ;;  %vm417_vm0 = vcmask 1042432   ;;  %v397_v2 = vld [vmem:[%s10932_s1] sm:$0x7]  ;;  %s8116_s30 = sshll.u32 %s9693_s25, 5  ;;  %s9693_s25 = sphi %s9837_s25, %s390_s25  }
  0x1a   : >> { %9536 = vmatprep.subr.msk.mxu1 %vm417_vm0, %v8117_v1  ;;  %8930 = vmatprep.subr.msk.mxu0 %vm417_vm0, %v8117_v1  ;;  %v8128_v3 = vld [vmem:[%s10932_s1 + $0x8] sm:$0x7]  ;;  %vm404_vm1 = vcmask 23552   ;;  %s9859_s12 = scalar_lea.vmem %s9831_s22, %s8116_s30  ;;  %v8134_v10 = vld [vmem:[%s10932_s1 + $0xc] sm:$0x7]  ;;  %vm3163_vm2 = vcmask 48128  }
  0x1b   : >> { %9537 = vmatpush3.msk.msra.mxu1 %vm417_vm0, %v8117_v1  ;;  %8931 = vmatpush3.msk.msra.mxu0 %vm417_vm0, %v8117_v1  ;;  %v398_v4 = vld [vmem:[%s9859_s12 + $0x1] sm:$0xff]  ;;  %v400_v5 = vld [vmem:[%s9859_s12 + $0x11] sm:$0xff]  ;;  %v399_v6 = vld [vmem:[%s9859_s12 + $0x9] sm:$0xff]  ;;  %vm3167_vm3 = vcmask 44032   ;;  %s390_s25 = sadd.s32 1, %s9693_s25  }
  0x1c   : >> { %8938 = vmatprep.subr.msk.mxu1 %vm417_vm0, %v397_v2  ;;  %8946 = vmatprep.subr.msk.mxu0 %vm417_vm0, %v8128_v3  ;;  %v401_v7 = vld [vmem:[%s9859_s12 + $0x19] sm:$0xf]  ;;  %v393_v8 = vld [vmem:[%s9859_s12] sm:$0xff]  ;;  %v8140_v11 = vld [vmem:[%s10932_s1 + $0x10] sm:$0x7]  ;;  %p387_p11 = scmp.ge.s32.totalorder %s390_s25, 28  }
  0x1d   : >> { %8932 = vmatprep.mubr.msk.f32.mxu0 %vm404_vm1, %v398_v4  ;;  %8935 = vmatprep.mubr.msk.f32.mxu1 %vm404_vm1, %v400_v5  ;;  %v606_v9 = vld [vmem:[%s9859_s12 + $0x2] sm:$0xff]  ;;  %v607_v13 = vld [vmem:[%s9859_s12 + $0xa] sm:$0xff]  ;;  %v608_v15 = vld [vmem:[%s9859_s12 + $0x12] sm:$0xff]  ;;  %s10195_s22 = smov (%p387_p11), 0  }
  0x1e   : >> { %8933 = vmatmul.mubr.msk.f32.vlgmr.msra.gmra.mxu0 %vm404_vm1, %v399_v6  ;;  %8936 = vmatmul.mubr.msk.f32.vlgmr.msra.gmra.mxu1 %vm404_vm1, %v401_v7  ;;  %v394_v12 = vld [vmem:[%s9859_s12 + $0x8] sm:$0xff]  ;;  %v395_v14 = vld [vmem:[%s9859_s12 + $0x10] sm:$0xff]  ;;  %v8161_v17 = vld [vmem:[%s10932_s1 + $0x18] sm:$0x7] }
  0x1f   : >> { %8939 = vmatpush3.msk.msra.mxu1 %vm417_vm0, %v397_v2  ;;  %8947 = vmatpush3.msk.msra.mxu0 %vm417_vm0, %v8128_v3  ;;  %v8151_v16 = vld [vmem:[%s10932_s1 + $0x14] sm:$0x7]  ;;  %v396_v18 = vld [vmem:[%s9859_s12 + $0x18] sm:$0xf]  ;;  %v716_v20 = vld [vmem:[%s9859_s12 + $0x3] sm:$0xff] }
  0x20   : >> { %8940 = vmatprep.mubr.msk.f32.mxu1 %vm404_vm1, %v393_v8  ;;  %8948 = vmatprep.mubr.msk.f32.mxu0 %vm404_vm1, %v606_v9  ;;  %v609_v19 = vld [vmem:[%s9859_s12 + $0x1a] sm:$0xf]  ;;  %v826_v21 = vld [vmem:[%s9859_s12 + $0x4] sm:$0xff]  ;;  %v827_v23 = vld [vmem:[%s9859_s12 + $0xc] sm:$0xff] }
  0x21   : >> { %8954 = vmatprep.subr.msk.mxu1 %vm417_vm0, %v8134_v10  ;;  %8962 = vmatprep.subr.msk.mxu0 %vm417_vm0, %v8140_v11  ;;  %v717_v22 = vld [vmem:[%s9859_s12 + $0xb] sm:$0xff]  ;;  %v718_v24 = vld [vmem:[%s9859_s12 + $0x13] sm:$0xff]  ;;  %v8171_v26 = vld [vmem:[%s10932_s1 + $0x1c] sm:$0x7] }
  0x22   : >> { %8941 = vmatmul.mubr.msk.f32.vlgmr.msra.gmra.mxu1 %vm404_vm1, %v394_v12  ;;  %8949 = vmatmul.mubr.msk.f32.vlgmr.msra.gmra.mxu0 %vm404_vm1, %v607_v13  ;;  %v828_v25 = vld [vmem:[%s9859_s12 + $0x14] sm:$0xff]  ;;  %v8181_v27 = vld [vmem:[%s10932_s1 + $0x20] sm:$0x7]  ;;  %v829_v29 = vld [vmem:[%s9859_s12 + $0x1c] sm:$0xf] }
  0x23   : >> { %8955 = vmatpush3.msk.msra.mxu1 %vm417_vm0, %v8134_v10  ;;  %8963 = vmatpush3.msk.msra.mxu0 %vm417_vm0, %v8140_v11  ;;  %v719_v28 = vld [vmem:[%s9859_s12 + $0x1b] sm:$0xf]  ;;  %v8147_v30 = vld [vmem:[%s9859_s12 + $0x20] sm:$0xff]  ;;  %v8148_v32 = vld [vmem:[%s9859_s12 + $0x28] sm:$0xff] }
  0x24   : >> { %8943 = vmatprep.mubr.msk.f32.mxu1 %vm404_vm1, %v395_v14  ;;  %8951 = vmatprep.mubr.msk.f32.mxu0 %vm404_vm1, %v608_v15  ;;  %v8157_v31 = vld [vmem:[%s9859_s12 + $0x21] sm:$0xff]  ;;  %v8158_v33 = vld [vmem:[%s9859_s12 + $0x29] sm:$0xff]  ;;  %v8159_v35 = vld [vmem:[%s9859_s12 + $0x31] sm:$0xff] }
  0x25   : >> { %8970 = vmatprep.subr.msk.mxu1 %vm417_vm0, %v8151_v16  ;;  %8978 = vmatprep.subr.msk.mxu0 %vm417_vm0, %v8161_v17  ;;  %v8149_v34 = vld [vmem:[%s9859_s12 + $0x30] sm:$0xff]  ;;  %v8191_v36 = vld [vmem:[%s10932_s1 + $0x24] sm:$0x7]  ;;  %v8202_v37 = vld [vmem:[%s10932_s1 + $0x28] sm:$0x7] }
  0x26   : >> { %8944 = vmatmul.mubr.msk.f32.gmra.mxu1 %vm404_vm1, %v396_v18  ;;  %8952 = vmatmul.mubr.msk.f32.gmra.mxu0 %vm404_vm1, %v609_v19  ;;  %v8150_v38 = vld [vmem:[%s9859_s12 + $0x38] sm:$0xf]  ;;  %v8167_v40 = vld [vmem:[%s9859_s12 + $0x22] sm:$0xff]  ;;  %v8168_v42 = vld [vmem:[%s9859_s12 + $0x2a] sm:$0xff] }
  0x27   : >> { %8956 = vmatprep.mubr.msk.f32.mxu1 %vm404_vm1, %v716_v20  ;;  %8964 = vmatprep.mubr.msk.f32.mxu0 %vm404_vm1, %v826_v21  ;;  %v8160_v39 = vld [vmem:[%s9859_s12 + $0x39] sm:$0xf]  ;;  %v8177_v41 = vld [vmem:[%s9859_s12 + $0x23] sm:$0xff]  ;;  %v8178_v43 = vld [vmem:[%s9859_s12 + $0x2b] sm:$0xff] }
  0x28   : >> { %v8169_v44 = vld [vmem:[%s9859_s12 + $0x32] sm:$0xff]  ;;  %v8212_v46 = vld [vmem:[%s10932_s1 + $0x2c] sm:$0x7]  ;;  %v8170_v48 = vld [vmem:[%s9859_s12 + $0x3a] sm:$0xf] }
  0x29   : >> { %v8179_v45 = vld [vmem:[%s9859_s12 + $0x33] sm:$0xff]  ;;  %v8222_v47 = vld [vmem:[%s10932_s1 + $0x30] sm:$0x7]  ;;  %v8180_v49 = vld [vmem:[%s9859_s12 + $0x3b] sm:$0xf] }
  0x2a   : >> { %8957 = vmatmul.mubr.msk.f32.vlgmr.msra.gmra.mxu1 %vm404_vm1, %v717_v22  ;;  %8965 = vmatmul.mubr.msk.f32.vlgmr.msra.gmra.mxu0 %vm404_vm1, %v827_v23  ;;  %v8187_v50 = vld [vmem:[%s9859_s12 + $0x24] sm:$0xff]  ;;  %v8188_v52 = vld [vmem:[%s9859_s12 + $0x2c] sm:$0xff]  ;;  %v8189_v54 = vld [vmem:[%s9859_s12 + $0x34] sm:$0xff] }
  0x2b   : >> { %8971 = vmatpush3.msk.msra.mxu1 %vm417_vm0, %v8151_v16  ;;  %8979 = vmatpush3.msk.msra.mxu0 %vm417_vm0, %v8161_v17  ;;  %v8198_v51 = vld [vmem:[%s9859_s12 + $0x40] sm:$0xff]  ;;  %v8199_v53 = vld [vmem:[%s9859_s12 + $0x48] sm:$0xff]  ;;  %v8200_v55 = vld [vmem:[%s9859_s12 + $0x50] sm:$0xff] }
  0x2c   : >> { %8959 = vmatprep.mubr.msk.f32.mxu1 %vm404_vm1, %v718_v24  ;;  %8967 = vmatprep.mubr.msk.f32.mxu0 %vm404_vm1, %v828_v25  ;;  %v8232_v56 = vld [vmem:[%s10932_s1 + $0x34] sm:$0x7]  ;;  %v8242_v57 = vld [vmem:[%s10932_s1 + $0x38] sm:$0x7]  ;;  %v8190_v58 = vld [vmem:[%s9859_s12 + $0x3c] sm:$0xf] }
  0x2d   : >> { %8986 = vmatprep.subr.msk.mxu1 %vm417_vm0, %v8171_v26  ;;  %8994 = vmatprep.subr.msk.mxu0 %vm417_vm0, %v8181_v27  ;;  %v8201_v59 = vld [vmem:[%s9859_s12 + $0x58] sm:$0xf]  ;;  %v8208_v60 = vld [vmem:[%s9859_s12 + $0x41] sm:$0xff]  ;;  %v8209_v62 = vld [vmem:[%s9859_s12 + $0x49] sm:$0xff] }
  0x2e   : >> { %8960 = vmatmul.mubr.msk.f32.gmra.mxu1 %vm404_vm1, %v719_v28  ;;  %8968 = vmatmul.mubr.msk.f32.gmra.mxu0 %vm404_vm1, %v829_v29  ;;  %v8218_v61 = vld [vmem:[%s9859_s12 + $0x42] sm:$0xff]  ;;  %v8219_v63 = vld [vmem:[%s9859_s12 + $0x4a] sm:$0xff]  ;;  %v8220_v2 = vld [vmem:[%s9859_s12 + $0x52] sm:$0xff] }
  0x2f   : >> { %8972 = vmatprep.mubr.msk.f32.mxu1 %vm404_vm1, %v8147_v30  ;;  %8980 = vmatprep.mubr.msk.f32.mxu0 %vm404_vm1, %v8157_v31  ;;  %v8210_v1 = vld [vmem:[%s9859_s12 + $0x51] sm:$0xff]  ;;  %v8253_v3 = vld [vmem:[%s10932_s1 + $0x3c] sm:$0x7]  ;;  %v8263_v4 = vld [vmem:[%s10932_s1 + $0x40] sm:$0x7] }
  0x30   : >> { %v8211_v5 = vld [vmem:[%s9859_s12 + $0x59] sm:$0xf]  ;;  %v8228_v7 = vld [vmem:[%s9859_s12 + $0x43] sm:$0xff]  ;;  %v8229_v9 = vld [vmem:[%s9859_s12 + $0x4b] sm:$0xff] }
  0x31   : >> { %v8221_v6 = vld [vmem:[%s9859_s12 + $0x5a] sm:$0xf]  ;;  %v8238_v8 = vld [vmem:[%s9859_s12 + $0x44] sm:$0xff]  ;;  %v8239_v10 = vld [vmem:[%s9859_s12 + $0x4c] sm:$0xff] }
  0x32   : >> { %8973 = vmatmul.mubr.msk.f32.vlgmr.msra.gmra.mxu1 %vm404_vm1, %v8148_v32  ;;  %8981 = vmatmul.mubr.msk.f32.vlgmr.msra.gmra.mxu0 %vm404_vm1, %v8158_v33  ;;  %v8230_v11 = vld [vmem:[%s9859_s12 + $0x53] sm:$0xff]  ;;  %v8273_v13 = vld [vmem:[%s10932_s1 + $0x44] sm:$0x7]  ;;  %v8283_v14 = vld [vmem:[%s10932_s1 + $0x48] sm:$0x7] }
  0x33   : >> { %8987 = vmatpush3.msk.msra.mxu1 %vm417_vm0, %v8171_v26  ;;  %8995 = vmatpush3.msk.msra.mxu0 %vm417_vm0, %v8181_v27  ;;  %v8240_v12 = vld [vmem:[%s9859_s12 + $0x54] sm:$0xff]  ;;  %v8241_v16 = vld [vmem:[%s9859_s12 + $0x5c] sm:$0xf]  ;;  %v8249_v17 = vld [vmem:[%s9859_s12 + $0x60] sm:$0xff] }
  0x34   : >> { %8975 = vmatprep.mubr.msk.f32.mxu1 %vm404_vm1, %v8149_v34  ;;  %8983 = vmatprep.mubr.msk.f32.mxu0 %vm404_vm1, %v8159_v35  ;;  %v8231_v15 = vld [vmem:[%s9859_s12 + $0x5b] sm:$0xf]  ;;  %v8259_v18 = vld [vmem:[%s9859_s12 + $0x61] sm:$0xff]  ;;  %v8260_v20 = vld [vmem:[%s9859_s12 + $0x69] sm:$0xff] }
  0x35   : >> { %9002 = vmatprep.subr.msk.mxu1 %vm417_vm0, %v8191_v36  ;;  %9010 = vmatprep.subr.msk.mxu0 %vm417_vm0, %v8202_v37  ;;  %v8250_v19 = vld [vmem:[%s9859_s12 + $0x68] sm:$0xff]  ;;  %v8251_v21 = vld [vmem:[%s9859_s12 + $0x70] sm:$0xff]  ;;  %v8252_v25 = vld [vmem:[%s9859_s12 + $0x78] sm:$0xf] }
  0x36   : >> { %8976 = vmatmul.mubr.msk.f32.gmra.mxu1 %vm404_vm1, %v8150_v38  ;;  %8984 = vmatmul.mubr.msk.f32.gmra.mxu0 %vm404_vm1, %v8160_v39  ;;  %v8261_v22 = vld [vmem:[%s9859_s12 + $0x71] sm:$0xff]  ;;  %v8293_v23 = vld [vmem:[%s10932_s1 + $0x4c] sm:$0x7]  ;;  %v8262_v26 = vld [vmem:[%s9859_s12 + $0x79] sm:$0xf] }
  0x37   : >> { %8988 = vmatprep.mubr.msk.f32.mxu1 %vm404_vm1, %v8167_v40  ;;  %8996 = vmatprep.mubr.msk.f32.mxu0 %vm404_vm1, %v8177_v41  ;;  %v8304_v24 = vld [vmem:[%s10932_s1 + $0x50] sm:$0x7]  ;;  %v8269_v27 = vld [vmem:[%s9859_s12 + $0x62] sm:$0xff]  ;;  %v8281_v32 = vld [vmem:[%s9859_s12 + $0x73] sm:$0xff] }
  0x38   : >> { %v8279_v28 = vld [vmem:[%s9859_s12 + $0x63] sm:$0xff]  ;;  %v8280_v30 = vld [vmem:[%s9859_s12 + $0x6b] sm:$0xff]  ;;  %v8314_v33 = vld [vmem:[%s10932_s1 + $0x54] sm:$0x7] }
  0x39   : >> { %v8270_v29 = vld [vmem:[%s9859_s12 + $0x6a] sm:$0xff]  ;;  %v8271_v31 = vld [vmem:[%s9859_s12 + $0x72] sm:$0xff]  ;;  %v8272_v35 = vld [vmem:[%s9859_s12 + $0x7a] sm:$0xf] }
  0x3a   : >> { %8989 = vmatmul.mubr.msk.f32.vlgmr.msra.gmra.mxu1 %vm404_vm1, %v8168_v42  ;;  %8997 = vmatmul.mubr.msk.f32.vlgmr.msra.gmra.mxu0 %vm404_vm1, %v8178_v43  ;;  %v8324_v34 = vld [vmem:[%s10932_s1 + $0x58] sm:$0x7]  ;;  %v8300_v38 = vld [vmem:[%s9859_s12 + $0x80] sm:$0xff]  ;;  %v8290_v39 = vld [vmem:[%s9859_s12 + $0x6c] sm:$0xff] }
  0x3b   : >> { %9003 = vmatpush3.msk.msra.mxu1 %vm417_vm0, %v8191_v36  ;;  %9011 = vmatpush3.msk.msra.mxu0 %vm417_vm0, %v8202_v37  ;;  %v8282_v36 = vld [vmem:[%s9859_s12 + $0x7b] sm:$0xf]  ;;  %v8289_v37 = vld [vmem:[%s9859_s12 + $0x64] sm:$0xff]  ;;  %v8302_v42 = vld [vmem:[%s9859_s12 + $0x90] sm:$0xff] }
  0x3c   : >> { %8991 = vmatprep.mubr.msk.f32.mxu1 %vm404_vm1, %v8169_v44  ;;  %8999 = vmatprep.mubr.msk.f32.mxu0 %vm404_vm1, %v8179_v45  ;;  %v8301_v40 = vld [vmem:[%s9859_s12 + $0x88] sm:$0xff]  ;;  %v8291_v41 = vld [vmem:[%s9859_s12 + $0x74] sm:$0xff]  ;;  %v8334_v43 = vld [vmem:[%s10932_s1 + $0x5c] sm:$0x7] }
  0x3d   : >> { %9018 = vmatprep.subr.msk.mxu1 %vm417_vm0, %v8212_v46  ;;  %9026 = vmatprep.subr.msk.mxu0 %vm417_vm0, %v8222_v47  ;;  %v8344_v44 = vld [vmem:[%s10932_s1 + $0x60] sm:$0x7]  ;;  %v8292_v45 = vld [vmem:[%s9859_s12 + $0x7c] sm:$0xf] }
  0x3e   : >> { %8992 = vmatmul.mubr.msk.f32.gmra.mxu1 %vm404_vm1, %v8170_v48  ;;  %9000 = vmatmul.mubr.msk.f32.gmra.mxu0 %vm404_vm1, %v8180_v49  ;;  %v8320_v48 = vld [vmem:[%s9859_s12 + $0x82] sm:$0xff] }
  0x3f   : >> { %9004 = vmatprep.mubr.msk.f32.mxu1 %vm404_vm1, %v8187_v50  ;;  %9012 = vmatprep.mubr.msk.f32.mxu0 %vm404_vm1, %v8198_v51  ;;  %v8311_v49 = vld [vmem:[%s9859_s12 + $0x89] sm:$0xff]  ;;  %v8312_v51 = vld [vmem:[%s9859_s12 + $0x91] sm:$0xff] }
  0x40   : >> { %v8321_v50 = vld [vmem:[%s9859_s12 + $0x8a] sm:$0xff] }
  0x42   : >> { %9005 = vmatmul.mubr.msk.f32.vlgmr.msra.gmra.mxu1 %vm404_vm1, %v8188_v52  ;;  %9013 = vmatmul.mubr.msk.f32.vlgmr.msra.gmra.mxu0 %vm404_vm1, %v8199_v53  ;;  %v8322_v52 = vld [vmem:[%s9859_s12 + $0x92] sm:$0xff] }
  0x43   : >> { %9019 = vmatpush3.msk.msra.mxu1 %vm417_vm0, %v8212_v46  ;;  %9027 = vmatpush3.msk.msra.mxu0 %vm417_vm0, %v8222_v47  ;;  %v8303_v46 = vld [vmem:[%s9859_s12 + $0x98] sm:$0xf]  ;;  %v8310_v47 = vld [vmem:[%s9859_s12 + $0x81] sm:$0xff] }
  0x44   : >> { %9007 = vmatprep.mubr.msk.f32.mxu1 %vm404_vm1, %v8189_v54  ;;  %9015 = vmatprep.mubr.msk.f32.mxu0 %vm404_vm1, %v8200_v55  ;;  %v8313_v53 = vld [vmem:[%s9859_s12 + $0x99] sm:$0xf]  ;;  %v8330_v55 = vld [vmem:[%s9859_s12 + $0x83] sm:$0xff] }
  0x45   : >> { %9034 = vmatprep.subr.msk.mxu1 %vm417_vm0, %v8232_v56  ;;  %9042 = vmatprep.subr.msk.mxu0 %vm417_vm0, %v8242_v57  ;;  %v8323_v54 = vld [vmem:[%s9859_s12 + $0x9a] sm:$0xf] }
  0x46   : >> { %9008 = vmatmul.mubr.msk.f32.gmra.mxu1 %vm404_vm1, %v8190_v58  ;;  %9016 = vmatmul.mubr.msk.f32.gmra.mxu0 %vm404_vm1, %v8201_v59  ;;  %v8341_v58 = vld [vmem:[%s9859_s12 + $0x8c] sm:$0xff] }
  0x47   : >> { %9020 = vmatprep.mubr.msk.f32.mxu1 %vm404_vm1, %v8208_v60  ;;  %9028 = vmatprep.mubr.msk.f32.mxu0 %vm404_vm1, %v8218_v61  ;;  %v8332_v59 = vld [vmem:[%s9859_s12 + $0x93] sm:$0xff]  ;;  %v8333_v61 = vld [vmem:[%s9859_s12 + $0x9b] sm:$0xf] }
  0x48   : >> { %v8342_v60 = vld [vmem:[%s9859_s12 + $0x94] sm:$0xff] }
  0x4a   : >> { %9021 = vmatmul.mubr.msk.f32.vlgmr.msra.gmra.mxu1 %vm404_vm1, %v8209_v62  ;;  %9029 = vmatmul.mubr.msk.f32.vlgmr.msra.gmra.mxu0 %vm404_vm1, %v8219_v63  ;;  %v8343_v62 = vld [vmem:[%s9859_s12 + $0x9c] sm:$0xf] }
  0x4b   : >> { %9035 = vmatpush3.msk.msra.mxu1 %vm417_vm0, %v8232_v56  ;;  %9043 = vmatpush3.msk.msra.mxu0 %vm417_vm0, %v8242_v57  ;;  %v8340_v56 = vld [vmem:[%s9859_s12 + $0x84] sm:$0xff] }
  0x4c   : >> { %9023 = vmatprep.mubr.msk.f32.mxu1 %vm404_vm1, %v8210_v1  ;;  %9031 = vmatprep.mubr.msk.f32.mxu0 %vm404_vm1, %v8220_v2  ;;  %v8331_v57 = vld [vmem:[%s9859_s12 + $0x8b] sm:$0xff]  ;;  %s3162_s12 = scalar_lea.vmem [#allocation2], %s8116_s30 }
  0x4d   : >> { %9050 = vmatprep.subr.msk.mxu1 %vm417_vm0, %v8253_v3  ;;  %9058 = vmatprep.subr.msk.mxu0 %vm417_vm0, %v8263_v4 }
  0x4e   : >> { %9024 = vmatmul.mubr.msk.f32.gmra.mxu1 %vm404_vm1, %v8211_v5  ;;  %9032 = vmatmul.mubr.msk.f32.gmra.mxu0 %vm404_vm1, %v8221_v6 }
  0x4f   : >> { %9036 = vmatprep.mubr.msk.f32.mxu1 %vm404_vm1, %v8228_v7  ;;  %9044 = vmatprep.mubr.msk.f32.mxu0 %vm404_vm1, %v8238_v8 }
  0x52   : >> { %9037 = vmatmul.mubr.msk.f32.vlgmr.msra.gmra.mxu1 %vm404_vm1, %v8229_v9  ;;  %9045 = vmatmul.mubr.msk.f32.vlgmr.msra.gmra.mxu0 %vm404_vm1, %v8239_v10 }
  0x53   : >> { %9051 = vmatpush3.msk.msra.mxu1 %vm417_vm0, %v8253_v3  ;;  %9059 = vmatpush3.msk.msra.mxu0 %vm417_vm0, %v8263_v4 }
  0x54   : >> { %9039 = vmatprep.mubr.msk.f32.mxu1 %vm404_vm1, %v8230_v11  ;;  %9047 = vmatprep.mubr.msk.f32.mxu0 %vm404_vm1, %v8240_v12 }
  0x55   : >> { %9066 = vmatprep.subr.msk.mxu1 %vm417_vm0, %v8273_v13  ;;  %9074 = vmatprep.subr.msk.mxu0 %vm417_vm0, %v8283_v14 }
  0x56   : >> { %9040 = vmatmul.mubr.msk.f32.gmra.mxu1 %vm404_vm1, %v8231_v15  ;;  %9048 = vmatmul.mubr.msk.f32.gmra.mxu0 %vm404_vm1, %v8241_v16 }
  0x57   : >> { %9052 = vmatprep.mubr.msk.f32.mxu1 %vm404_vm1, %v8249_v17  ;;  %9060 = vmatprep.mubr.msk.f32.mxu0 %vm404_vm1, %v8259_v18 }
  0x5a   : >> { %9053 = vmatmul.mubr.msk.f32.vlgmr.msra.gmra.mxu1 %vm404_vm1, %v8250_v19  ;;  %9061 = vmatmul.mubr.msk.f32.vlgmr.msra.gmra.mxu0 %vm404_vm1, %v8260_v20 }
  0x5b   : >> { %9067 = vmatpush3.msk.msra.mxu1 %vm417_vm0, %v8273_v13  ;;  %9075 = vmatpush3.msk.msra.mxu0 %vm417_vm0, %v8283_v14 }
  0x5c   : >> { %9055 = vmatprep.mubr.msk.f32.mxu1 %vm404_vm1, %v8251_v21  ;;  %9063 = vmatprep.mubr.msk.f32.mxu0 %vm404_vm1, %v8261_v22 }
  0x5d   : >> { %9082 = vmatprep.subr.msk.mxu1 %vm417_vm0, %v8293_v23  ;;  %9090 = vmatprep.subr.msk.mxu0 %vm417_vm0, %v8304_v24 }
  0x5e   : >> { %9056 = vmatmul.mubr.msk.f32.gmra.mxu1 %vm404_vm1, %v8252_v25  ;;  %9064 = vmatmul.mubr.msk.f32.gmra.mxu0 %vm404_vm1, %v8262_v26 }
  0x5f   : >> { %9068 = vmatprep.mubr.msk.f32.mxu1 %vm404_vm1, %v8269_v27  ;;  %9076 = vmatprep.mubr.msk.f32.mxu0 %vm404_vm1, %v8279_v28 }
  0x62   : >> { %9069 = vmatmul.mubr.msk.f32.vlgmr.msra.gmra.mxu1 %vm404_vm1, %v8270_v29  ;;  %9077 = vmatmul.mubr.msk.f32.vlgmr.msra.gmra.mxu0 %vm404_vm1, %v8280_v30 }
  0x63   : >> { %9083 = vmatpush3.msk.msra.mxu1 %vm417_vm0, %v8293_v23  ;;  %9091 = vmatpush3.msk.msra.mxu0 %vm417_vm0, %v8304_v24 }
  0x64   : >> { %9071 = vmatprep.mubr.msk.f32.mxu1 %vm404_vm1, %v8271_v31  ;;  %9079 = vmatprep.mubr.msk.f32.mxu0 %vm404_vm1, %v8281_v32 }
  0x65   : >> { %9098 = vmatprep.subr.msk.mxu1 %vm417_vm0, %v8314_v33  ;;  %9106 = vmatprep.subr.msk.mxu0 %vm417_vm0, %v8324_v34 }
  0x66   : >> { %9072 = vmatmul.mubr.msk.f32.gmra.mxu1 %vm404_vm1, %v8272_v35  ;;  %9080 = vmatmul.mubr.msk.f32.gmra.mxu0 %vm404_vm1, %v8282_v36 }
  0x67   : >> { %9084 = vmatprep.mubr.msk.f32.mxu1 %vm404_vm1, %v8289_v37  ;;  %9092 = vmatprep.mubr.msk.f32.mxu0 %vm404_vm1, %v8300_v38 }
  0x6a   : >> { %9085 = vmatmul.mubr.msk.f32.vlgmr.msra.gmra.mxu1 %vm404_vm1, %v8290_v39  ;;  %9093 = vmatmul.mubr.msk.f32.vlgmr.msra.gmra.mxu0 %vm404_vm1, %v8301_v40 }
  0x6b   : >> { %9099 = vmatpush3.msk.msra.mxu1 %vm417_vm0, %v8314_v33  ;;  %9107 = vmatpush3.msk.msra.mxu0 %vm417_vm0, %v8324_v34 }
  0x6c   : >> { %9087 = vmatprep.mubr.msk.f32.mxu1 %vm404_vm1, %v8291_v41  ;;  %9095 = vmatprep.mubr.msk.f32.mxu0 %vm404_vm1, %v8302_v42 }
  0x6d   : >> { %9114 = vmatprep.subr.msk.mxu1 %vm417_vm0, %v8334_v43  ;;  %9122 = vmatprep.subr.msk.mxu0 %vm417_vm0, %v8344_v44 }
  0x6e   : >> { %9088 = vmatmul.mubr.msk.f32.gmra.mxu1 %vm404_vm1, %v8292_v45  ;;  %9096 = vmatmul.mubr.msk.f32.gmra.mxu0 %vm404_vm1, %v8303_v46 }
  0x6f   : >> { %9100 = vmatprep.mubr.msk.f32.mxu1 %vm404_vm1, %v8310_v47  ;;  %9108 = vmatprep.mubr.msk.f32.mxu0 %vm404_vm1, %v8320_v48 }
  0x72   : >> { %9101 = vmatmul.mubr.msk.f32.vlgmr.msra.gmra.mxu1 %vm404_vm1, %v8311_v49  ;;  %9109 = vmatmul.mubr.msk.f32.vlgmr.msra.gmra.mxu0 %vm404_vm1, %v8321_v50 }
  0x73   : >> { %9115 = vmatpush3.msk.msra.mxu1 %vm417_vm0, %v8334_v43  ;;  %9123 = vmatpush3.msk.msra.mxu0 %vm417_vm0, %v8344_v44 }
  0x74   : >> { %9103 = vmatprep.mubr.msk.f32.mxu1 %vm404_vm1, %v8312_v51  ;;  %9111 = vmatprep.mubr.msk.f32.mxu0 %vm404_vm1, %v8322_v52 }
  0x76   : >> { %9104 = vmatmul.mubr.msk.f32.gmra.mxu1 %vm404_vm1, %v8313_v53  ;;  %9112 = vmatmul.mubr.msk.f32.gmra.mxu0 %vm404_vm1, %v8323_v54 }
  0x77   : >> { %9116 = vmatprep.mubr.msk.f32.mxu1 %vm404_vm1, %v8330_v55  ;;  %9124 = vmatprep.mubr.msk.f32.mxu0 %vm404_vm1, %v8340_v56 }
  0x7a   : >> { %9117 = vmatmul.mubr.msk.f32.vlgmr.msra.gmra.mxu1 %vm404_vm1, %v8331_v57  ;;  %9125 = vmatmul.mubr.msk.f32.vlgmr.msra.gmra.mxu0 %vm404_vm1, %v8341_v58 }
  0x7b   : >> { %9119 = vmatprep.mubr.msk.f32.mxu1 %vm404_vm1, %v8332_v59  ;;  %9127 = vmatprep.mubr.msk.f32.mxu0 %vm404_vm1, %v8342_v60 }
  0x7e   : >> { %9120 = vmatmul.mubr.msk.f32.gmra.mxu1 %vm404_vm1, %v8333_v61  ;;  %9128 = vmatmul.mubr.msk.f32.gmra.mxu0 %vm404_vm1, %v8343_v62 }
  0xde   : >> { %v8934_v63 = vpop.f32.mrf.mxu0  ;;  %v8937_v1 = vpop.f32.mrf.mxu1 }
  0xe0   : >> { %v487_v2 = vpop.f32.mrf.mxu0  ;;  %v497_v3 = vpop.f32.mrf.mxu1 }
  0xe2   : >> { %v8942_v4 = vpop.f32.mrf.mxu1  ;;  %v8950_v5 = vpop.f32.mrf.mxu0 }
  0xe3   : >> { %v593_v28 = vadd.f32 %v8942_v4, %v8934_v63 }
  0xe4   : >> { %v587_v6 = vpop.f32.mrf.mxu1  ;;  %v693_v7 = vpop.f32.mrf.mxu0 }
  0xe5   : >> { %v588_v31 = vadd.f32 %v587_v6, %v487_v2  ;;  %v713_v34 = vadd.f32 %v8950_v5, %v593_v28 }
  0xe6   : >> { %v8945_v8 = vpop.f32.mrf.mxu1  ;;  %v8953_v9 = vpop.f32.mrf.mxu0 }
  0xe7   : >> { %v603_v35 = vadd.f32 %v8945_v8, %v8937_v1  ;;  %v712_v38 = vadd.f32 %v693_v7, %v588_v31 }
  0xe8   : >> { %v597_v10 = vpop.f32.mrf.mxu1  ;;  %v703_v11 = vpop.f32.mrf.mxu0 }
  0xe9   : >> { %v598_v39 = vadd.f32 %v597_v10, %v497_v3  ;;  %v715_v43 = vadd.f32 %v8953_v9, %v603_v35 }
  0xea   : >> { %v8958_v12 = vpop.f32.mrf.mxu1  ;;  %v8966_v13 = vpop.f32.mrf.mxu0 }
  0xeb   : >> { %v823_v40 = vadd.f32 %v8958_v12, %v713_v34  ;;  %v714_v47 = vadd.f32 %v703_v11, %v598_v39 }
  0xec   : >> { %v803_v14 = vpop.f32.mrf.mxu1  ;;  %v913_v15 = vpop.f32.mrf.mxu0 }
  0xed   : >> { %v822_v44 = vadd.f32 %v803_v14, %v712_v38  ;;  %v933_v48 = vadd.f32 %v8966_v13, %v823_v40 }
  0xee   : >> { %v8961_v16 = vpop.f32.mrf.mxu1  ;;  %v8969_v17 = vpop.f32.mrf.mxu0 }
  0xef   : >> { %v825_v49 = vadd.f32 %v8961_v16, %v715_v43  ;;  %v932_v52 = vadd.f32 %v913_v15, %v822_v44 }
  0xf0   : >> { %v813_v18 = vpop.f32.mrf.mxu1  ;;  %v923_v19 = vpop.f32.mrf.mxu0 }
  0xf1   : >> { %v824_v53 = vadd.f32 %v813_v18, %v714_v47  ;;  %v935_v57 = vadd.f32 %v8969_v17, %v825_v49 }
  0xf2   : >> { %v8974_v20 = vpop.f32.mrf.mxu1  ;;  %v8982_v21 = vpop.f32.mrf.mxu0 }
  0xf3   : >> { %v1046_v54 = vadd.f32 %v8974_v20, %v933_v48  ;;  %v934_v61 = vadd.f32 %v923_v19, %v824_v53 }
  0xf4   : >> { %v1026_v22 = vpop.f32.mrf.mxu1  ;;  %v1136_v23 = vpop.f32.mrf.mxu0 }
  0xf5   : >> { %v1045_v58 = vadd.f32 %v1026_v22, %v932_v52  ;;  %v1156_v62 = vadd.f32 %v8982_v21, %v1046_v54 }
  0xf6   : >> { %v8977_v24 = vpop.f32.mrf.mxu1  ;;  %v8985_v25 = vpop.f32.mrf.mxu0 }
  0xf7   : >> { %v1048_v63 = vadd.f32 %v8977_v24, %v935_v57  ;;  %v1155_v3 = vadd.f32 %v1136_v23, %v1045_v58 }
  0xf8   : >> { %v1036_v26 = vpop.f32.mrf.mxu1  ;;  %v1146_v27 = vpop.f32.mrf.mxu0 }
  0xf9   : >> { %v1047_v4 = vadd.f32 %v1036_v26, %v934_v61  ;;  %v1158_v8 = vadd.f32 %v8985_v25, %v1048_v63 }
  0xfa   : >> { %v8990_v29 = vpop.f32.mrf.mxu1  ;;  %v8998_v30 = vpop.f32.mrf.mxu0 }
  0xfb   : >> { %v1266_v5 = vadd.f32 %v8990_v29, %v1156_v62  ;;  %v1157_v12 = vadd.f32 %v1146_v27, %v1047_v4 }
  0xfc   : >> { %v1246_v32 = vpop.f32.mrf.mxu1  ;;  %v1356_v33 = vpop.f32.mrf.mxu0 }
  0xfd   : >> { %v1265_v9 = vadd.f32 %v1246_v32, %v1155_v3  ;;  %v1376_v13 = vadd.f32 %v8998_v30, %v1266_v5 }
  0xfe   : >> { %v8993_v36 = vpop.f32.mrf.mxu1  ;;  %v9001_v37 = vpop.f32.mrf.mxu0 }
  0xff   : >> { %v1268_v14 = vadd.f32 %v8993_v36, %v1158_v8  ;;  %v1375_v17 = vadd.f32 %v1356_v33, %v1265_v9 }
 0x100   : >> { %v1256_v41 = vpop.f32.mrf.mxu1  ;;  %v1366_v42 = vpop.f32.mrf.mxu0 }
 0x101   : >> { %v1267_v18 = vadd.f32 %v1256_v41, %v1157_v12  ;;  %v1378_v22 = vadd.f32 %v9001_v37, %v1268_v14 }
 0x102   : >> { %v9006_v45 = vpop.f32.mrf.mxu1  ;;  %v9014_v46 = vpop.f32.mrf.mxu0 }
 0x103   : >> { %v1486_v19 = vadd.f32 %v9006_v45, %v1376_v13  ;;  %v1377_v28 = vadd.f32 %v1366_v42, %v1267_v18 }
 0x104   : >> { %v1466_v50 = vpop.f32.mrf.mxu1  ;;  %v1579_v51 = vpop.f32.mrf.mxu0 }
 0x105   : >> { %v1485_v23 = vadd.f32 %v1466_v50, %v1375_v17  ;;  %v1599_v29 = vadd.f32 %v9014_v46, %v1486_v19 }
 0x106   : >> { %v9009_v55 = vpop.f32.mrf.mxu1  ;;  %v9017_v56 = vpop.f32.mrf.mxu0 }
 0x107   : >> { %v1488_v25 = vadd.f32 %v9009_v55, %v1378_v22  ;;  %v1598_v34 = vadd.f32 %v1579_v51, %v1485_v23 }
 0x108   : >> { %v1476_v59 = vpop.f32.mrf.mxu1  ;;  %v1589_v60 = vpop.f32.mrf.mxu0 }
 0x109   : >> { %v1487_v27 = vadd.f32 %v1476_v59, %v1377_v28  ;;  %v1601_v38 = vadd.f32 %v9017_v56, %v1488_v25 }
 0x10a   : >> { %v9022_v1 = vpop.f32.mrf.mxu1  ;;  %v9030_v2 = vpop.f32.mrf.mxu0 }
 0x10b   : >> { %v1709_v30 = vadd.f32 %v9022_v1, %v1599_v29  ;;  %v1600_v41 = vadd.f32 %v1589_v60, %v1487_v27 }
 0x10c   : >> { %v1689_v6 = vpop.f32.mrf.mxu1  ;;  %v1799_v7 = vpop.f32.mrf.mxu0 }
 0x10d   : >> { %v1708_v33 = vadd.f32 %v1689_v6, %v1598_v34  ;;  %v1819_v43 = vadd.f32 %v9030_v2, %v1709_v30 }
 0x10e   : >> { %v9025_v10 = vpop.f32.mrf.mxu1  ;;  %v9033_v11 = vpop.f32.mrf.mxu0 }
 0x10f   : >> { %v1711_v37 = vadd.f32 %v9025_v10, %v1601_v38  ;;  %v1818_v47 = vadd.f32 %v1799_v7, %v1708_v33 }
 0x110   : >> { %v1699_v15 = vpop.f32.mrf.mxu1  ;;  %v1809_v16 = vpop.f32.mrf.mxu0 }
 0x111   : >> { %v1710_v42 = vadd.f32 %v1699_v15, %v1600_v41  ;;  %v1821_v50 = vadd.f32 %v9033_v11, %v1711_v37 }
 0x112   : >> { %v9038_v20 = vpop.f32.mrf.mxu1  ;;  %v9046_v21 = vpop.f32.mrf.mxu0 }
 0x113   : >> { %v1929_v46 = vadd.f32 %v9038_v20, %v1819_v43  ;;  %v1820_v54 = vadd.f32 %v1809_v16, %v1710_v42 }
 0x114   : >> { %v1909_v24 = vpop.f32.mrf.mxu1  ;;  %v2019_v26 = vpop.f32.mrf.mxu0 }
 0x115   : >> { %v1928_v51 = vadd.f32 %v1909_v24, %v1818_v47  ;;  %v2039_v55 = vadd.f32 %v9046_v21, %v1929_v46 }
 0x116   : >> { %v9041_v31 = vpop.f32.mrf.mxu1  ;;  %v9049_v32 = vpop.f32.mrf.mxu0 }
 0x117   : >> { %v1931_v56 = vadd.f32 %v9041_v31, %v1821_v50  ;;  %v2038_v59 = vadd.f32 %v2019_v26, %v1928_v51 }
 0x118   : >> { %v1919_v35 = vpop.f32.mrf.mxu1  ;;  %v2029_v36 = vpop.f32.mrf.mxu0 }
 0x119   : >> { %v1930_v60 = vadd.f32 %v1919_v35, %v1820_v54  ;;  %v2041_v1 = vadd.f32 %v9049_v32, %v1931_v56 }
 0x11a   : >> { %v9054_v39 = vpop.f32.mrf.mxu1  ;;  %v9062_v40 = vpop.f32.mrf.mxu0 }
 0x11b   : >> { %v2152_v61 = vadd.f32 %v9054_v39, %v2039_v55  ;;  %v2040_v5 = vadd.f32 %v2029_v36, %v1930_v60 }
 0x11c   : >> { %v2132_v44 = vpop.f32.mrf.mxu1  ;;  %v2242_v45 = vpop.f32.mrf.mxu0 }
 0x11d   : >> { %v2151_v2 = vadd.f32 %v2132_v44, %v2038_v59  ;;  %v2262_v6 = vadd.f32 %v9062_v40, %v2152_v61 }
 0x11e   : >> { %v9057_v48 = vpop.f32.mrf.mxu1  ;;  %v9065_v49 = vpop.f32.mrf.mxu0 }
 0x11f   : >> { %v2154_v7 = vadd.f32 %v9057_v48, %v2041_v1  ;;  %v2261_v10 = vadd.f32 %v2242_v45, %v2151_v2 }
 0x120   : >> { %v2142_v52 = vpop.f32.mrf.mxu1  ;;  %v2252_v53 = vpop.f32.mrf.mxu0 }
 0x121   : >> { %v2153_v11 = vadd.f32 %v2142_v52, %v2040_v5  ;;  %v2264_v15 = vadd.f32 %v9065_v49, %v2154_v7 }
 0x122   : >> { %v9070_v57 = vpop.f32.mrf.mxu1  ;;  %v9078_v58 = vpop.f32.mrf.mxu0 }
 0x123   : >> { %v2372_v12 = vadd.f32 %v9070_v57, %v2262_v6  ;;  %v2263_v19 = vadd.f32 %v2252_v53, %v2153_v11 }
 0x124   : >> { %v2352_v62 = vpop.f32.mrf.mxu1  ;;  %v2462_v63 = vpop.f32.mrf.mxu0 }
 0x125   : >> { %v2371_v16 = vadd.f32 %v2352_v62, %v2261_v10  ;;  %v2482_v20 = vadd.f32 %v9078_v58, %v2372_v12 }
 0x126   : >> { %v9073_v3 = vpop.f32.mrf.mxu1  ;;  %v9081_v4 = vpop.f32.mrf.mxu0 }
 0x127   : >> { %v2374_v21 = vadd.f32 %v9073_v3, %v2264_v15  ;;  %v2481_v24 = vadd.f32 %v2462_v63, %v2371_v16  ;;  %v3169_v15 = vlaneseq (%p387_p11) }
 0x128   : >> { %v2362_v8 = vpop.f32.mrf.mxu1  ;;  %v2472_v9 = vpop.f32.mrf.mxu0 }
 0x129   : >> { %v2373_v26 = vadd.f32 %v2362_v8, %v2263_v19  ;;  %v2484_v31 = vadd.f32 %v9081_v4, %v2374_v21  ;;  %v3170_v16 = vand.u32 (%p387_p11), 127, %v3169_v15 }
 0x12a   : >> { %v9086_v13 = vpop.f32.mrf.mxu1  ;;  %v9094_v14 = vpop.f32.mrf.mxu0 }
 0x12b   : >> { %v2592_v28 = vadd.f32 %v9086_v13, %v2482_v20  ;;  %v2483_v30 = vadd.f32 %v2472_v9, %v2373_v26 }
 0x12c   : >> { %v2572_v17 = vpop.f32.mrf.mxu1  ;;  %v2685_v18 = vpop.f32.mrf.mxu0 }
 0x12d   : >> { %v2591_v32 = vadd.f32 %v2572_v17, %v2481_v24  ;;  %v2705_v35 = vadd.f32 %v9094_v14, %v2592_v28  ;;  %v3172_v17 = vshrl.u32 (%p387_p11), %v3169_v15, 7 }
 0x12e   : >> { %v9089_v22 = vpop.f32.mrf.mxu1  ;;  %v9097_v23 = vpop.f32.mrf.mxu0 }
 0x12f   : >> { %v2594_v36 = vadd.f32 %v9089_v22, %v2484_v31  ;;  %v2704_v39 = vadd.f32 %v2685_v18, %v2591_v32  ;;  %v3173_v18 = vadd.s32 (%p387_p11), 8, %v3172_v17  ;;  %v3174_v19 = vmul.u32 (%p387_p11), 2, %v3172_v17 }
 0x130   : >> { %v2582_v29 = vpop.f32.mrf.mxu1  ;;  %v2695_v25 = vpop.f32.mrf.mxu0  ;;  %v9707_v22 = vmov (%p387_p11), 0.0  }
 0x131   : >> { %v2593_v40 = vadd.f32 %v2582_v29, %v2483_v30  ;;  %v2707_v44 = vadd.f32 %v9097_v23, %v2594_v36  ;;  %v3175_v20 = vmul.u32 (%p387_p11), 2, %v3173_v18  ;;  %vm3176_vm4 = vcmp.eq.s32.totalorder (%p387_p11), %v3170_v16, %v3174_v19 }
 0x132   : >> { %v9102_v34 = vpop.f32.mrf.mxu1  ;;  %v9110_v27 = vpop.f32.mrf.mxu0  ;;  %v3180_v21 = vadd.s32 (%p387_p11), 1, %v3174_v19  ;;  %v10188_v23 = vsel (%p387_p11), %vm3176_vm4, 1.0, %v9707_v22 }
 0x133   : >> { %v2815_v41 = vadd.f32 %v9102_v34, %v2705_v35  ;;  %v2706_v46 = vadd.f32 %v2695_v25, %v2593_v40  ;;  %vm3177_vm5 = vcmp.eq.s32.totalorder (%p387_p11), %v3170_v16, %v3175_v20  ;;  %v3181_v24 = vadd.s32 (%p387_p11), 1, %v3175_v20 }
 0x134   : >> { %v2795_v38 = vpop.f32.mrf.mxu1  ;;  %v2905_v33 = vpop.f32.mrf.mxu0  ;;  %vm3182_vm6 = vcmp.eq.s32.totalorder (%p387_p11), %v3170_v16, %v3180_v21  ;;  %v3179_v26 = vsel (%p387_p11), %vm3177_vm5, 1.0, %v9707_v22 }
 0x135   : >> { %v2814_v45 = vadd.f32 %v2795_v38, %v2704_v39  ;;  %v2925_v48 = vadd.f32 %v9110_v27, %v2815_v41  ;;  %v10192_v28 = vsel (%p387_p11), %vm3182_vm6, 1.0, %v9707_v22  ;;  %vm3183_vm7 = vcmp.eq.s32.totalorder (%p387_p11), %v3170_v16, %v3181_v24 }
 0x136   : >> { %v9105_v43 = vpop.f32.mrf.mxu1  ;;  %v9113_v37 = vpop.f32.mrf.mxu0 }
 0x137   : >> { %v2817_v49 = vadd.f32 %v9105_v43, %v2707_v44  ;;  %v2924_v52 = vadd.f32 %v2905_v33, %v2814_v45 }
 0x138   : >> { %v2805_v47 = vpop.f32.mrf.mxu1  ;;  %v2915_v42 = vpop.f32.mrf.mxu0 }
 0x139   : >> { %v2816_v53 = vadd.f32 %v2805_v47, %v2706_v46  ;;  %v2927_v57 = vadd.f32 %v9113_v37, %v2817_v49 }
 0x13a   : >> { %v9118_v50 = vpop.f32.mrf.mxu1  ;;  %v9126_v51 = vpop.f32.mrf.mxu0 }
 0x13b   : >> { %v3035_v54 = vadd.f32 %v9118_v50, %v2925_v48  ;;  %v2926_v62 = vadd.f32 %v2915_v42, %v2816_v53 }
 0x13c   : >> { %v3015_v55 = vpop.f32.mrf.mxu1  ;;  %v3125_v56 = vpop.f32.mrf.mxu0 }
 0x13d   : >> { %v3145_v58 = vadd.f32 %v9126_v51, %v3035_v54  ;;  %v3034_v59 = vadd.f32 %v3015_v55, %v2924_v52 }
 0x13e   : >> { %v9121_v60 = vpop.f32.mrf.mxu1  ;;  %v9129_v61 = vpop.f32.mrf.mxu0 }
 0x13f   : >> { %v3155_v63 = vadd.f32 %v9825_v0, %v3145_v58  ;;  %v3144_v1 = vadd.f32 %v3125_v56, %v3034_v59  ;;  %v3037_v2 = vadd.f32 %v9121_v60, %v2927_v57 }
 0x140   : >> { %v3025_v3 = vpop.f32.mrf.mxu1  ;;  %v3135_v8 = vpop.f32.mrf.mxu0 }
 0x141   : >> { %v3159_v4 = vmax.f32 %v3155_v63, 0.0  ;;  %v3154_v5 = vadd.f32 %v9825_v0, %v3144_v1  ;;  %v3147_v6 = vadd.f32 %v9129_v61, %v3037_v2  ;;  %v3036_v7 = vadd.f32 %v3025_v3, %v2926_v62 }
 0x143   : >> { %3165 = vst.msk [vmem:[%s3162_s12 + $0x8] sm:$0xff] %vm3163_vm2, %v3159_v4  ;;  %v3158_v9 = vmax.f32 %v3154_v5, 0.0  ;;  %v3157_v10 = vadd.f32 %v9825_v0, %v3147_v6  ;;  %v3146_v11 = vadd.f32 %v3135_v8, %v3036_v7 }
 0x145   : >> { %3164 = vst.msk [vmem:[%s3162_s12] sm:$0xff] %vm3163_vm2, %v3158_v9  ;;  %v3161_v12 = vmax.f32 %v3157_v10, 0.0  ;;  %v3156_v13 = vadd.f32 %v9825_v0, %v3146_v11  ;;  %389 = sbr.rel (!%p387_p11) target bundleno = 25 (0x19), region = 221  ;;  %v3185_v0 = vsel (%p387_p11), %vm3183_vm7, 1.0, %v9707_v22 }
 0x147   : >> { %3168 = vst.msk [vmem:[%s3162_s12 + $0x18] sm:$0xf] %vm3167_vm3, %v3161_v12  ;;  %v3160_v14 = vmax.f32 %v3156_v13, 0.0 }
 0x149   : >> { %3166 = vst.msk [vmem:[%s3162_s12 + $0x10] sm:$0xff] %vm3163_vm2, %v3160_v14 }
 0x14a LB: >> { %vm3210_vm8 = vcmask 228352   ;;  %s8599_s25 = sshll.u32 %s9697_s22, 6  ;;  %vm3217_vm9 = vcmask 1043456   ;;  %s8365_s13 = sshll.u32 %s9697_s22, 4  ;;  %vm3383_vm10 = vcmask 46080   ;;  %s9697_s22 = sphi %s10195_s22, %s3191_s22  }
 0x14b   : >> { %9138 = vmatprep.mubr.msk.f32.mxu0 %vm3210_vm8, %v10188_v23  ;;  %9149 = vmatprep.mubr.msk.f32.mxu1 %vm3210_vm8, %v10192_v28  ;;  %s3194_s30 = scalar_lea.vmem [#allocation2], %s8599_s25  ;;  %s3380_s14 = scalar_lea.vmem [#allocation3], %s8365_s13 }
 0x14c   : >> { %s3191_s22 = sadd.s32 1, %s9697_s22  }
 0x14d   : >> { %p3188_p12 = scmp.ge.s32.totalorder %s3191_s22, 14  }
 0x14e   : > { %v10215_v47 = vld [vmem:[%s10935_s4] ss:$0 sm:$0xff] (%p3188_p12)  ;;  %s10217_s12 = smov (%p3188_p12), 0  }
 0x150   : >> { %v3198_v29 = vld [vmem:[%s3194_s30 + $0x18] sm:$0xf]  ;;  %v3197_v31 = vld [vmem:[%s3194_s30 + $0x10] sm:$0xff]  ;;  %v3196_v27 = vld [vmem:[%s3194_s30 + $0x8] sm:$0xff] }
 0x151   : >> { %v8358_v25 = vld [vmem:[%s3194_s30 + $0x38] sm:$0xf]  ;;  %v8357_v34 = vld [vmem:[%s3194_s30 + $0x30] sm:$0xff]  ;;  %v8356_v30 = vld [vmem:[%s3194_s30 + $0x28] sm:$0xff] }
 0x152   : >> { %v3209_v32 = vmax.f32 %v3198_v29, %v8358_v25  ;;  %v3208_v35 = vmax.f32 %v3197_v31, %v8357_v34  ;;  %v3195_v36 = vld [vmem:[%s3194_s30] sm:$0xff]  ;;  %v3207_v33 = vmax.f32 %v3196_v27, %v8356_v30 }
 0x153   : >> { %v8355_v38 = vld [vmem:[%s3194_s30 + $0x20] sm:$0xff] }
 0x154   : >> { %9130 = vmatprep.subr.msk.mxu0 %vm3217_vm9, %v3209_v32  ;;  %9141 = vmatprep.subr.msk.mxu1 %vm3217_vm9, %v3209_v32  ;;  %v3206_v39 = vmax.f32 %v3195_v36, %v8355_v38 }
 0x155   : >> { %9131 = vmatpush3.msk.msra.mxu0 %vm3217_vm9, %v3209_v32  ;;  %9142 = vmatpush3.msk.msra.mxu1 %vm3217_vm9, %v3209_v32 }
 0x156   : >> { %9132 = vmatprep.subr.mxu0 %v3208_v35  ;;  %9143 = vmatprep.subr.mxu1 %v3208_v35 }
 0x157   : >> { %9133 = vmatpush3.msra.mxu0 %v3208_v35  ;;  %9144 = vmatpush3.msra.mxu1 %v3208_v35 }
 0x158   : >> { %9134 = vmatprep.subr.mxu0 %v3207_v33  ;;  %9145 = vmatprep.subr.mxu1 %v3207_v33 }
 0x159   : >> { %9135 = vmatpush3.msra.mxu0 %v3207_v33  ;;  %9146 = vmatpush3.msra.mxu1 %v3207_v33 }
 0x15a   : >> { %9136 = vmatprep.subr.mxu0 %v3206_v39  ;;  %9147 = vmatprep.subr.mxu1 %v3206_v39 }
 0x15b   : >> { %9137 = vmatpush3.msra.mxu0 %v3206_v39  ;;  %9148 = vmatpush3.msra.mxu1 %v3206_v39 }
 0x15c   : >> { %9139 = vmatmul.mubr.msk.f32.vlgmr.msra.gmra.mxu0 %vm3210_vm8, %v3179_v26  ;;  %9150 = vmatmul.mubr.msk.f32.vlgmr.msra.gmra.mxu1 %vm3210_vm8, %v3185_v0 }
 0x21c   : >> { %v9140_v40 = vpop.f32.mrf.mxu0  ;;  %v9151_v41 = vpop.f32.mrf.mxu1 }
 0x21d   : >> { %v3378_v43 = vmax.f32 %v9140_v40, %v9151_v41  ;;  %3190 = sbr.rel (!%p3188_p12) target bundleno = 330 (0x14a), region = 232 }
 0x21e   : >> { %v3287_v37 = vpop.f32.mrf.mxu0  ;;  %v3368_v44 = vpop.f32.mrf.mxu1 }
 0x21f   : >> { %v3377_v45 = vmax.f32 %v3287_v37, %v3368_v44  ;;  %3384 = vst.msk [vmem:[%s3380_s14 + $0x8] sm:$0x3f] %vm3383_vm10, %v3378_v43 }
 0x221   : >> { %3382 = vst.msk [vmem:[%s3380_s14] sm:$0xff] %vm3163_vm2, %v3377_v45 }
 0x222 LB: >> { %v8367_v42 = vld [vmem:[%s10934_s3 + $0x8] sm:$0x3f]  ;;  %vm3408_vm11 = vcmask 1045504   ;;  %v3396_v46 = vld [vmem:[%s10934_s3] sm:$0x3f]  ;;  %s8366_s25 = sshll.u32 %s9701_s12, 4  ;;  %s9701_s12 = sphi %s10217_s12, %s3391_s12  }
 0x223   : >> { %9152 = vmatprep.subr.msk.mxu0 %vm3408_vm11, %v8367_v42  ;;  %9157 = vmatprep.subr.msk.mxu1 %vm3408_vm11, %v3396_v46  ;;  %v8374_v48 = vld [vmem:[%s10934_s3 + $0x10] sm:$0x3f]  ;;  %v8378_v49 = vld [vmem:[%s10934_s3 + $0x18] sm:$0x3f]  ;;  %s10243_s30 = scalar_lea.vmem [#allocation3], %s8366_s25  ;;  %vm5666_vm12 = vcmask 123904  }
 0x224   : >> { %9153 = vmatpush3.msk.msra.mxu0 %vm3408_vm11, %v8367_v42  ;;  %9158 = vmatpush3.msk.msra.mxu1 %vm3408_vm11, %v3396_v46  ;;  %v8382_v56 = vld [vmem:[%s10934_s3 + $0x20] sm:$0x3f]  ;;  %v8389_v57 = vld [vmem:[%s10934_s3 + $0x28] sm:$0x3f]  ;;  %v8395_v62 = vld [vmem:[%s10934_s3 + $0x30] sm:$0x3f] }
 0x225   : >> { %9162 = vmatprep.subr.msk.mxu0 %vm3408_vm11, %v8374_v48  ;;  %9167 = vmatprep.subr.msk.mxu1 %vm3408_vm11, %v8378_v49  ;;  %v8401_v63 = vld [vmem:[%s10934_s3 + $0x38] sm:$0x3f]  ;;  %v8407_v5 = vld [vmem:[%s10934_s3 + $0x40] sm:$0x3f]  ;;  %v8413_v6 = vld [vmem:[%s10934_s3 + $0x48] sm:$0x3f] }
 0x226   : >> { %v8420_v11 = vld [vmem:[%s10934_s3 + $0x50] sm:$0x3f]  ;;  %v8426_v12 = vld [vmem:[%s10934_s3 + $0x58] sm:$0x3f]  ;;  %v8432_v17 = vld [vmem:[%s10934_s3 + $0x60] sm:$0x3f] }
 0x227   : >> { %v8438_v18 = vld [vmem:[%s10934_s3 + $0x68] sm:$0x3f]  ;;  %v8444_v26 = vld [vmem:[%s10934_s3 + $0x70] sm:$0x3f]  ;;  %v8451_v0 = vld [vmem:[%s10934_s3 + $0x78] sm:$0x3f] }
 0x228   : >> { %v3397_v50 = vld [vmem:[%s10243_s30 + $0x1] sm:$0xff]  ;;  %v3398_v52 = vld [vmem:[%s10243_s30 + $0x9] sm:$0x3]  ;;  %v3662_v59 = vld [vmem:[%s10243_s30 + $0xb] sm:$0x3]  ;;  %vm5664_vm13 = vcmask 130048  }
 0x229   : >> { %v3394_v51 = vld [vmem:[%s10243_s30] sm:$0xff]  ;;  %9154 = vmatprep.mubr.msk.f32.mxu0 %vm3163_vm2, %v3397_v50  ;;  %v3395_v53 = vld [vmem:[%s10243_s30 + $0x8] sm:$0x3]  ;;  %v3572_v58 = vld [vmem:[%s10243_s30 + $0xa] sm:$0x3]  ;;  %s3391_s12 = sadd.s32 1, %s9701_s12  }
 0x22a   : >> { %9159 = vmatprep.mubr.msk.f32.mxu1 %vm3163_vm2, %v3394_v51  ;;  %v3571_v54 = vld [vmem:[%s10243_s30 + $0x2] sm:$0xff]  ;;  %9155 = vmatmul.mubr.msk.f32.vlgmr.msra.gmra.mxu0 %vm3163_vm2, %v3398_v52  ;;  %v8387_v61 = vld [vmem:[%s10243_s30 + $0x10] sm:$0xff]  ;;  %v3752_v1 = vld [vmem:[%s10243_s30 + $0xc] sm:$0x3]  ;;  %p3388_p13 = scmp.ge.s32.totalorder %s3391_s12, 10  }
 0x22b   : >> { %v3661_v55 = vld [vmem:[%s10243_s30 + $0x3] sm:$0xff]  ;;  %9160 = vmatmul.mubr.msk.f32.vlgmr.msra.gmra.mxu1 %vm3163_vm2, %v3395_v53  ;;  %9163 = vmatpush3.msk.msra.mxu0 %vm3408_vm11, %v8374_v48  ;;  %v8388_v2 = vld [vmem:[%s10243_s30 + $0x18] sm:$0x3]  ;;  %v8400_v8 = vld [vmem:[%s10243_s30 + $0x1a] sm:$0x3]  ;;  %s10460_s29 = smov (%p3388_p13), 0  }
 0x22c   : >> { %9168 = vmatpush3.msk.msra.mxu1 %vm3408_vm11, %v8378_v49  ;;  %9164 = vmatprep.mubr.msk.f32.mxu0 %vm3163_vm2, %v3571_v54  ;;  %v3751_v60 = vld [vmem:[%s10243_s30 + $0x4] sm:$0xff]  ;;  %v8393_v3 = vld [vmem:[%s10243_s30 + $0x11] sm:$0xff]  ;;  %v8394_v7 = vld [vmem:[%s10243_s30 + $0x19] sm:$0x3] }
 0x22d   : >> { %9169 = vmatprep.mubr.msk.f32.mxu1 %vm3163_vm2, %v3661_v55  ;;  %9172 = vmatprep.subr.msk.mxu0 %vm3408_vm11, %v8382_v56  ;;  %v8399_v4 = vld [vmem:[%s10243_s30 + $0x12] sm:$0xff]  ;;  %v8406_v13 = vld [vmem:[%s10243_s30 + $0x1b] sm:$0x3]  ;;  %v8418_v15 = vld [vmem:[%s10243_s30 + $0x20] sm:$0xff] }
 0x22e   : >> { %9177 = vmatprep.subr.msk.mxu1 %vm3408_vm11, %v8389_v57  ;;  %9165 = vmatmul.mubr.msk.f32.vlgmr.msra.gmra.mxu0 %vm3163_vm2, %v3572_v58  ;;  %v8405_v9 = vld [vmem:[%s10243_s30 + $0x13] sm:$0xff]  ;;  %v8412_v14 = vld [vmem:[%s10243_s30 + $0x1c] sm:$0x3]  ;;  %v8424_v16 = vld [vmem:[%s10243_s30 + $0x21] sm:$0xff] }
 0x22f   : >> { %9170 = vmatmul.mubr.msk.f32.vlgmr.msra.gmra.mxu1 %vm3163_vm2, %v3662_v59  ;;  %9173 = vmatpush3.msk.msra.mxu0 %vm3408_vm11, %v8382_v56  ;;  %v8411_v10 = vld [vmem:[%s10243_s30 + $0x14] sm:$0xff]  ;;  %v8419_v19 = vld [vmem:[%s10243_s30 + $0x28] sm:$0x3]  ;;  %v8431_v29 = vld [vmem:[%s10243_s30 + $0x2a] sm:$0x3] }
 0x230   : >> { %9178 = vmatpush3.msk.msra.mxu1 %vm3408_vm11, %v8389_v57  ;;  %9174 = vmatprep.mubr.msk.f32.mxu0 %vm3163_vm2, %v3751_v60  ;;  %v8425_v20 = vld [vmem:[%s10243_s30 + $0x29] sm:$0x3]  ;;  %v8437_v25 = vld [vmem:[%s10243_s30 + $0x2b] sm:$0x3]  ;;  %v8449_v32 = vld [vmem:[%s10243_s30 + $0x30] sm:$0xff] }
 0x231   : >> { %9179 = vmatprep.mubr.msk.f32.mxu1 %vm3163_vm2, %v8387_v61  ;;  %9182 = vmatprep.subr.msk.mxu0 %vm3408_vm11, %v8395_v62  ;;  %v8430_v21 = vld [vmem:[%s10243_s30 + $0x22] sm:$0xff]  ;;  %v8443_v30 = vld [vmem:[%s10243_s30 + $0x2c] sm:$0x3]  ;;  %v8450_v35 = vld [vmem:[%s10243_s30 + $0x38] sm:$0x3] }
 0x232   : >> { %9187 = vmatprep.subr.msk.mxu1 %vm3408_vm11, %v8401_v63  ;;  %9175 = vmatmul.mubr.msk.f32.vlgmr.msra.gmra.mxu0 %vm3163_vm2, %v3752_v1  ;;  %v8436_v24 = vld [vmem:[%s10243_s30 + $0x23] sm:$0xff]  ;;  %v8455_v36 = vld [vmem:[%s10243_s30 + $0x31] sm:$0xff]  ;;  %v8456_v40 = vld [vmem:[%s10243_s30 + $0x39] sm:$0x3] }
 0x233   : >> { %9180 = vmatmul.mubr.msk.f32.vlgmr.msra.gmra.mxu1 %vm3163_vm2, %v8388_v2  ;;  %9183 = vmatpush3.msk.msra.mxu0 %vm3408_vm11, %v8395_v62  ;;  %v8442_v31 = vld [vmem:[%s10243_s30 + $0x24] sm:$0xff]  ;;  %v8461_v38 = vld [vmem:[%s10243_s30 + $0x32] sm:$0xff]  ;;  %v8462_v41 = vld [vmem:[%s10243_s30 + $0x3a] sm:$0x3] }
 0x234   : >> { %9188 = vmatpush3.msk.msra.mxu1 %vm3408_vm11, %v8401_v63  ;;  %9184 = vmatprep.mubr.msk.f32.mxu0 %vm3163_vm2, %v8393_v3  ;;  %v8457_v34 = vld [vmem:[%s10934_s3 + $0x80] sm:$0x3f]  ;;  %v8463_v27 = vld [vmem:[%s10934_s3 + $0x88] sm:$0x3f]  ;;  %v8469_v33 = vld [vmem:[%s10934_s3 + $0x90] sm:$0x3f] }
 0x235   : >> { %9189 = vmatprep.mubr.msk.f32.mxu1 %vm3163_vm2, %v8399_v4  ;;  %9192 = vmatprep.subr.msk.mxu0 %vm3408_vm11, %v8407_v5  ;;  %v8475_v39 = vld [vmem:[%s10934_s3 + $0x98] sm:$0x3f]  ;;  %v8482_v44 = vld [vmem:[%s10934_s3 + $0xa0] sm:$0x3f]  ;;  %v8488_v45 = vld [vmem:[%s10934_s3 + $0xa8] sm:$0x3f] }
 0x236   : >> { %9197 = vmatprep.subr.msk.mxu1 %vm3408_vm11, %v8413_v6  ;;  %9185 = vmatmul.mubr.msk.f32.vlgmr.msra.gmra.mxu0 %vm3163_vm2, %v8394_v7  ;;  %v8467_v43 = vld [vmem:[%s10243_s30 + $0x33] sm:$0xff]  ;;  %v8468_v42 = vld [vmem:[%s10243_s30 + $0x3b] sm:$0x3]  ;;  %v8480_v48 = vld [vmem:[%s10243_s30 + $0x40] sm:$0xff] }
 0x237   : >> { %9190 = vmatmul.mubr.msk.f32.vlgmr.msra.gmra.mxu1 %vm3163_vm2, %v8400_v8  ;;  %9193 = vmatpush3.msk.msra.mxu0 %vm3408_vm11, %v8407_v5  ;;  %v8473_v37 = vld [vmem:[%s10243_s30 + $0x34] sm:$0xff]  ;;  %v8474_v46 = vld [vmem:[%s10243_s30 + $0x3c] sm:$0x3]  ;;  %v8486_v49 = vld [vmem:[%s10243_s30 + $0x41] sm:$0xff] }
 0x238   : >> { %9198 = vmatpush3.msk.msra.mxu1 %vm3408_vm11, %v8413_v6  ;;  %9194 = vmatprep.mubr.msk.f32.mxu0 %vm3163_vm2, %v8405_v9  ;;  %v8494_v50 = vld [vmem:[%s10934_s3 + $0xb0] sm:$0x3f]  ;;  %v8500_v51 = vld [vmem:[%s10934_s3 + $0xb8] sm:$0x3f]  ;;  %v8481_v52 = vld [vmem:[%s10243_s30 + $0x48] sm:$0x3] }
 0x239   : >> { %9199 = vmatprep.mubr.msk.f32.mxu1 %vm3163_vm2, %v8411_v10  ;;  %9202 = vmatprep.subr.msk.mxu0 %vm3408_vm11, %v8420_v11  ;;  %v8487_v53 = vld [vmem:[%s10243_s30 + $0x49] sm:$0x3]  ;;  %v8506_v56 = vld [vmem:[%s10934_s3 + $0xc0] sm:$0x3f]  ;;  %v8499_v58 = vld [vmem:[%s10243_s30 + $0x4b] sm:$0x3] }
 0x23a   : >> { %9207 = vmatprep.subr.msk.mxu1 %vm3408_vm11, %v8426_v12  ;;  %9195 = vmatmul.mubr.msk.f32.vlgmr.msra.gmra.mxu0 %vm3163_vm2, %v8406_v13  ;;  %v8492_v54 = vld [vmem:[%s10243_s30 + $0x42] sm:$0xff]  ;;  %v8493_v57 = vld [vmem:[%s10243_s30 + $0x4a] sm:$0x3]  ;;  %v8505_v60 = vld [vmem:[%s10243_s30 + $0x4c] sm:$0x3] }
 0x23b   : >> { %9200 = vmatmul.mubr.msk.f32.vlgmr.msra.gmra.mxu1 %vm3163_vm2, %v8412_v14  ;;  %9203 = vmatpush3.msk.msra.mxu0 %vm3408_vm11, %v8420_v11  ;;  %v8498_v55 = vld [vmem:[%s10243_s30 + $0x43] sm:$0xff] }
 0x23c   : >> { %9208 = vmatpush3.msk.msra.mxu1 %vm3408_vm11, %v8426_v12  ;;  %9204 = vmatprep.mubr.msk.f32.mxu0 %vm3163_vm2, %v8418_v15  ;;  %v8504_v59 = vld [vmem:[%s10243_s30 + $0x44] sm:$0xff]  ;;  %s5663_s30 = scalar_lea.vmem [#allocation4], %s8366_s25 }
 0x23d   : >> { %9209 = vmatprep.mubr.msk.f32.mxu1 %vm3163_vm2, %v8424_v16  ;;  %9212 = vmatprep.subr.msk.mxu0 %vm3408_vm11, %v8432_v17 }
 0x23e   : >> { %9217 = vmatprep.subr.msk.mxu1 %vm3408_vm11, %v8438_v18  ;;  %9205 = vmatmul.mubr.msk.f32.vlgmr.msra.gmra.mxu0 %vm3163_vm2, %v8419_v19 }
 0x23f   : >> { %9210 = vmatmul.mubr.msk.f32.vlgmr.msra.gmra.mxu1 %vm3163_vm2, %v8425_v20  ;;  %9213 = vmatpush3.msk.msra.mxu0 %vm3408_vm11, %v8432_v17 }
 0x240   : >> { %9218 = vmatpush3.msk.msra.mxu1 %vm3408_vm11, %v8438_v18  ;;  %9214 = vmatprep.mubr.msk.f32.mxu0 %vm3163_vm2, %v8430_v21 }
 0x241   : >> { %9219 = vmatprep.mubr.msk.f32.mxu1 %vm3163_vm2, %v8436_v24  ;;  %9222 = vmatprep.subr.msk.mxu0 %vm3408_vm11, %v8444_v26 }
 0x242   : >> { %9227 = vmatprep.subr.msk.mxu1 %vm3408_vm11, %v8451_v0  ;;  %9215 = vmatmul.mubr.msk.f32.vlgmr.msra.gmra.mxu0 %vm3163_vm2, %v8431_v29 }
 0x243   : >> { %9220 = vmatmul.mubr.msk.f32.vlgmr.msra.gmra.mxu1 %vm3163_vm2, %v8437_v25  ;;  %9223 = vmatpush3.msk.msra.mxu0 %vm3408_vm11, %v8444_v26 }
 0x244   : >> { %9228 = vmatpush3.msk.msra.mxu1 %vm3408_vm11, %v8451_v0  ;;  %9224 = vmatprep.mubr.msk.f32.mxu0 %vm3163_vm2, %v8442_v31 }
 0x245   : >> { %9229 = vmatprep.mubr.msk.f32.mxu1 %vm3163_vm2, %v8449_v32  ;;  %9232 = vmatprep.subr.msk.mxu0 %vm3408_vm11, %v8457_v34 }
 0x246   : >> { %9237 = vmatprep.subr.msk.mxu1 %vm3408_vm11, %v8463_v27  ;;  %9225 = vmatmul.mubr.msk.f32.vlgmr.msra.gmra.mxu0 %vm3163_vm2, %v8443_v30 }
 0x247   : >> { %9230 = vmatmul.mubr.msk.f32.vlgmr.msra.gmra.mxu1 %vm3163_vm2, %v8450_v35  ;;  %9233 = vmatpush3.msk.msra.mxu0 %vm3408_vm11, %v8457_v34 }
 0x248   : >> { %9238 = vmatpush3.msk.msra.mxu1 %vm3408_vm11, %v8463_v27  ;;  %9234 = vmatprep.mubr.msk.f32.mxu0 %vm3163_vm2, %v8455_v36 }
 0x249   : >> { %9239 = vmatprep.mubr.msk.f32.mxu1 %vm3163_vm2, %v8461_v38  ;;  %9242 = vmatprep.subr.msk.mxu0 %vm3408_vm11, %v8469_v33 }
 0x24a   : >> { %9247 = vmatprep.subr.msk.mxu1 %vm3408_vm11, %v8475_v39  ;;  %9235 = vmatmul.mubr.msk.f32.vlgmr.msra.gmra.mxu0 %vm3163_vm2, %v8456_v40 }
 0x24b   : >> { %9240 = vmatmul.mubr.msk.f32.vlgmr.msra.gmra.mxu1 %vm3163_vm2, %v8462_v41  ;;  %9243 = vmatpush3.msk.msra.mxu0 %vm3408_vm11, %v8469_v33 }
 0x24c   : >> { %9248 = vmatpush3.msk.msra.mxu1 %vm3408_vm11, %v8475_v39  ;;  %9244 = vmatprep.mubr.msk.f32.mxu0 %vm3163_vm2, %v8467_v43 }
 0x24d   : >> { %9249 = vmatprep.mubr.msk.f32.mxu1 %vm3163_vm2, %v8473_v37  ;;  %9252 = vmatprep.subr.msk.mxu0 %vm3408_vm11, %v8482_v44 }
 0x24e   : >> { %9257 = vmatprep.subr.msk.mxu1 %vm3408_vm11, %v8488_v45  ;;  %9245 = vmatmul.mubr.msk.f32.vlgmr.msra.gmra.mxu0 %vm3163_vm2, %v8468_v42 }
 0x24f   : >> { %9250 = vmatmul.mubr.msk.f32.vlgmr.msra.gmra.mxu1 %vm3163_vm2, %v8474_v46  ;;  %9253 = vmatpush3.msk.msra.mxu0 %vm3408_vm11, %v8482_v44 }
 0x250   : >> { %9258 = vmatpush3.msk.msra.mxu1 %vm3408_vm11, %v8488_v45  ;;  %9254 = vmatprep.mubr.msk.f32.mxu0 %vm3163_vm2, %v8480_v48 }
 0x251   : >> { %9259 = vmatprep.mubr.msk.f32.mxu1 %vm3163_vm2, %v8486_v49  ;;  %9262 = vmatprep.subr.msk.mxu0 %vm3408_vm11, %v8494_v50 }
 0x252   : >> { %9267 = vmatprep.subr.msk.mxu1 %vm3408_vm11, %v8500_v51  ;;  %9255 = vmatmul.mubr.msk.f32.vlgmr.msra.gmra.mxu0 %vm3163_vm2, %v8481_v52 }
 0x253   : >> { %9260 = vmatmul.mubr.msk.f32.vlgmr.msra.gmra.mxu1 %vm3163_vm2, %v8487_v53  ;;  %9263 = vmatpush3.msk.msra.mxu0 %vm3408_vm11, %v8494_v50 }
 0x254   : >> { %9268 = vmatpush3.msk.msra.mxu1 %vm3408_vm11, %v8500_v51  ;;  %9264 = vmatprep.mubr.msk.f32.mxu0 %vm3163_vm2, %v8492_v54 }
 0x255   : >> { %9269 = vmatprep.mubr.msk.f32.mxu1 %vm3163_vm2, %v8498_v55  ;;  %9272 = vmatprep.subr.msk.mxu0 %vm3408_vm11, %v8506_v56 }
 0x256   : >> { %9265 = vmatmul.mubr.msk.f32.vlgmr.msra.gmra.mxu0 %vm3163_vm2, %v8493_v57 }
 0x257   : >> { %9270 = vmatmul.mubr.msk.f32.vlgmr.msra.gmra.mxu1 %vm3163_vm2, %v8499_v58  ;;  %9273 = vmatpush3.msk.msra.mxu0 %vm3408_vm11, %v8506_v56 }
 0x258   : >> { %9274 = vmatprep.mubr.msk.f32.mxu0 %vm3163_vm2, %v8504_v59 }
 0x25a   : >> { %9275 = vmatmul.mubr.msk.f32.vlgmr.msra.gmra.mxu0 %vm3163_vm2, %v8505_v60 }
 0x2ea   : >> { %v9156_v61 = vpop.f32.mrf.mxu0 }
 0x2eb   : >> { %v9161_v62 = vpop.f32.mrf.mxu1 }
 0x2ec   : >> { %v3478_v63 = vpop.f32.mrf.mxu0  ;;  %v3568_v2 = vadd.f32 %v9161_v62, %v9156_v61 }
 0x2ed   : >> { %v3562_v1 = vpop.f32.mrf.mxu1 }
 0x2ee   : >> { %v9166_v3 = vpop.f32.mrf.mxu0  ;;  %v3563_v5 = vadd.f32 %v3562_v1, %v3478_v63 }
 0x2ef   : >> { %v9171_v4 = vpop.f32.mrf.mxu1  ;;  %v3660_v6 = vadd.f32 %v9166_v3, %v3568_v2 }
 0x2f0   : >> { %v3650_v7 = vpop.f32.mrf.mxu0 }
 0x2f1   : >> { %v3740_v8 = vpop.f32.mrf.mxu1  ;;  %v3750_v9 = vadd.f32 %v9171_v4, %v3660_v6  ;;  %v3659_v10 = vadd.f32 %v3650_v7, %v3563_v5 }
 0x2f2   : >> { %v9176_v11 = vpop.f32.mrf.mxu0 }
 0x2f3   : >> { %v9181_v12 = vpop.f32.mrf.mxu1  ;;  %v3749_v13 = vadd.f32 %v3740_v8, %v3659_v10  ;;  %v3840_v14 = vadd.f32 %v9176_v11, %v3750_v9 }
 0x2f4   : >> { %v3830_v15 = vpop.f32.mrf.mxu0 }
 0x2f5   : >> { %v3923_v16 = vpop.f32.mrf.mxu1  ;;  %v3933_v17 = vadd.f32 %v9181_v12, %v3840_v14  ;;  %v3839_v18 = vadd.f32 %v3830_v15, %v3749_v13 }
 0x2f6   : >> { %v9186_v19 = vpop.f32.mrf.mxu0 }
 0x2f7   : >> { %v9191_v20 = vpop.f32.mrf.mxu1  ;;  %v3932_v21 = vadd.f32 %v3923_v16, %v3839_v18  ;;  %v4023_v24 = vadd.f32 %v9186_v19, %v3933_v17 }
 0x2f8   : >> { %v4013_v26 = vpop.f32.mrf.mxu0 }
 0x2f9   : >> { %v4103_v0 = vpop.f32.mrf.mxu1  ;;  %v4113_v29 = vadd.f32 %v9191_v20, %v4023_v24  ;;  %v4022_v25 = vadd.f32 %v4013_v26, %v3932_v21 }
 0x2fa   : >> { %v9196_v31 = vpop.f32.mrf.mxu0 }
 0x2fb   : >> { %v9201_v32 = vpop.f32.mrf.mxu1  ;;  %v4112_v34 = vadd.f32 %v4103_v0, %v4022_v25  ;;  %v4203_v27 = vadd.f32 %v9196_v31, %v4113_v29 }
 0x2fc   : >> { %v4193_v30 = vpop.f32.mrf.mxu0 }
 0x2fd   : >> { %v4283_v35 = vpop.f32.mrf.mxu1  ;;  %v4293_v36 = vadd.f32 %v9201_v32, %v4203_v27  ;;  %v4202_v38 = vadd.f32 %v4193_v30, %v4112_v34 }
 0x2fe   : >> { %v9206_v33 = vpop.f32.mrf.mxu0 }
 0x2ff   : >> { %v9211_v39 = vpop.f32.mrf.mxu1  ;;  %v4292_v40 = vadd.f32 %v4283_v35, %v4202_v38  ;;  %v4386_v41 = vadd.f32 %v9206_v33, %v4293_v36 }
 0x300   : >> { %v4376_v43 = vpop.f32.mrf.mxu0 }
 0x301   : >> { %v4466_v37 = vpop.f32.mrf.mxu1  ;;  %v4476_v44 = vadd.f32 %v9211_v39, %v4386_v41  ;;  %v4385_v45 = vadd.f32 %v4376_v43, %v4292_v40 }
 0x302   : >> { %v9216_v42 = vpop.f32.mrf.mxu0 }
 0x303   : >> { %v9221_v46 = vpop.f32.mrf.mxu1  ;;  %v4475_v48 = vadd.f32 %v4466_v37, %v4385_v45  ;;  %v4566_v49 = vadd.f32 %v9216_v42, %v4476_v44 }
 0x304   : >> { %v4556_v50 = vpop.f32.mrf.mxu0 }
 0x305   : >> { %v4646_v51 = vpop.f32.mrf.mxu1  ;;  %v4656_v52 = vadd.f32 %v9221_v46, %v4566_v49  ;;  %v4565_v53 = vadd.f32 %v4556_v50, %v4475_v48 }
 0x306   : >> { %v9226_v54 = vpop.f32.mrf.mxu0 }
 0x307   : >> { %v9231_v55 = vpop.f32.mrf.mxu1  ;;  %v4655_v56 = vadd.f32 %v4646_v51, %v4565_v53  ;;  %v4746_v57 = vadd.f32 %v9226_v54, %v4656_v52 }
 0x308   : >> { %v4736_v58 = vpop.f32.mrf.mxu0 }
 0x309   : >> { %v4829_v59 = vpop.f32.mrf.mxu1  ;;  %v4839_v60 = vadd.f32 %v9231_v55, %v4746_v57  ;;  %v4745_v61 = vadd.f32 %v4736_v58, %v4655_v56 }
 0x30a   : >> { %v9236_v62 = vpop.f32.mrf.mxu0 }
 0x30b   : >> { %v9241_v63 = vpop.f32.mrf.mxu1  ;;  %v4838_v1 = vadd.f32 %v4829_v59, %v4745_v61  ;;  %v4929_v2 = vadd.f32 %v9236_v62, %v4839_v60 }
 0x30c   : >> { %v4919_v3 = vpop.f32.mrf.mxu0 }
 0x30d   : >> { %v5009_v4 = vpop.f32.mrf.mxu1  ;;  %v5019_v5 = vadd.f32 %v9241_v63, %v4929_v2  ;;  %v4928_v6 = vadd.f32 %v4919_v3, %v4838_v1 }
 0x30e   : >> { %v9246_v7 = vpop.f32.mrf.mxu0 }
 0x30f   : >> { %v9251_v8 = vpop.f32.mrf.mxu1  ;;  %v5018_v9 = vadd.f32 %v5009_v4, %v4928_v6  ;;  %v5109_v10 = vadd.f32 %v9246_v7, %v5019_v5 }
 0x310   : >> { %v5099_v11 = vpop.f32.mrf.mxu0 }
 0x311   : >> { %v5189_v12 = vpop.f32.mrf.mxu1  ;;  %v5199_v13 = vadd.f32 %v9251_v8, %v5109_v10  ;;  %v5108_v14 = vadd.f32 %v5099_v11, %v5018_v9 }
 0x312   : >> { %v9256_v15 = vpop.f32.mrf.mxu0 }
 0x313   : >> { %v9261_v16 = vpop.f32.mrf.mxu1  ;;  %v5198_v17 = vadd.f32 %v5189_v12, %v5108_v14  ;;  %v5292_v18 = vadd.f32 %v9256_v15, %v5199_v13 }
 0x314   : >> { %v5282_v19 = vpop.f32.mrf.mxu0 }
 0x315   : >> { %v5372_v20 = vpop.f32.mrf.mxu1  ;;  %v5382_v21 = vadd.f32 %v9261_v16, %v5292_v18  ;;  %v5291_v24 = vadd.f32 %v5282_v19, %v5198_v17 }
 0x316   : >> { %v9266_v26 = vpop.f32.mrf.mxu0 }
 0x317   : >> { %v9271_v0 = vpop.f32.mrf.mxu1  ;;  %v5381_v29 = vadd.f32 %v5372_v20, %v5291_v24  ;;  %v5472_v25 = vadd.f32 %v9266_v26, %v5382_v21 }
 0x318   : >> { %v5462_v31 = vpop.f32.mrf.mxu0 }
 0x319   : >> { %v5562_v32 = vadd.f32 %v9271_v0, %v5472_v25  ;;  %v5471_v34 = vadd.f32 %v5462_v31, %v5381_v29  ;;  %v5552_v27 = vpop.f32.mrf.mxu1 }
 0x31a   : >> { %v9276_v30 = vpop.f32.mrf.mxu0 }
 0x31b   : >> { %v5561_v35 = vadd.f32 %v5552_v27, %v5471_v34  ;;  %v5652_v36 = vadd.f32 %v9276_v30, %v5562_v32 }
 0x31c   : >> { %v5642_v38 = vpop.f32.mrf.mxu0 }
 0x31d   : >> { %v5660_v33 = vadd.f32 %v10215_v47, %v5652_v36  ;;  %v5651_v39 = vadd.f32 %v5642_v38, %v5561_v35 }
 0x31f   : >> { %v5662_v40 = vmax.f32 %v5660_v33, 0.0  ;;  %v5659_v41 = vadd.f32 %v10215_v47, %v5651_v39  ;;  %3390 = sbr.rel (!%p3388_p13) target bundleno = 546 (0x222), region = 243 }
 0x321   : >> { %5667 = vst.msk [vmem:[%s5663_s30 + $0x8] sm:$0x3] %vm5666_vm12, %v5662_v40  ;;  %v5661_v43 = vmax.f32 %v5659_v41, 0.0 }
 0x323   : >> { %5665 = vst.msk [vmem:[%s5663_s30] sm:$0xff] %vm5664_vm13, %v5661_v43 }
 0x324 LB: >> { %v9708_v37 = vmov 0.0   ;;  %s8601_s25 = sshll.u32 %s9705_s29, 5  ;;  %vm9709_vm14 = vmmov 0   ;;  %vm5690_vm15 = vcmask 1041408   ;;  %vm5686_vm0 = vcmask 80896   ;;  %s8521_s12 = sshll.u32 %s9705_s29, 3  ;;  %s9705_s29 = sphi %s10460_s29, %s5673_s29  }
 0x325   : >> { %9277 = vmatprep.subr.mxu0 %v9708_v37  ;;  %9284 = vmatprep.subr.mxu1 %v9708_v37  ;;  %s5676_s22 = scalar_lea.vmem [#allocation4], %s8601_s25  ;;  %vm5840_vm1 = vcmask 126976   ;;  %s5839_s13 = scalar_lea.vmem [#allocation5], %s8521_s12 }
 0x326   : >> { %9281 = vmatprep.mubr.msk.f32.mxu0 %vm9709_vm14, %v9708_v37  ;;  %9288 = vmatprep.mubr.msk.f32.mxu1 %vm9709_vm14, %v9708_v37  ;;  %s5673_s29 = sadd.s32 1, %s9705_s29  }
 0x327   : >> { %p5670_p0 = scmp.ge.s32.totalorder %s5673_s29, 5  }
 0x328   : > { %v5845_v54 = vld [vmem:[%s10936_s5 + $0x8] sm:$0xff] (%p5670_p0)  ;;  %v8524_v55 = vld [vmem:[%s10936_s5 + $0x18] sm:$0xff] (%p5670_p0)  ;;  %v5844_v56 = vld [vmem:[%s10936_s5] sm:$0xff] (%p5670_p0)  ;;  %vm9710_vm2 = vmmov (%p5670_p0), 0   ;;  %s7987_s14 = sshll.u32 (%p5670_p0), %s9835_s24, 4  ;;  %s10948_s25 = sand.u32 (%p5670_p0), 1, %s9681_s18   ;;  %s7988_s14 = int_to_ptr.vmem [resolvable:$true] %s7987_s14 }
 0x329   : > { %v8527_v58 = vld [vmem:[%s10936_s5 + $0x28] sm:$0xff] (%p5670_p0)  ;;  %v8530_v59 = vld [vmem:[%s10936_s5 + $0x38] sm:$0xff] (%p5670_p0)  ;;  %v8526_v60 = vld [vmem:[%s10936_s5 + $0x20] sm:$0xff] (%p5670_p0)  ;;  %s9613_s0 = scalar_lea.vmem (%p5670_p0), %s7988_s14, 16  ;;  %s9711_s29 = smov (%p5670_p0), [#allocation6]  }
 0x32a   : >> { %v5678_v44 = vld [vmem:[%s5676_s22 + $0x8] sm:$0x3]  ;;  %v8516_v45 = vld [vmem:[%s5676_s22 + $0x18] sm:$0x3]  ;;  %v5677_v47 = vld [vmem:[%s5676_s22] sm:$0xff]  ;;  %p9614_p1 = scmp.ne.s32.totalorder (%p5670_p0), %s7988_s14, %s9613_s0 }
 0x32b   : >> { %v5685_v42 = vmax.f32 %v5678_v44, %v8516_v45  ;;  %v8515_v46 = vld [vmem:[%s5676_s22 + $0x10] sm:$0xff]  ;;  %v8533_v1 = vld [vmem:[%s10936_s5 + $0x48] sm:$0xff] (%p5670_p0)  ;;  %v8536_v2 = vld [vmem:[%s10936_s5 + $0x58] sm:$0xff] (%p5670_p0)  ;;  %s7975_s22 = scalar_lea.sflag (%p5670_p0), [#allocation7], %s10948_s25 }
 0x32c   : >> { %v5684_v48 = vmax.f32 %v5677_v47, %v8515_v46  ;;  %v8529_v62 = vld [vmem:[%s10936_s5 + $0x30] sm:$0xff] (%p5670_p0)  ;;  %v8532_v3 = vld [vmem:[%s10936_s5 + $0x40] sm:$0xff] (%p5670_p0)  ;;  %v8539_v7 = vld [vmem:[%s10936_s5 + $0x68] sm:$0xff] (%p5670_p0)  ;;  %p9615_p2 = pnand (%p5670_p0), %p9614_p1, %p9810_p5 }
 0x32d   : >> { %9278 = vmatpush3.msk.msra.mxu0 %vm5690_vm15, %v5685_v42  ;;  %9285 = vmatpush3.msk.msra.mxu1 %vm5690_vm15, %v5685_v42  ;;  %v8535_v5 = vld [vmem:[%s10936_s5 + $0x50] sm:$0xff] (%p5670_p0)  ;;  %v8542_v8 = vld [vmem:[%s10936_s5 + $0x78] sm:$0xff] (%p5670_p0)  ;;  %v8538_v9 = vld [vmem:[%s10936_s5 + $0x60] sm:$0xff] (%p5670_p0) }
 0x32e   : >> { %9279 = vmatprep.subr.mxu0 %v9708_v37  ;;  %9286 = vmatprep.subr.mxu1 %v9708_v37  ;;  %v8541_v11 = vld [vmem:[%s10936_s5 + $0x70] sm:$0xff] (%p5670_p0)  ;;  %v8545_v13 = vld [vmem:[%s10936_s5 + $0x88] sm:$0xff] (%p5670_p0)  ;;  %v8548_v14 = vld [vmem:[%s10936_s5 + $0x98] sm:$0xff] (%p5670_p0)  ;;  %p9616_p3 = pneg (%p5670_p0), %p9615_p2 }
 0x32f   : >> { %9280 = vmatpush3.msra.mxu0 %v5684_v48  ;;  %9287 = vmatpush3.msra.mxu1 %v5684_v48  ;;  %v8544_v15 = vld [vmem:[%s10936_s5 + $0x80] sm:$0xff] (%p5670_p0)  ;;  %v8547_v17 = vld [vmem:[%s10936_s5 + $0x90] sm:$0xff] (%p5670_p0)  ;;  %v8551_v19 = vld [vmem:[%s10936_s5 + $0xa8] sm:$0xff] (%p5670_p0) }
 0x330   : >> { %9282 = vmatmul.mubr.msk.f32.vlgmr.msra.gmra.mxu0 %vm5686_vm0, %v10188_v23  ;;  %9289 = vmatmul.mubr.msk.f32.vlgmr.msra.gmra.mxu1 %vm5686_vm0, %v10192_v28  ;;  %v8523_v23 = vld [vmem:[%s10936_s5 + $0x10] sm:$0xff] (%p5670_p0)  ;;  %v8554_v20 = vld [vmem:[%s10936_s5 + $0xb8] sm:$0xff] (%p5670_p0)  ;;  %v8550_v21 = vld [vmem:[%s10936_s5 + $0xa0] sm:$0xff] (%p5670_p0) }
 0x331   : > { %9291 = vmatprep.subr.mxu0 (%p5670_p0), %v9707_v22  ;;  %9298 = vmatprep.subr.mxu1 (%p5670_p0), %v9707_v22  ;;  %v8553_v26 = vld [vmem:[%s10936_s5 + $0xb0] sm:$0xff] (%p5670_p0)  ;;  %v8557_v29 = vld [vmem:[%s10936_s5 + $0xc8] sm:$0xff] (%p5670_p0)  ;;  %v8560_v25 = vld [vmem:[%s10936_s5 + $0xd8] sm:$0xff] (%p5670_p0) }
 0x332   : > { %9292 = vmatpush3.msra.mxu0 (%p5670_p0), %v5845_v54  ;;  %9299 = vmatpush3.msra.mxu1 (%p5670_p0), %v8524_v55  ;;  %v8556_v31 = vld [vmem:[%s10936_s5 + $0xc0] sm:$0xff] (%p5670_p0)  ;;  %v8559_v34 = vld [vmem:[%s10936_s5 + $0xd0] sm:$0xff] (%p5670_p0)  ;;  %v8563_v30 = vld [vmem:[%s10936_s5 + $0xe8] sm:$0xff] (%p5670_p0) }
 0x333   : > { %9293 = vmatprep.subr.mxu0 (%p5670_p0), %v9707_v22  ;;  %9295 = vmatprep.mubr.msk.f32.mxu0 (%p5670_p0), %vm9710_vm2, %v9707_v22  ;;  %v8566_v35 = vld [vmem:[%s10936_s5 + $0xf8] sm:$0xff] (%p5670_p0)  ;;  %v8562_v36 = vld [vmem:[%s10936_s5 + $0xe0] sm:$0xff] (%p5670_p0)  ;;  %v8565_v33 = vld [vmem:[%s10936_s5 + $0xf0] sm:$0xff] (%p5670_p0) }
 0x334   : > { %9294 = vmatpush3.msra.mxu0 (%p5670_p0), %v5844_v56  ;;  %9300 = vmatprep.subr.mxu1 (%p5670_p0), %v9707_v22  ;;  %v8569_v40 = vld [vmem:[%s10936_s5 + $0x108] sm:$0xff] (%p5670_p0)  ;;  %v8572_v41 = vld [vmem:[%s10936_s5 + $0x118] sm:$0xff] (%p5670_p0)  ;;  %v8568_v43 = vld [vmem:[%s10936_s5 + $0x100] sm:$0xff] (%p5670_p0) }
 0x335   : > { %9301 = vmatpush3.msra.mxu1 (%p5670_p0), %v8523_v23  ;;  %9302 = vmatprep.mubr.msk.f32.mxu1 (%p5670_p0), %vm9710_vm2, %v9707_v22  ;;  %v8571_v44 = vld [vmem:[%s10936_s5 + $0x110] sm:$0xff] (%p5670_p0)  ;;  %v8575_v47 = vld [vmem:[%s10936_s5 + $0x128] sm:$0xff] (%p5670_p0)  ;;  %v8578_v42 = vld [vmem:[%s10936_s5 + $0x138] sm:$0xff] (%p5670_p0) }
 0x336   : > { %9305 = vmatprep.subr.mxu0 (%p5670_p0), %v9707_v22  ;;  %9312 = vmatprep.subr.mxu1 (%p5670_p0), %v9707_v22  ;;  %v8574_v46 = vld [vmem:[%s10936_s5 + $0x120] sm:$0xff] (%p5670_p0)  ;;  %v8583_v55 = vld [vmem:[%s10936_s5 + $0x150] sm:$0xff] (%p5670_p0)  ;;  %v8590_v23 = vld [vmem:[%s10936_s5 + $0x178] sm:$0xff] (%p5670_p0) }
 0x3ef   : > { %5672 = sbr.rel (!%p5670_p0) target bundleno = 804 (0x324), region = 254 }
 0x3f0   : >> { %v5760_v49 = vpop.f32.mrf.mxu0  ;;  %v5833_v50 = vpop.f32.mrf.mxu1 }
 0x3f1   : >> { %v5837_v51 = vmax.f32 %v5760_v49, %v5833_v50  ;;  %v8577_v49 = vld [vmem:[%s10936_s5 + $0x130] sm:$0xff] (%p5670_p0) }
 0x3f2   : >> { %v9283_v52 = vpop.f32.mrf.mxu0  ;;  %v9290_v53 = vpop.f32.mrf.mxu1 }
 0x3f3   : >> { %5841 = vst.msk [vmem:[%s5839_s13] sm:$0x1f] %vm5840_vm1, %v5837_v51  ;;  %v8581_v51 = vld [vmem:[%s10936_s5 + $0x148] sm:$0xff] (%p5670_p0)  ;;  %v8584_v52 = vld [vmem:[%s10936_s5 + $0x158] sm:$0xff] (%p5670_p0)  ;;  %v8580_v53 = vld [vmem:[%s10936_s5 + $0x140] sm:$0xff] (%p5670_p0)  ;;  %s8595_s13 = sshll.u32 (%p5670_p0), %s9793_s21, 4 }
 0x3f4   : > { %s10893_s30 = scalar_lea.hbm %s10942_s11, %s8595_s13  ;;  %s9617_s21 = sshll.u32 %s9711_s29, 4  ;;  %s9618_s21 = int_to_ptr.vmem [resolvable:$false] %s9617_s21 }
 0x3f5   : > { %s9619_s12 = scalar_lea.vmem %s9618_s21, 32  ;;  %p9620_p4 = scmp.lt.s32.totalorder %s7988_s14, %s9618_s21 }
 0x3f6   : > { %p9621_p7 = scmp.lt.s32.totalorder %s9619_s12, %s9613_s0 }
 0x3f8   : > { %p9622_p8 = por %p9621_p7, %p9620_p4 }
 0x3fa   : > { %v5843_v57 = vld [vmem:[#allocation5] sm:$0x1]  ;;  %v5921_v28 = vld [vmem:[#allocation5 + $0x1] sm:$0x1]  ;;  %v5999_v61 = vld [vmem:[#allocation5 + $0x2] sm:$0x1]  ;;  %p9623_p9 = pnand %p9622_p8, %p9616_p3 }
 0x3fb   : > { %9296 = vmatmul.mubr.msk.f32.vlgmr.msra.gmra.mxu0 %vm5664_vm13, %v5843_v57  ;;  %9303 = vmatmul.mubr.msk.f32.vlgmr.msra.gmra.mxu1 %vm5664_vm13, %v5921_v28  ;;  %v6077_v63 = vld [vmem:[#allocation5 + $0x3] sm:$0x1]  ;;  %v6155_v4 = vld [vmem:[#allocation5 + $0x4] sm:$0x1]  ;;  %v6234_v6 = vld [vmem:[#allocation5 + $0x8] sm:$0x1] }
 0x3fc   : > { %9306 = vmatpush3.msra.mxu0 %v8527_v58  ;;  %9313 = vmatpush3.msra.mxu1 %v8530_v59  ;;  %v6312_v10 = vld [vmem:[#allocation5 + $0x9] sm:$0x1]  ;;  %v6390_v12 = vld [vmem:[#allocation5 + $0xa] sm:$0x1]  ;;  %v6468_v16 = vld [vmem:[#allocation5 + $0xb] sm:$0x1] }
 0x3fd   : > { %9307 = vmatprep.subr.mxu0 %v9707_v22  ;;  %9309 = vmatprep.mubr.msk.f32.mxu0 %vm9710_vm2, %v9707_v22  ;;  %v6546_v18 = vld [vmem:[#allocation5 + $0xc] sm:$0x1]  ;;  %v6625_v24 = vld [vmem:[#allocation5 + $0x10] sm:$0x1]  ;;  %v6703_v0 = vld [vmem:[#allocation5 + $0x11] sm:$0x1] }
 0x3fe   : > { %9308 = vmatpush3.msra.mxu0 %v8526_v60  ;;  %9314 = vmatprep.subr.mxu1 %v9707_v22  ;;  %v6781_v32 = vld [vmem:[#allocation5 + $0x12] sm:$0x1]  ;;  %v6859_v27 = vld [vmem:[#allocation5 + $0x13] sm:$0x1]  ;;  %v6937_v38 = vld [vmem:[#allocation5 + $0x14] sm:$0x1] }
 0x3ff   : > { %9310 = vmatmul.mubr.msk.f32.vlgmr.msra.gmra.mxu0 %vm5664_vm13, %v5999_v61  ;;  %9315 = vmatpush3.msra.mxu1 %v8529_v62  ;;  %v7016_v39 = vld [vmem:[#allocation5 + $0x18] sm:$0x1]  ;;  %v7094_v37 = vld [vmem:[#allocation5 + $0x19] sm:$0x1]  ;;  %v7172_v45 = vld [vmem:[#allocation5 + $0x1a] sm:$0x1] }
 0x400   : > { %9316 = vmatprep.mubr.msk.f32.mxu1 %vm9710_vm2, %v9707_v22  ;;  %9319 = vmatprep.subr.mxu0 %v9707_v22  ;;  %v7250_v48 = vld [vmem:[#allocation5 + $0x1b] sm:$0x1]  ;;  %v7328_v50 = vld [vmem:[#allocation5 + $0x1c] sm:$0x1]  ;;  %v7407_v54 = vld [vmem:[#allocation5 + $0x20] sm:$0x1] }
 0x401   : > { %9317 = vmatmul.mubr.msk.f32.vlgmr.msra.gmra.mxu1 %vm5664_vm13, %v6077_v63  ;;  %9320 = vmatpush3.msra.mxu0 %v8533_v1  ;;  %v7485_v56 = vld [vmem:[#allocation5 + $0x21] sm:$0x1]  ;;  %v8587_v57 = vld [vmem:[%s10936_s5 + $0x168] sm:$0xff]  ;;  %v7563_v58 = vld [vmem:[#allocation5 + $0x22] sm:$0x1] }
 0x402   : > { %9326 = vmatprep.subr.mxu1 %v9707_v22  ;;  %9321 = vmatprep.subr.mxu0 %v9707_v22  ;;  %v8586_v28 = vld [vmem:[%s10936_s5 + $0x160] sm:$0xff]  ;;  %v8589_v59 = vld [vmem:[%s10936_s5 + $0x170] sm:$0xff]  ;;  %v8593_v61 = vld [vmem:[%s10936_s5 + $0x188] sm:$0xff] }
 0x403   : > { %9327 = vmatpush3.msra.mxu1 %v8536_v2  ;;  %9322 = vmatpush3.msra.mxu0 %v8532_v3  ;;  %v7641_v60 = vld [vmem:[#allocation5 + $0x23] sm:$0x1]  ;;  %v7719_v63 = vld [vmem:[#allocation5 + $0x24] sm:$0x1]  ;;  %v7813_v1 = vld [vmem:[%s10938_s7 + $0x78] sm:$0xff] }
 0x404   : > { %9323 = vmatprep.mubr.msk.f32.mxu0 %vm9710_vm2, %v9707_v22  ;;  %9328 = vmatprep.subr.mxu1 %v9707_v22  ;;  %v8592_v62 = vld [vmem:[%s10936_s5 + $0x180] sm:$0xff]  ;;  %v7812_v2 = vld [vmem:[%s10938_s7 + $0x70] sm:$0xff]  ;;  %v7811_v3 = vld [vmem:[%s10938_s7 + $0x68] sm:$0xff] }
 0x405   : > { %9324 = vmatmul.mubr.msk.f32.vlgmr.msra.gmra.mxu0 %vm5664_vm13, %v6155_v4  ;;  %9329 = vmatpush3.msra.mxu1 %v8535_v5  ;;  %v7810_v4 = vld [vmem:[%s10938_s7 + $0x60] sm:$0xff]  ;;  %v7809_v5 = vld [vmem:[%s10938_s7 + $0x58] sm:$0xff] }
 0x406   : > { %9330 = vmatprep.mubr.msk.f32.mxu1 %vm9710_vm2, %v9707_v22  ;;  %9333 = vmatprep.subr.mxu0 %v9707_v22 }
 0x407   : > { %9331 = vmatmul.mubr.msk.f32.vlgmr.msra.gmra.mxu1 %vm5664_vm13, %v6234_v6  ;;  %9334 = vmatpush3.msra.mxu0 %v8539_v7  ;;  %v7808_v6 = vld [vmem:[%s10938_s7 + $0x50] sm:$0xff]  ;;  %v7807_v7 = vld [vmem:[%s10938_s7 + $0x48] sm:$0xff] }
 0x408   : > { %9340 = vmatprep.subr.mxu1 %v9707_v22  ;;  %9335 = vmatprep.subr.mxu0 %v9707_v22 }
 0x409   : > { %9341 = vmatpush3.msra.mxu1 %v8542_v8  ;;  %9336 = vmatpush3.msra.mxu0 %v8538_v9  ;;  %v7806_v8 = vld [vmem:[%s10938_s7 + $0x40] sm:$0xff]  ;;  %v7805_v9 = vld [vmem:[%s10938_s7 + $0x38] sm:$0xff] }
 0x40a   : > { %9337 = vmatprep.mubr.msk.f32.mxu0 %vm9710_vm2, %v9707_v22  ;;  %9342 = vmatprep.subr.mxu1 %v9707_v22 }
 0x40b   : > { %9338 = vmatmul.mubr.msk.f32.vlgmr.msra.gmra.mxu0 %vm5664_vm13, %v6312_v10  ;;  %9343 = vmatpush3.msra.mxu1 %v8541_v11  ;;  %v7804_v10 = vld [vmem:[%s10938_s7 + $0x30] sm:$0xff]  ;;  %v7803_v11 = vld [vmem:[%s10938_s7 + $0x28] sm:$0xff] }
 0x40c   : > { %9344 = vmatprep.mubr.msk.f32.mxu1 %vm9710_vm2, %v9707_v22  ;;  %9347 = vmatprep.subr.mxu0 %v9707_v22 }
 0x40d   : > { %9345 = vmatmul.mubr.msk.f32.vlgmr.msra.gmra.mxu1 %vm5664_vm13, %v6390_v12  ;;  %9348 = vmatpush3.msra.mxu0 %v8545_v13  ;;  %v7802_v12 = vld [vmem:[%s10938_s7 + $0x20] sm:$0xff]  ;;  %v7801_v13 = vld [vmem:[%s10938_s7 + $0x18] sm:$0xff] }
 0x40e   : > { %9354 = vmatprep.subr.mxu1 %v9707_v22  ;;  %9349 = vmatprep.subr.mxu0 %v9707_v22 }
 0x40f   : > { %9355 = vmatpush3.msra.mxu1 %v8548_v14  ;;  %9350 = vmatpush3.msra.mxu0 %v8544_v15  ;;  %v7800_v14 = vld [vmem:[%s10938_s7 + $0x10] sm:$0xff]  ;;  %v7799_v15 = vld [vmem:[%s10938_s7 + $0x8] sm:$0xff] }
 0x410   : > { %9351 = vmatprep.mubr.msk.f32.mxu0 %vm9710_vm2, %v9707_v22  ;;  %9356 = vmatprep.subr.mxu1 %v9707_v22 }
 0x411   : > { %9352 = vmatmul.mubr.msk.f32.vlgmr.msra.gmra.mxu0 %vm5664_vm13, %v6468_v16  ;;  %9357 = vmatpush3.msra.mxu1 %v8547_v17  ;;  %v7798_v16 = vld [vmem:[%s10938_s7] sm:$0xff]  ;;  %v7901_v17 = vld [vmem:[%s10940_s9 + $0x78] sm:$0xff] }
 0x412   : > { %9358 = vmatprep.mubr.msk.f32.mxu1 %vm9710_vm2, %v9707_v22  ;;  %9361 = vmatprep.subr.mxu0 %v9707_v22 }
 0x413   : > { %9359 = vmatmul.mubr.msk.f32.vlgmr.msra.gmra.mxu1 %vm5664_vm13, %v6546_v18  ;;  %9362 = vmatpush3.msra.mxu0 %v8551_v19  ;;  %v7900_v18 = vld [vmem:[%s10940_s9 + $0x70] sm:$0xff]  ;;  %v7899_v19 = vld [vmem:[%s10940_s9 + $0x68] sm:$0xff] }
 0x414   : > { %9368 = vmatprep.subr.mxu1 %v9707_v22  ;;  %9363 = vmatprep.subr.mxu0 %v9707_v22 }
 0x415   : > { %9369 = vmatpush3.msra.mxu1 %v8554_v20  ;;  %9364 = vmatpush3.msra.mxu0 %v8550_v21  ;;  %v7898_v20 = vld [vmem:[%s10940_s9 + $0x60] sm:$0xff]  ;;  %v7897_v21 = vld [vmem:[%s10940_s9 + $0x58] sm:$0xff] }
 0x416   : > { %9365 = vmatprep.mubr.msk.f32.mxu0 %vm9710_vm2, %v9707_v22  ;;  %9370 = vmatprep.subr.mxu1 %v9707_v22 }
 0x417   : > { %9366 = vmatmul.mubr.msk.f32.vlgmr.msra.gmra.mxu0 %vm5664_vm13, %v6625_v24  ;;  %9371 = vmatpush3.msra.mxu1 %v8553_v26  ;;  %v7896_v24 = vld [vmem:[%s10940_s9 + $0x50] sm:$0xff]  ;;  %v7895_v26 = vld [vmem:[%s10940_s9 + $0x48] sm:$0xff] }
 0x418   : > { %9372 = vmatprep.mubr.msk.f32.mxu1 %vm9710_vm2, %v9707_v22  ;;  %9375 = vmatprep.subr.mxu0 %v9707_v22 }
 0x419   : > { %9373 = vmatmul.mubr.msk.f32.vlgmr.msra.gmra.mxu1 %vm5664_vm13, %v6703_v0  ;;  %9376 = vmatpush3.msra.mxu0 %v8557_v29  ;;  %v7894_v0 = vld [vmem:[%s10940_s9 + $0x40] sm:$0xff]  ;;  %v7893_v29 = vld [vmem:[%s10940_s9 + $0x38] sm:$0xff] }
 0x41a   : > { %9382 = vmatprep.subr.mxu1 %v9707_v22  ;;  %9377 = vmatprep.subr.mxu0 %v9707_v22 }
 0x41b   : > { %9383 = vmatpush3.msra.mxu1 %v8560_v25  ;;  %9378 = vmatpush3.msra.mxu0 %v8556_v31  ;;  %v7892_v25 = vld [vmem:[%s10940_s9 + $0x30] sm:$0xff]  ;;  %v7891_v31 = vld [vmem:[%s10940_s9 + $0x28] sm:$0xff] }
 0x41c   : > { %9379 = vmatprep.mubr.msk.f32.mxu0 %vm9710_vm2, %v9707_v22  ;;  %9384 = vmatprep.subr.mxu1 %v9707_v22 }
 0x41d   : > { %9380 = vmatmul.mubr.msk.f32.vlgmr.msra.gmra.mxu0 %vm5664_vm13, %v6781_v32  ;;  %9385 = vmatpush3.msra.mxu1 %v8559_v34  ;;  %v7890_v32 = vld [vmem:[%s10940_s9 + $0x20] sm:$0xff]  ;;  %v7889_v34 = vld [vmem:[%s10940_s9 + $0x18] sm:$0xff] }
 0x41e   : > { %9386 = vmatprep.mubr.msk.f32.mxu1 %vm9710_vm2, %v9707_v22  ;;  %9389 = vmatprep.subr.mxu0 %v9707_v22 }
 0x41f   : > { %9387 = vmatmul.mubr.msk.f32.vlgmr.msra.gmra.mxu1 %vm5664_vm13, %v6859_v27  ;;  %9390 = vmatpush3.msra.mxu0 %v8563_v30  ;;  %v5842_v27 = vld [vmem:[%s10937_s6] sm:$0x1] }
 0x420   : > { %9396 = vmatprep.subr.mxu1 %v9707_v22  ;;  %9391 = vmatprep.subr.mxu0 %v9707_v22 }
 0x421   : > { %9397 = vmatpush3.msra.mxu1 %v8566_v35  ;;  %9392 = vmatpush3.msra.mxu0 %v8562_v36 }
 0x422   : > { %9393 = vmatprep.mubr.msk.f32.mxu0 %vm9710_vm2, %v9707_v22  ;;  %9398 = vmatprep.subr.mxu1 %v9707_v22 }
 0x423   : > { %9394 = vmatmul.mubr.msk.f32.vlgmr.msra.gmra.mxu0 %vm5664_vm13, %v6937_v38  ;;  %9399 = vmatpush3.msra.mxu1 %v8565_v33 }
 0x424   : > { %9400 = vmatprep.mubr.msk.f32.mxu1 %vm9710_vm2, %v9707_v22  ;;  %9403 = vmatprep.subr.mxu0 %v9707_v22 }
 0x425   : > { %9401 = vmatmul.mubr.msk.f32.vlgmr.msra.gmra.mxu1 %vm5664_vm13, %v7016_v39  ;;  %9404 = vmatpush3.msra.mxu0 %v8569_v40 }
 0x426   : > { %9410 = vmatprep.subr.mxu1 %v9707_v22  ;;  %9405 = vmatprep.subr.mxu0 %v9707_v22 }
 0x427   : > { %9411 = vmatpush3.msra.mxu1 %v8572_v41  ;;  %9406 = vmatpush3.msra.mxu0 %v8568_v43 }
 0x428   : > { %9407 = vmatprep.mubr.msk.f32.mxu0 %vm9710_vm2, %v9707_v22  ;;  %9412 = vmatprep.subr.mxu1 %v9707_v22 }
 0x429   : > { %9408 = vmatmul.mubr.msk.f32.vlgmr.msra.gmra.mxu0 %vm5664_vm13, %v7094_v37  ;;  %9413 = vmatpush3.msra.mxu1 %v8571_v44 }
 0x42a   : > { %9414 = vmatprep.mubr.msk.f32.mxu1 %vm9710_vm2, %v9707_v22  ;;  %9417 = vmatprep.subr.mxu0 %v9707_v22 }
 0x42b   : > { %9415 = vmatmul.mubr.msk.f32.vlgmr.msra.gmra.mxu1 %vm5664_vm13, %v7172_v45  ;;  %9418 = vmatpush3.msra.mxu0 %v8575_v47 }
 0x42c   : > { %9424 = vmatprep.subr.mxu1 %v9707_v22  ;;  %9419 = vmatprep.subr.mxu0 %v9707_v22 }
 0x42d   : > { %9425 = vmatpush3.msra.mxu1 %v8578_v42  ;;  %9420 = vmatpush3.msra.mxu0 %v8574_v46 }
 0x42e   : > { %9421 = vmatprep.mubr.msk.f32.mxu0 %vm9710_vm2, %v9707_v22  ;;  %9426 = vmatprep.subr.mxu1 %v9707_v22 }
 0x42f   : > { %9422 = vmatmul.mubr.msk.f32.vlgmr.msra.gmra.mxu0 %vm5664_vm13, %v7250_v48  ;;  %9427 = vmatpush3.msra.mxu1 %v8577_v49 }
 0x430   : > { %9428 = vmatprep.mubr.msk.f32.mxu1 %vm9710_vm2, %v9707_v22  ;;  %9431 = vmatprep.subr.mxu0 %v9707_v22 }
 0x431   : > { %9429 = vmatmul.mubr.msk.f32.vlgmr.msra.gmra.mxu1 %vm5664_vm13, %v7328_v50  ;;  %9432 = vmatpush3.msra.mxu0 %v8581_v51 }
 0x432   : > { %9438 = vmatprep.subr.mxu1 %v9707_v22  ;;  %9433 = vmatprep.subr.mxu0 %v9707_v22 }
 0x433   : > { %9439 = vmatpush3.msra.mxu1 %v8584_v52  ;;  %9434 = vmatpush3.msra.mxu0 %v8580_v53 }
 0x434   : > { %9435 = vmatprep.mubr.msk.f32.mxu0 %vm9710_vm2, %v9707_v22  ;;  %9440 = vmatprep.subr.mxu1 %v9707_v22 }
 0x435   : > { %9436 = vmatmul.mubr.msk.f32.vlgmr.msra.gmra.mxu0 %vm5664_vm13, %v7407_v54  ;;  %9441 = vmatpush3.msra.mxu1 %v8583_v55 }
 0x436   : > { %9442 = vmatprep.mubr.msk.f32.mxu1 %vm9710_vm2, %v9707_v22  ;;  %9445 = vmatprep.subr.mxu0 %v9707_v22 }
 0x437   : > { %9443 = vmatmul.mubr.msk.f32.vlgmr.msra.gmra.mxu1 %vm5664_vm13, %v7485_v56  ;;  %9446 = vmatpush3.msra.mxu0 %v8587_v57 }
 0x438   : > { %9452 = vmatprep.subr.mxu1 %v9707_v22  ;;  %9447 = vmatprep.subr.mxu0 %v9707_v22 }
 0x439   : > { %9453 = vmatpush3.msra.mxu1 %v8590_v23  ;;  %9448 = vmatpush3.msra.mxu0 %v8586_v28 }
 0x43a   : > { %9449 = vmatprep.mubr.msk.f32.mxu0 %vm9710_vm2, %v9707_v22  ;;  %9454 = vmatprep.subr.mxu1 %v9707_v22 }
 0x43b   : > { %9450 = vmatmul.mubr.msk.f32.vlgmr.msra.gmra.mxu0 %vm5664_vm13, %v7563_v58  ;;  %9455 = vmatpush3.msra.mxu1 %v8589_v59 }
 0x43c   : > { %9456 = vmatprep.mubr.msk.f32.mxu1 %vm9710_vm2, %v9707_v22  ;;  %9459 = vmatprep.subr.mxu0 %v9707_v22 }
 0x43d   : > { %9457 = vmatmul.mubr.msk.f32.vlgmr.msra.gmra.mxu1 %vm5664_vm13, %v7641_v60  ;;  %9460 = vmatpush3.msra.mxu0 %v8593_v61 }
 0x43e   : > { %9461 = vmatprep.subr.mxu0 %v9707_v22  ;;  %9463 = vmatprep.mubr.msk.f32.mxu0 %vm9710_vm2, %v9707_v22 }
 0x43f   : > { %9462 = vmatpush3.msra.mxu0 %v8592_v62  ;;  %9466 = vmatprep.subr.mxu1 %v9707_v22 }
 0x440   : > { %9464 = vmatmul.mubr.msk.f32.vlgmr.msra.gmra.mxu0 %vm5664_vm13, %v7719_v63  ;;  %9498 = vmatprep.mubr.msk.f32.mxu1 %vm9710_vm2, %v9707_v22 }
 0x441   : > { %9501 = vmatprep.subr.mxu0 %v9707_v22  ;;  %9533 = vmatprep.mubr.msk.f32.mxu0 %vm9710_vm2, %v9707_v22 }
 0x442   : > { %9467 = vmatpush3.msra.mxu1 %v7813_v1  ;;  %9502 = vmatpush3.msra.mxu0 %v7901_v17 }
 0x443   : > { %9468 = vmatprep.subr.mxu1 %v9707_v22  ;;  %9503 = vmatprep.subr.mxu0 %v9707_v22 }
 0x444   : > { %9469 = vmatpush3.msra.mxu1 %v7812_v2  ;;  %9504 = vmatpush3.msra.mxu0 %v7900_v18 }
 0x445   : > { %9470 = vmatprep.subr.mxu1 %v9707_v22  ;;  %9505 = vmatprep.subr.mxu0 %v9707_v22 }
 0x446   : > { %9471 = vmatpush3.msra.mxu1 %v7811_v3  ;;  %9506 = vmatpush3.msra.mxu0 %v7899_v19 }
 0x447   : > { %9472 = vmatprep.subr.mxu1 %v9707_v22  ;;  %9507 = vmatprep.subr.mxu0 %v9707_v22 }
 0x448   : > { %9473 = vmatpush3.msra.mxu1 %v7810_v4  ;;  %9508 = vmatpush3.msra.mxu0 %v7898_v20 }
 0x449   : > { %9474 = vmatprep.subr.mxu1 %v9707_v22  ;;  %9509 = vmatprep.subr.mxu0 %v9707_v22 }
 0x44a   : > { %9475 = vmatpush3.msra.mxu1 %v7809_v5  ;;  %9510 = vmatpush3.msra.mxu0 %v7897_v21 }
 0x44b   : > { %9476 = vmatprep.subr.mxu1 %v9707_v22  ;;  %9511 = vmatprep.subr.mxu0 %v9707_v22 }
 0x44c   : > { %9477 = vmatpush3.msra.mxu1 %v7808_v6  ;;  %9512 = vmatpush3.msra.mxu0 %v7896_v24 }
 0x44d   : > { %9478 = vmatprep.subr.mxu1 %v9707_v22  ;;  %9513 = vmatprep.subr.mxu0 %v9707_v22 }
 0x44e   : > { %9479 = vmatpush3.msra.mxu1 %v7807_v7  ;;  %9514 = vmatpush3.msra.mxu0 %v7895_v26 }
 0x44f   : > { %9480 = vmatprep.subr.mxu1 %v9707_v22  ;;  %9515 = vmatprep.subr.mxu0 %v9707_v22 }
 0x450   : > { %9481 = vmatpush3.msra.mxu1 %v7806_v8  ;;  %9516 = vmatpush3.msra.mxu0 %v7894_v0 }
 0x451   : > { %9482 = vmatprep.subr.mxu1 %v9707_v22  ;;  %9517 = vmatprep.subr.mxu0 %v9707_v22 }
 0x452   : > { %9483 = vmatpush3.msra.mxu1 %v7805_v9  ;;  %9518 = vmatpush3.msra.mxu0 %v7893_v29 }
 0x453   : > { %9484 = vmatprep.subr.mxu1 %v9707_v22  ;;  %9519 = vmatprep.subr.mxu0 %v9707_v22 }
 0x454   : > { %9485 = vmatpush3.msra.mxu1 %v7804_v10  ;;  %9520 = vmatpush3.msra.mxu0 %v7892_v25 }
 0x455   : > { %9486 = vmatprep.subr.mxu1 %v9707_v22  ;;  %9521 = vmatprep.subr.mxu0 %v9707_v22 }
 0x456   : > { %9487 = vmatpush3.msra.mxu1 %v7803_v11  ;;  %9522 = vmatpush3.msra.mxu0 %v7891_v31 }
 0x457   : > { %9488 = vmatprep.subr.mxu1 %v9707_v22  ;;  %9523 = vmatprep.subr.mxu0 %v9707_v22 }
 0x458   : > { %9489 = vmatpush3.msra.mxu1 %v7802_v12  ;;  %9524 = vmatpush3.msra.mxu0 %v7890_v32 }
 0x459   : > { %9490 = vmatprep.subr.mxu1 %v9707_v22  ;;  %9525 = vmatprep.subr.mxu0 %v9707_v22 }
 0x45a   : > { %9491 = vmatpush3.msra.mxu1 %v7801_v13  ;;  %9526 = vmatpush3.msra.mxu0 %v7889_v34 }
 0x45b   : > { %9492 = vmatprep.subr.mxu1 %v9707_v22  ;;  %9527 = vmatprep.subr.mxu0 %v9707_v22 }
 0x45c   : > { %9493 = vmatpush3.msra.mxu1 %v7800_v14 }
 0x45d   : > { %9494 = vmatprep.subr.mxu1 %v9707_v22 }
 0x45e   : > { %9495 = vmatpush3.msra.mxu1 %v7799_v15 }
 0x45f   : > { %9496 = vmatprep.subr.mxu1 %v9707_v22 }
 0x460   : > { %9497 = vmatpush3.msra.mxu1 %v7798_v16 }
 0x4bb   : > { %v5916_v30 = vpop.f32.mrf.mxu0  ;;  %v5994_v36 = vpop.f32.mrf.mxu1 }
 0x4bc   : > { %v5920_v35 = vadd.f32 %v5916_v30, %v5842_v27 }
 0x4bd   : > { %v9297_v38 = vpop.f32.mrf.mxu0  ;;  %v9304_v39 = vpop.f32.mrf.mxu1 }
 0x4be   : > { %v5998_v33 = vadd.f32 %v5994_v36, %v5920_v35 }
 0x4bf   : > { %v6072_v40 = vpop.f32.mrf.mxu0 }
 0x4c0   : > { %v6076_v41 = vadd.f32 %v6072_v40, %v5998_v33 }
 0x4c1   : > { %v6150_v43 = vpop.f32.mrf.mxu1  ;;  %v9311_v37 = vpop.f32.mrf.mxu0 }
 0x4c2   : > { %v6154_v44 = vadd.f32 %v6150_v43, %v6076_v41 }
 0x4c3   : > { %v9318_v45 = vpop.f32.mrf.mxu1 }
 0x4c5   : > { %v6228_v47 = vpop.f32.mrf.mxu0 }
 0x4c6   : > { %v6232_v42 = vadd.f32 %v6228_v47, %v6154_v44 }
 0x4c7   : > { %v6307_v46 = vpop.f32.mrf.mxu1  ;;  %v9325_v48 = vpop.f32.mrf.mxu0 }
 0x4c8   : > { %v6311_v49 = vadd.f32 %v6307_v46, %v6232_v42  ;;  %v7888_v42 = vld [vmem:[%s10940_s9 + $0x10] sm:$0xff]  ;;  %v7887_v46 = vld [vmem:[%s10940_s9 + $0x8] sm:$0xff]  ;;  %v7886_v48 = vld [vmem:[%s10940_s9] sm:$0xff] }
 0x4c9   : > { %v9332_v50 = vpop.f32.mrf.mxu1  ;;  %9528 = vmatpush3.msra.mxu0 %v7888_v42 }
 0x4ca   : > { %9529 = vmatprep.subr.mxu0 %v9707_v22 }
 0x4cb   : > { %v6385_v51 = vpop.f32.mrf.mxu0  ;;  %9530 = vmatpush3.msra.mxu0 %v7887_v46 }
 0x4cc   : > { %v6389_v52 = vadd.f32 %v6385_v51, %v6311_v49  ;;  %9531 = vmatprep.subr.mxu0 %v9707_v22  ;;  %v7814_v49 = vld [vmem:[%s10939_s8] sm:$0x1] }
 0x4cd   : > { %v6463_v53 = vpop.f32.mrf.mxu1  ;;  %v9339_v54 = vpop.f32.mrf.mxu0  ;;  %9532 = vmatpush3.msra.mxu0 %v7886_v48 }
 0x4ce   : > { %v6467_v55 = vadd.f32 %v6463_v53, %v6389_v52  ;;  %v7902_v54 = vld [vmem:[%s10941_s10] sm:$0x1] }
 0x4cf   : > { %v9346_v56 = vpop.f32.mrf.mxu1 }
 0x4d1   : > { %v6541_v57 = vpop.f32.mrf.mxu0 }
 0x4d2   : > { %v6545_v23 = vadd.f32 %v6541_v57, %v6467_v55 }
 0x4d3   : > { %v6619_v28 = vpop.f32.mrf.mxu1  ;;  %v9353_v58 = vpop.f32.mrf.mxu0 }
 0x4d4   : > { %v6623_v59 = vadd.f32 %v6619_v28, %v6545_v23 }
 0x4d5   : > { %v9360_v60 = vpop.f32.mrf.mxu1 }
 0x4d7   : > { %v6698_v61 = vpop.f32.mrf.mxu0 }
 0x4d8   : > { %v6702_v62 = vadd.f32 %v6698_v61, %v6623_v59 }
 0x4d9   : > { %v6776_v63 = vpop.f32.mrf.mxu1  ;;  %v9367_v1 = vpop.f32.mrf.mxu0 }
 0x4da   : > { %v6780_v2 = vadd.f32 %v6776_v63, %v6702_v62 }
 0x4db   : > { %v9374_v3 = vpop.f32.mrf.mxu1 }
 0x4dd   : > { %v6854_v4 = vpop.f32.mrf.mxu0 }
 0x4de   : > { %v6858_v5 = vadd.f32 %v6854_v4, %v6780_v2 }
 0x4df   : > { %v6932_v6 = vpop.f32.mrf.mxu1  ;;  %v9381_v7 = vpop.f32.mrf.mxu0 }
 0x4e0   : > { %v6936_v8 = vadd.f32 %v6932_v6, %v6858_v5 }
 0x4e1   : > { %v9388_v9 = vpop.f32.mrf.mxu1 }
 0x4e3   : > { %v7010_v10 = vpop.f32.mrf.mxu0 }
 0x4e4   : > { %v7014_v11 = vadd.f32 %v7010_v10, %v6936_v8 }
 0x4e5   : > { %v7089_v12 = vpop.f32.mrf.mxu1  ;;  %v9395_v13 = vpop.f32.mrf.mxu0 }
 0x4e6   : > { %v7093_v14 = vadd.f32 %v7089_v12, %v7014_v11 }
 0x4e7   : > { %v9402_v15 = vpop.f32.mrf.mxu1 }
 0x4e9   : > { %v7167_v16 = vpop.f32.mrf.mxu0 }
 0x4ea   : > { %v7171_v17 = vadd.f32 %v7167_v16, %v7093_v14 }
 0x4eb   : > { %v7245_v18 = vpop.f32.mrf.mxu1  ;;  %v9409_v19 = vpop.f32.mrf.mxu0 }
 0x4ec   : > { %v7249_v20 = vadd.f32 %v7245_v18, %v7171_v17 }
 0x4ed   : > { %v9416_v21 = vpop.f32.mrf.mxu1 }
 0x4ef   : > { %v7323_v24 = vpop.f32.mrf.mxu0 }
 0x4f0   : > { %v7327_v26 = vadd.f32 %v7323_v24, %v7249_v20 }
 0x4f1   : > { %v7401_v0 = vpop.f32.mrf.mxu1  ;;  %v9423_v29 = vpop.f32.mrf.mxu0 }
 0x4f2   : > { %v7405_v25 = vadd.f32 %v7401_v0, %v7327_v26 }
 0x4f3   : > { %v9430_v31 = vpop.f32.mrf.mxu1 }
 0x4f5   : > { %v7480_v32 = vpop.f32.mrf.mxu0 }
 0x4f6   : > { %v7484_v34 = vadd.f32 %v7480_v32, %v7405_v25 }
 0x4f7   : > { %v7558_v27 = vpop.f32.mrf.mxu1  ;;  %v9437_v30 = vpop.f32.mrf.mxu0 }
 0x4f8   : > { %v7562_v35 = vadd.f32 %v7558_v27, %v7484_v34 }
 0x4f9   : > { %v9444_v36 = vpop.f32.mrf.mxu1 }
 0x4fb   : > { %v7636_v38 = vpop.f32.mrf.mxu0 }
 0x4fc   : > { %v7640_v33 = vadd.f32 %v7636_v38, %v7562_v35 }
 0x4fd   : > { %v7714_v39 = vpop.f32.mrf.mxu1  ;;  %v9451_v40 = vpop.f32.mrf.mxu0 }
 0x4fe   : > { %v7718_v41 = vadd.f32 %v7714_v39, %v7640_v33 }
 0x4ff   : > { %v9458_v43 = vpop.f32.mrf.mxu1 }
 0x500   : > { %v7792_v37 = vpop.f32.mrf.mxu0 }
 0x501   : > { %v7796_v44 = vadd.f32 %v7792_v37, %v7718_v41 }
 0x502   : > { %v9465_v45 = vpop.f32.mrf.mxu0 }
 0x503   : > { %v7797_v47 = vmax.f32 %v7796_v44, 0.0 }
 0x505   : > { %9499 = vmatmul.mubr.f32.vlgmr.msra.gmra.mxu1 %v7797_v47 }
 0x5c5   : > { %v7881_v50 = vpop.f32.mrf.mxu1 }
 0x5c6   : > { %v7882_v51 = vadd.f32 %v7881_v50, %v7814_v49 }
 0x5c7   : > { %v9500_v52 = vpop.f32.mrf.mxu1 }
 0x5c8   : > { %v7885_v53 = vmax.f32 %v7882_v51, 0.0 }
 0x5ca   : > { %9534 = vmatmul.mubr.f32.vlgmr.msra.gmra.mxu0 %v7885_v53 }
 0x68a   : > { %v7969_v22 = vpop.f32.mrf.mxu0 }
 0x68b   : > { %v7970_v55 = vadd.f32 %v7969_v22, %v7902_v54 }
 0x68c   : > { %v9535_v56 = vpop.f32.mrf.mxu0 }
 0x68d   : > { %7973 = vst [vmem:[%s9835_s24] sm:$0x1] %v7970_v55 }
 0x68e   : > { %9626 = shalt.err (!%p9623_p9)
}
 0x68f   : > { %s9627_s24 = scalar_lea.hbm %s10893_s30, 16  ;;  %s9631_s16 = scalar_lea.hbm %s10942_s11, 32 }
 0x690   : > { %p9628_p10 = scmp.ne.s32.totalorder %s10893_s30, %s9627_s24  ;;  %p9632_p13 = scmp.lt.s32.totalorder %s10893_s30, %s10942_s11 }
 0x691   : > { %p9633_p0 = scmp.lt.s32.totalorder %s9631_s16, %s9627_s24 }
 0x692   : > { %p9629_p11 = pnand %p9628_p10, %p9810_p5 }
 0x693   : > { %p9634_p1 = por %p9633_p0, %p9632_p13 }
 0x694   : > { %p9630_p12 = pneg %p9629_p11 }
 0x696   : > { %p9635_p2 = pnand %p9634_p1, %p9630_p12 }
 0x698   : > { %9638 = shalt.err (!%p9635_p2)
}
 0x699   : > { %9538 = dma.vmem_to_hbm [thread:$0]  (%p9810_p5), %s7988_s14, 16, %s10893_s30, %s7975_s22  }
 0x69a PF: > { %p9544_p3 = scmp.ge.s32.totalorder %s9689_s20, 2  ;;  %s7999_s0 = sand.u32 1, %s9677_s17  }
 0x69b   : > { %s8000_s21 = scalar_lea.sflag [#allocation7], %s7999_s0 }
 0x69c   : > { %p9541_p4 = pnand %p9544_p3, %p9814_p6 }
 0x69e   : > { %p9542_p7 = pneg %p9541_p4 }
 0x6a0   : > { %9672 = dma.done.wait (%p9542_p7), %s8000_s21, 16  }
 0x6a1   : > { %9674 = vsyncadd (%p9542_p7), %s8000_s21, 4294967280  ;;  %p21_p8 = scmp.ge.s32.totalorder %s9797_s23, 4   ;;  %s10949_s17 = smov %s9681_s18 }
 0x6a2   : > { %s10950_s18 = smov %s9685_s19  ;;  %s10951_s19 = smov %s9808_s26 }
 0x6a3   : > { %s10952_s20 = smov %s9797_s23  ;;  %23 = sbr.rel (!%p21_p8) target bundleno = 5 (0x5), region = 265 }
 0x6a8   :  { %8004 = vsyncpa [#allocation7], 1 }
 0x6a9   :  { %8006 = vsyncpa [#allocation7 + $0x1], 1 }

</bundles_post_ra>
